<compile_context>
chip_gen: v7x
topology: tpu7x:2x2x1
jax: 0.10.0
libtpu: 0.0.40
codegen_flags: <defaults>
</compile_context>

<pallas_src>
import math
from functools import partial

import jax
import jax.numpy as jnp
from jax import lax
from jax.experimental import pallas as pl
from jax.experimental.pallas import tpu as pltpu


# ----------------------------- fused LSTM kernel -----------------------------
def _make_fused_lstm_kernel(num_layers, S, B, D, H, O):
    """Builds the fused (all layers + head) kernel for static shapes."""

    def kernel(*args):
        # args: x, (wih_t, whh_t, bias) * num_layers, wlin_t, blin,
        #       out, gx_sc, act_sc, h_sc, c_sc
        x_ref = args[0]
        layer_refs = args[1:1 + 3 * num_layers]
        wlin_ref = args[1 + 3 * num_layers]        # (H, O)
        blin_ref = args[2 + 3 * num_layers]        # (1, O)
        out_ref = args[3 + 3 * num_layers]         # (B, S, O)
        gx_sc, act_sc, h_sc, c_sc = args[4 + 3 * num_layers:]
        # gx_sc : (B, S, 4H) f32   hoisted input-projection for all timesteps
        # act_sc: (B, S, H)  f32   per-layer hidden states (fed to next layer)
        # h_sc, c_sc: (B, H) f32   recurrent state

        unroll = True if S <= 32 else 8  # short loops: give LLO full visibility

        for layer in range(num_layers):
            wih_ref = layer_refs[3 * layer + 0]    # (D_in, 4H) = W_ih^T
            whh_ref = layer_refs[3 * layer + 1]    # (H, 4H)    = W_hh^T
            b_ref = layer_refs[3 * layer + 2]      # (1, 4H)    = b_ih + b_hh

            # ---- hoisted input projection over ALL timesteps (one big matmul)
            if layer == 0:
                x_flat = x_ref[...].reshape(B * S, D)
            else:
                x_flat = act_sc[...].reshape(B * S, H)
            gx = jnp.dot(x_flat, wih_ref[...],
                         preferred_element_type=jnp.float32) + b_ref[...]
            gx_sc[...] = gx.reshape(B, S, 4 * H)

            # ---- serial recurrence: only h @ W_hh^T left on the critical path
            h_sc[...] = jnp.zeros_like(h_sc)       # zero init per layer
            c_sc[...] = jnp.zeros_like(c_sc)
            whh = whh_ref[...]                     # hoisted load, (H, 4H)

            def step(t, carry):
                g_x = gx_sc[:, pl.ds(t, 1), :].reshape(B, 4 * H)
                gates = g_x + jnp.dot(h_sc[...], whh,
                                      preferred_element_type=jnp.float32)
                i_g = jax.nn.sigmoid(gates[:, 0 * H:1 * H])
                f_g = jax.nn.sigmoid(gates[:, 1 * H:2 * H])
                g_g = jnp.tanh(gates[:, 2 * H:3 * H])
                o_g = jax.nn.sigmoid(gates[:, 3 * H:4 * H])
                c_new = f_g * c_sc[...] + i_g * g_g
                h_new = o_g * jnp.tanh(c_new)
                c_sc[...] = c_new
                h_sc[...] = h_new
                act_sc[:, pl.ds(t, 1), :] = h_new.reshape(B, 1, H)
                return carry

            lax.fori_loop(0, S, step, 0, unroll=unroll)

        # ---- fused Linear head over the whole (B*S, H) slab (single store)
        act_flat = act_sc[...].reshape(B * S, H)
        head = jnp.dot(act_flat, wlin_ref[...],
                       preferred_element_type=jnp.float32) + blin_ref[...]
        out_ref[...] = head.reshape(B, S, O).astype(out_ref.dtype)

    return kernel


# ------------------------------ Model wrapper --------------------------------
def init_params(key, input_dim, hidden_dim, output_dim, num_layers):
    """Deterministic init mimicking PyTorch's U(-1/sqrt(H), 1/sqrt(H))."""
    params = {"lstm": [], "linear": {}}
    k = 1.0 / math.sqrt(hidden_dim)
    for layer in range(num_layers):
        d_in = input_dim if layer == 0 else hidden_dim
        key, k1, k2, k3, k4 = jax.random.split(key, 5)
        params["lstm"].append(
            dict(
                w_ih=jax.random.uniform(k1, (4 * hidden_dim, d_in), jnp.float32, -k, k),
                w_hh=jax.random.uniform(k2, (4 * hidden_dim, hidden_dim), jnp.float32, -k, k),
                b_ih=jax.random.uniform(k3, (4 * hidden_dim,), jnp.float32, -k, k),
                b_hh=jax.random.uniform(k4, (4 * hidden_dim,), jnp.float32, -k, k),
            )
        )
    key, k1, k2 = jax.random.split(key, 3)
    params["linear"] = dict(
        w=jax.random.uniform(k1, (output_dim, hidden_dim), jnp.float32, -k, k),
        b=jax.random.uniform(k2, (output_dim,), jnp.float32, -k, k),
    )
    return params


@partial(jax.jit, static_argnames=())
def baseline_lstm_forward(params, x_bsd):
    """x_bsd: (batch, seq, input_dim) -> (batch, seq, output_dim).
    Zero initial hidden/cell state (matches baselineLSTM.init_hidden)."""
    B, S, D = x_bsd.shape
    num_layers = len(params["lstm"])
    H = params["lstm"][0]["w_hh"].shape[1]
    O = params["linear"]["w"].shape[0]

    # Pack inputs: x, per-layer (W_ih^T, W_hh^T, b_ih+b_hh), then head (W^T, b).
    inputs = [x_bsd.astype(jnp.float32)]
    in_specs = [pl.BlockSpec((B, S, D), lambda i: (0, 0, 0))]
    for lp in params["lstm"]:
        d_in = lp["w_ih"].shape[1]
        inputs.append(jnp.transpose(lp["w_ih"]).astype(jnp.float32))      # (d_in, 4H)
        in_specs.append(pl.BlockSpec((d_in, 4 * H), lambda i: (0, 0)))
        inputs.append(jnp.transpose(lp["w_hh"]).astype(jnp.float32))      # (H, 4H)
        in_specs.append(pl.BlockSpec((H, 4 * H), lambda i: (0, 0)))
        inputs.append((lp["b_ih"] + lp["b_hh"]).reshape(1, 4 * H).astype(jnp.float32))
        in_specs.append(pl.BlockSpec((1, 4 * H), lambda i: (0, 0)))
    inputs.append(jnp.transpose(params["linear"]["w"]).astype(jnp.float32))  # (H, O)
    in_specs.append(pl.BlockSpec((H, O), lambda i: (0, 0)))
    inputs.append(params["linear"]["b"].reshape(1, O).astype(jnp.float32))   # (1, O)
    in_specs.append(pl.BlockSpec((1, O), lambda i: (0, 0)))

    kernel = _make_fused_lstm_kernel(num_layers, S, B, D, H, O)

    return pl.pallas_call(
        kernel,
        out_shape=jax.ShapeDtypeStruct((B, S, O), jnp.float32),
        grid_spec=pltpu.PrefetchScalarGridSpec(
            num_scalar_prefetch=0,
            grid=(1,),  # everything VMEM-resident; time loop is inside the kernel
            in_specs=in_specs,
            out_specs=pl.BlockSpec((B, S, O), lambda i: (0, 0, 0)),
            scratch_shapes=[
                pltpu.VMEM((B, S, 4 * H), jnp.float32),  # gx: hoisted projections
                pltpu.VMEM((B, S, H), jnp.float32),      # inter-layer activations
                pltpu.VMEM((B, H), jnp.float32),         # h state
                pltpu.VMEM((B, H), jnp.float32),         # c state
            ],
        ),
        compiler_params=pltpu.CompilerParams(
            dimension_semantics=("arbitrary",),
        ),
    )(*inputs)


if __name__ == "__main__":
    # Small config consistent with the module's __init__:
    config = dict(input_dim=16, hidden_dim=32, output_dim=8,
                  batch_size=2, layers=2)
    B, S = config["batch_size"], 8

    key = jax.random.PRNGKey(0)
    key, kx = jax.random.split(key)
    x = jax.random.normal(kx, (B, S, config["input_dim"]), dtype=jnp.float32)

    params = init_params(key, config["input_dim"], config["hidden_dim"],
                         config["output_dim"], config["layers"])

    out = baseline_lstm_forward(params, x)
    out = jax.block_until_ready(out)
    assert out.shape == (B, S, config["output_dim"]), out.shape
    assert jnp.all(jnp.isfinite(out))
    print("KERNEL_OK")
</pallas_src>

<mosaic_0001>
module attributes {stable_mosaic.version = 11 : i64} {
  func.func @kernel(%arg0: i32, %arg1: memref<2x8x16xf32, #tpu.memory_space<vmem>>, %arg2: memref<16x128xf32, #tpu.memory_space<vmem>>, %arg3: memref<32x128xf32, #tpu.memory_space<vmem>>, %arg4: memref<1x128xf32, #tpu.memory_space<vmem>>, %arg5: memref<32x128xf32, #tpu.memory_space<vmem>>, %arg6: memref<32x128xf32, #tpu.memory_space<vmem>>, %arg7: memref<1x128xf32, #tpu.memory_space<vmem>>, %arg8: memref<32x8xf32, #tpu.memory_space<vmem>>, %arg9: memref<1x8xf32, #tpu.memory_space<vmem>>, %arg10: memref<2x8x8xf32, #tpu.memory_space<vmem>>, %arg11: memref<2x8x128xf32, #tpu.memory_space<vmem>>, %arg12: memref<2x8x32xf32, #tpu.memory_space<vmem>>, %arg13: memref<2x32xf32, #tpu.memory_space<vmem>>, %arg14: memref<2x32xf32, #tpu.memory_space<vmem>>) attributes {dimension_semantics = [#tpu.dimension_semantics<arbitrary>], iteration_bounds = array<i64: 1>, scalar_prefetch = 0 : i64, scratch_operands = 4 : i64, tpu.core_type = #tpu.core_type<tc>, window_params = [{pipeline_mode = #tpu.pipeline_mode<synchronous>, transform_indices = @transform_0, window_bounds = array<i64: 2, 8, 16>}, {pipeline_mode = #tpu.pipeline_mode<synchronous>, transform_indices = @transform_1, window_bounds = array<i64: 16, 128>}, {pipeline_mode = #tpu.pipeline_mode<synchronous>, transform_indices = @transform_2, window_bounds = array<i64: 32, 128>}, {pipeline_mode = #tpu.pipeline_mode<synchronous>, transform_indices = @transform_3, window_bounds = array<i64: 1, 128>}, {pipeline_mode = #tpu.pipeline_mode<synchronous>, transform_indices = @transform_4, window_bounds = array<i64: 32, 128>}, {pipeline_mode = #tpu.pipeline_mode<synchronous>, transform_indices = @transform_5, window_bounds = array<i64: 32, 128>}, {pipeline_mode = #tpu.pipeline_mode<synchronous>, transform_indices = @transform_6, window_bounds = array<i64: 1, 128>}, {pipeline_mode = #tpu.pipeline_mode<synchronous>, transform_indices = @transform_7, window_bounds = array<i64: 32, 8>}, {pipeline_mode = #tpu.pipeline_mode<synchronous>, transform_indices = @transform_8, window_bounds = array<i64: 1, 8>}, {pipeline_mode = #tpu.pipeline_mode<synchronous>, transform_indices = @transform_9, window_bounds = array<i64: 2, 8, 8>}]} {
    %c0 = arith.constant 0 : index
    %c0_0 = arith.constant 0 : index
    %c0_1 = arith.constant 0 : index
    %0 = vector.load %arg1[%c0, %c0_0, %c0_1] : memref<2x8x16xf32, #tpu.memory_space<vmem>>, vector<2x8x16xf32>
    %1 = vector.shape_cast %0 : vector<2x8x16xf32> to vector<16x16xf32>
    %c0_2 = arith.constant 0 : index
    %c0_3 = arith.constant 0 : index
    %2 = vector.load %arg2[%c0_2, %c0_3] : memref<16x128xf32, #tpu.memory_space<vmem>>, vector<16x128xf32>
    %cst = arith.constant dense<0.000000e+00> : vector<16x128xf32>
    %3 = tpu.matmul %1, %2, %cst {dimension_numbers = #tpu.dot_dimension_numbers<[1], [0], [0], [1], [0, 0, 1, 1], [], []>} : vector<16x16xf32>, vector<16x128xf32>, vector<16x128xf32> -> vector<16x128xf32>
    %c0_4 = arith.constant 0 : index
    %c0_5 = arith.constant 0 : index
    %4 = vector.load %arg4[%c0_4, %c0_5] : memref<1x128xf32, #tpu.memory_space<vmem>>, vector<1x128xf32>
    %5 = vector.broadcast %4 : vector<1x128xf32> to vector<16x128xf32>
    %6 = arith.addf %3, %5 : vector<16x128xf32>
    %7 = vector.shape_cast %6 : vector<16x128xf32> to vector<2x8x128xf32>
    %c0_6 = arith.constant 0 : index
    %c0_7 = arith.constant 0 : index
    %c0_8 = arith.constant 0 : index
    %8 = vector.load %arg11[%c0_6, %c0_7, %c0_8] : memref<2x8x128xf32, #tpu.memory_space<vmem>>, vector<2x8x128xf32>
    tpu.vector_store %arg11[%c0_6, %c0_7, %c0_8], %7 {strides = array<i32>} : memref<2x8x128xf32, #tpu.memory_space<vmem>>, vector<2x8x128xf32>,
    %cst_9 = arith.constant 0.000000e+00 : f32
    %9 = vector.broadcast %cst_9 : f32 to vector<2x32xf32>
    %c0_10 = arith.constant 0 : index
    %c0_11 = arith.constant 0 : index
    %10 = vector.load %arg13[%c0_10, %c0_11] : memref<2x32xf32, #tpu.memory_space<vmem>>, vector<2x32xf32>
    tpu.vector_store %arg13[%c0_10, %c0_11], %9 {strides = array<i32>} : memref<2x32xf32, #tpu.memory_space<vmem>>, vector<2x32xf32>,
    %cst_12 = arith.constant 0.000000e+00 : f32
    %11 = vector.broadcast %cst_12 : f32 to vector<2x32xf32>
    %c0_13 = arith.constant 0 : index
    %c0_14 = arith.constant 0 : index
    %12 = vector.load %arg14[%c0_13, %c0_14] : memref<2x32xf32, #tpu.memory_space<vmem>>, vector<2x32xf32>
    tpu.vector_store %arg14[%c0_13, %c0_14], %11 {strides = array<i32>} : memref<2x32xf32, #tpu.memory_space<vmem>>, vector<2x32xf32>,
    %c0_15 = arith.constant 0 : index
    %c0_16 = arith.constant 0 : index
    %13 = vector.load %arg3[%c0_15, %c0_16] : memref<32x128xf32, #tpu.memory_space<vmem>>, vector<32x128xf32>
    %c0_i32 = arith.constant 0 : i32
    %c0_17 = arith.constant 0 : index
    %14 = arith.index_cast %c0_i32 : i32 to index
    %c0_18 = arith.constant 0 : index
    %15 = vector.load %arg11[%c0_17, %14, %c0_18] : memref<2x8x128xf32, #tpu.memory_space<vmem>>, vector<2x1x128xf32>
    %16 = vector.shape_cast %15 : vector<2x1x128xf32> to vector<2x128xf32>
    %c0_19 = arith.constant 0 : index
    %c0_20 = arith.constant 0 : index
    %17 = vector.load %arg13[%c0_19, %c0_20] : memref<2x32xf32, #tpu.memory_space<vmem>>, vector<2x32xf32>
    %cst_21 = arith.constant dense<0.000000e+00> : vector<2x128xf32>
    %18 = tpu.matmul %17, %13, %cst_21 {dimension_numbers = #tpu.dot_dimension_numbers<[1], [0], [0], [1], [0, 0, 1, 1], [], []>} : vector<2x32xf32>, vector<32x128xf32>, vector<2x128xf32> -> vector<2x128xf32>
    %19 = arith.addf %16, %18 : vector<2x128xf32>
    %20 = vector.extract_strided_slice %19 {offsets = [0, 0], sizes = [2, 32], strides = [1, 1]} : vector<2x128xf32> to vector<2x32xf32>
    %21 = arith.negf %20 : vector<2x32xf32>
    %22 = math.exp %21 : vector<2x32xf32>
    %cst_22 = arith.constant 1.000000e+00 : f32
    %23 = vector.broadcast %cst_22 : f32 to vector<2x32xf32>
    %24 = arith.addf %23, %22 : vector<2x32xf32>
    %25 = arith.divf %23, %24 : vector<2x32xf32>
    %26 = vector.extract_strided_slice %19 {offsets = [0, 32], sizes = [2, 32], strides = [1, 1]} : vector<2x128xf32> to vector<2x32xf32>
    %27 = arith.negf %26 : vector<2x32xf32>
    %28 = math.exp %27 : vector<2x32xf32>
    %cst_23 = arith.constant 1.000000e+00 : f32
    %29 = vector.broadcast %cst_23 : f32 to vector<2x32xf32>
    %30 = arith.addf %29, %28 : vector<2x32xf32>
    %31 = arith.divf %29, %30 : vector<2x32xf32>
    %32 = vector.extract_strided_slice %19 {offsets = [0, 64], sizes = [2, 32], strides = [1, 1]} : vector<2x128xf32> to vector<2x32xf32>
    %33 = math.tanh %32 : vector<2x32xf32>
    %34 = vector.extract_strided_slice %19 {offsets = [0, 96], sizes = [2, 32], strides = [1, 1]} : vector<2x128xf32> to vector<2x32xf32>
    %35 = arith.negf %34 : vector<2x32xf32>
    %36 = math.exp %35 : vector<2x32xf32>
    %cst_24 = arith.constant 1.000000e+00 : f32
    %37 = vector.broadcast %cst_24 : f32 to vector<2x32xf32>
    %38 = arith.addf %37, %36 : vector<2x32xf32>
    %39 = arith.divf %37, %38 : vector<2x32xf32>
    %c0_25 = arith.constant 0 : index
    %c0_26 = arith.constant 0 : index
    %40 = vector.load %arg14[%c0_25, %c0_26] : memref<2x32xf32, #tpu.memory_space<vmem>>, vector<2x32xf32>
    %41 = arith.mulf %31, %40 : vector<2x32xf32>
    %42 = arith.mulf %25, %33 : vector<2x32xf32>
    %43 = arith.addf %41, %42 : vector<2x32xf32>
    %44 = math.tanh %43 : vector<2x32xf32>
    %45 = arith.mulf %39, %44 : vector<2x32xf32>
    %c0_27 = arith.constant 0 : index
    %c0_28 = arith.constant 0 : index
    %46 = vector.load %arg14[%c0_27, %c0_28] : memref<2x32xf32, #tpu.memory_space<vmem>>, vector<2x32xf32>
    tpu.vector_store %arg14[%c0_27, %c0_28], %43 {strides = array<i32>} : memref<2x32xf32, #tpu.memory_space<vmem>>, vector<2x32xf32>,
    %c0_29 = arith.constant 0 : index
    %c0_30 = arith.constant 0 : index
    %47 = vector.load %arg13[%c0_29, %c0_30] : memref<2x32xf32, #tpu.memory_space<vmem>>, vector<2x32xf32>
    tpu.vector_store %arg13[%c0_29, %c0_30], %45 {strides = array<i32>} : memref<2x32xf32, #tpu.memory_space<vmem>>, vector<2x32xf32>,
    %48 = vector.shape_cast %45 : vector<2x32xf32> to vector<2x1x32xf32>
    %c0_31 = arith.constant 0 : index
    %49 = arith.index_cast %c0_i32 : i32 to index
    %c0_32 = arith.constant 0 : index
    %50 = vector.load %arg12[%c0_31, %49, %c0_32] : memref<2x8x32xf32, #tpu.memory_space<vmem>>, vector<2x1x32xf32>
    tpu.vector_store %arg12[%c0_31, %49, %c0_32], %48 {strides = array<i32>} : memref<2x8x32xf32, #tpu.memory_space<vmem>>, vector<2x1x32xf32>,
    %c1_i32 = arith.constant 1 : i32
    %c0_33 = arith.constant 0 : index
    %51 = arith.index_cast %c1_i32 : i32 to index
    %c0_34 = arith.constant 0 : index
    %52 = vector.load %arg11[%c0_33, %51, %c0_34] : memref<2x8x128xf32, #tpu.memory_space<vmem>>, vector<2x1x128xf32>
    %53 = vector.shape_cast %52 : vector<2x1x128xf32> to vector<2x128xf32>
    %c0_35 = arith.constant 0 : index
    %c0_36 = arith.constant 0 : index
    %54 = vector.load %arg13[%c0_35, %c0_36] : memref<2x32xf32, #tpu.memory_space<vmem>>, vector<2x32xf32>
    %cst_37 = arith.constant dense<0.000000e+00> : vector<2x128xf32>
    %55 = tpu.matmul %54, %13, %cst_37 {dimension_numbers = #tpu.dot_dimension_numbers<[1], [0], [0], [1], [0, 0, 1, 1], [], []>} : vector<2x32xf32>, vector<32x128xf32>, vector<2x128xf32> -> vector<2x128xf32>
    %56 = arith.addf %53, %55 : vector<2x128xf32>
    %57 = vector.extract_strided_slice %56 {offsets = [0, 0], sizes = [2, 32], strides = [1, 1]} : vector<2x128xf32> to vector<2x32xf32>
    %58 = arith.negf %57 : vector<2x32xf32>
    %59 = math.exp %58 : vector<2x32xf32>
    %cst_38 = arith.constant 1.000000e+00 : f32
    %60 = vector.broadcast %cst_38 : f32 to vector<2x32xf32>
    %61 = arith.addf %60, %59 : vector<2x32xf32>
    %62 = arith.divf %60, %61 : vector<2x32xf32>
    %63 = vector.extract_strided_slice %56 {offsets = [0, 32], sizes = [2, 32], strides = [1, 1]} : vector<2x128xf32> to vector<2x32xf32>
    %64 = arith.negf %63 : vector<2x32xf32>
    %65 = math.exp %64 : vector<2x32xf32>
    %cst_39 = arith.constant 1.000000e+00 : f32
    %66 = vector.broadcast %cst_39 : f32 to vector<2x32xf32>
    %67 = arith.addf %66, %65 : vector<2x32xf32>
    %68 = arith.divf %66, %67 : vector<2x32xf32>
    %69 = vector.extract_strided_slice %56 {offsets = [0, 64], sizes = [2, 32], strides = [1, 1]} : vector<2x128xf32> to vector<2x32xf32>
    %70 = math.tanh %69 : vector<2x32xf32>
    %71 = vector.extract_strided_slice %56 {offsets = [0, 96], sizes = [2, 32], strides = [1, 1]} : vector<2x128xf32> to vector<2x32xf32>
    %72 = arith.negf %71 : vector<2x32xf32>
    %73 = math.exp %72 : vector<2x32xf32>
    %cst_40 = arith.constant 1.000000e+00 : f32
    %74 = vector.broadcast %cst_40 : f32 to vector<2x32xf32>
    %75 = arith.addf %74, %73 : vector<2x32xf32>
    %76 = arith.divf %74, %75 : vector<2x32xf32>
    %c0_41 = arith.constant 0 : index
    %c0_42 = arith.constant 0 : index
    %77 = vector.load %arg14[%c0_41, %c0_42] : memref<2x32xf32, #tpu.memory_space<vmem>>, vector<2x32xf32>
    %78 = arith.mulf %68, %77 : vector<2x32xf32>
    %79 = arith.mulf %62, %70 : vector<2x32xf32>
    %80 = arith.addf %78, %79 : vector<2x32xf32>
    %81 = math.tanh %80 : vector<2x32xf32>
    %82 = arith.mulf %76, %81 : vector<2x32xf32>
    %c0_43 = arith.constant 0 : index
    %c0_44 = arith.constant 0 : index
    %83 = vector.load %arg14[%c0_43, %c0_44] : memref<2x32xf32, #tpu.memory_space<vmem>>, vector<2x32xf32>
    tpu.vector_store %arg14[%c0_43, %c0_44], %80 {strides = array<i32>} : memref<2x32xf32, #tpu.memory_space<vmem>>, vector<2x32xf32>,
    %c0_45 = arith.constant 0 : index
    %c0_46 = arith.constant 0 : index
    %84 = vector.load %arg13[%c0_45, %c0_46] : memref<2x32xf32, #tpu.memory_space<vmem>>, vector<2x32xf32>
    tpu.vector_store %arg13[%c0_45, %c0_46], %82 {strides = array<i32>} : memref<2x32xf32, #tpu.memory_space<vmem>>, vector<2x32xf32>,
    %85 = vector.shape_cast %82 : vector<2x32xf32> to vector<2x1x32xf32>
    %c0_47 = arith.constant 0 : index
    %86 = arith.index_cast %c1_i32 : i32 to index
    %c0_48 = arith.constant 0 : index
    %87 = vector.load %arg12[%c0_47, %86, %c0_48] : memref<2x8x32xf32, #tpu.memory_space<vmem>>, vector<2x1x32xf32>
    tpu.vector_store %arg12[%c0_47, %86, %c0_48], %85 {strides = array<i32>} : memref<2x8x32xf32, #tpu.memory_space<vmem>>, vector<2x1x32xf32>,
    %c2_i32 = arith.constant 2 : i32
    %c0_49 = arith.constant 0 : index
    %88 = arith.index_cast %c2_i32 : i32 to index
    %c0_50 = arith.constant 0 : index
    %89 = vector.load %arg11[%c0_49, %88, %c0_50] : memref<2x8x128xf32, #tpu.memory_space<vmem>>, vector<2x1x128xf32>
    %90 = vector.shape_cast %89 : vector<2x1x128xf32> to vector<2x128xf32>
    %c0_51 = arith.constant 0 : index
    %c0_52 = arith.constant 0 : index
    %91 = vector.load %arg13[%c0_51, %c0_52] : memref<2x32xf32, #tpu.memory_space<vmem>>, vector<2x32xf32>
    %cst_53 = arith.constant dense<0.000000e+00> : vector<2x128xf32>
    %92 = tpu.matmul %91, %13, %cst_53 {dimension_numbers = #tpu.dot_dimension_numbers<[1], [0], [0], [1], [0, 0, 1, 1], [], []>} : vector<2x32xf32>, vector<32x128xf32>, vector<2x128xf32> -> vector<2x128xf32>
    %93 = arith.addf %90, %92 : vector<2x128xf32>
    %94 = vector.extract_strided_slice %93 {offsets = [0, 0], sizes = [2, 32], strides = [1, 1]} : vector<2x128xf32> to vector<2x32xf32>
    %95 = arith.negf %94 : vector<2x32xf32>
    %96 = math.exp %95 : vector<2x32xf32>
    %cst_54 = arith.constant 1.000000e+00 : f32
    %97 = vector.broadcast %cst_54 : f32 to vector<2x32xf32>
    %98 = arith.addf %97, %96 : vector<2x32xf32>
    %99 = arith.divf %97, %98 : vector<2x32xf32>
    %100 = vector.extract_strided_slice %93 {offsets = [0, 32], sizes = [2, 32], strides = [1, 1]} : vector<2x128xf32> to vector<2x32xf32>
    %101 = arith.negf %100 : vector<2x32xf32>
    %102 = math.exp %101 : vector<2x32xf32>
    %cst_55 = arith.constant 1.000000e+00 : f32
    %103 = vector.broadcast %cst_55 : f32 to vector<2x32xf32>
    %104 = arith.addf %103, %102 : vector<2x32xf32>
    %105 = arith.divf %103, %104 : vector<2x32xf32>
    %106 = vector.extract_strided_slice %93 {offsets = [0, 64], sizes = [2, 32], strides = [1, 1]} : vector<2x128xf32> to vector<2x32xf32>
    %107 = math.tanh %106 : vector<2x32xf32>
    %108 = vector.extract_strided_slice %93 {offsets = [0, 96], sizes = [2, 32], strides = [1, 1]} : vector<2x128xf32> to vector<2x32xf32>
    %109 = arith.negf %108 : vector<2x32xf32>
    %110 = math.exp %109 : vector<2x32xf32>
    %cst_56 = arith.constant 1.000000e+00 : f32
    %111 = vector.broadcast %cst_56 : f32 to vector<2x32xf32>
    %112 = arith.addf %111, %110 : vector<2x32xf32>
    %113 = arith.divf %111, %112 : vector<2x32xf32>
    %c0_57 = arith.constant 0 : index
    %c0_58 = arith.constant 0 : index
    %114 = vector.load %arg14[%c0_57, %c0_58] : memref<2x32xf32, #tpu.memory_space<vmem>>, vector<2x32xf32>
    %115 = arith.mulf %105, %114 : vector<2x32xf32>
    %116 = arith.mulf %99, %107 : vector<2x32xf32>
    %117 = arith.addf %115, %116 : vector<2x32xf32>
    %118 = math.tanh %117 : vector<2x32xf32>
    %119 = arith.mulf %113, %118 : vector<2x32xf32>
    %c0_59 = arith.constant 0 : index
    %c0_60 = arith.constant 0 : index
    %120 = vector.load %arg14[%c0_59, %c0_60] : memref<2x32xf32, #tpu.memory_space<vmem>>, vector<2x32xf32>
    tpu.vector_store %arg14[%c0_59, %c0_60], %117 {strides = array<i32>} : memref<2x32xf32, #tpu.memory_space<vmem>>, vector<2x32xf32>,
    %c0_61 = arith.constant 0 : index
    %c0_62 = arith.constant 0 : index
    %121 = vector.load %arg13[%c0_61, %c0_62] : memref<2x32xf32, #tpu.memory_space<vmem>>, vector<2x32xf32>
    tpu.vector_store %arg13[%c0_61, %c0_62], %119 {strides = array<i32>} : memref<2x32xf32, #tpu.memory_space<vmem>>, vector<2x32xf32>,
    %122 = vector.shape_cast %119 : vector<2x32xf32> to vector<2x1x32xf32>
    %c0_63 = arith.constant 0 : index
    %123 = arith.index_cast %c2_i32 : i32 to index
    %c0_64 = arith.constant 0 : index
    %124 = vector.load %arg12[%c0_63, %123, %c0_64] : memref<2x8x32xf32, #tpu.memory_space<vmem>>, vector<2x1x32xf32>
    tpu.vector_store %arg12[%c0_63, %123, %c0_64], %122 {strides = array<i32>} : memref<2x8x32xf32, #tpu.memory_space<vmem>>, vector<2x1x32xf32>,
    %c3_i32 = arith.constant 3 : i32
    %c0_65 = arith.constant 0 : index
    %125 = arith.index_cast %c3_i32 : i32 to index
    %c0_66 = arith.constant 0 : index
    %126 = vector.load %arg11[%c0_65, %125, %c0_66] : memref<2x8x128xf32, #tpu.memory_space<vmem>>, vector<2x1x128xf32>
    %127 = vector.shape_cast %126 : vector<2x1x128xf32> to vector<2x128xf32>
    %c0_67 = arith.constant 0 : index
    %c0_68 = arith.constant 0 : index
    %128 = vector.load %arg13[%c0_67, %c0_68] : memref<2x32xf32, #tpu.memory_space<vmem>>, vector<2x32xf32>
    %cst_69 = arith.constant dense<0.000000e+00> : vector<2x128xf32>
    %129 = tpu.matmul %128, %13, %cst_69 {dimension_numbers = #tpu.dot_dimension_numbers<[1], [0], [0], [1], [0, 0, 1, 1], [], []>} : vector<2x32xf32>, vector<32x128xf32>, vector<2x128xf32> -> vector<2x128xf32>
    %130 = arith.addf %127, %129 : vector<2x128xf32>
    %131 = vector.extract_strided_slice %130 {offsets = [0, 0], sizes = [2, 32], strides = [1, 1]} : vector<2x128xf32> to vector<2x32xf32>
    %132 = arith.negf %131 : vector<2x32xf32>
    %133 = math.exp %132 : vector<2x32xf32>
    %cst_70 = arith.constant 1.000000e+00 : f32
    %134 = vector.broadcast %cst_70 : f32 to vector<2x32xf32>
    %135 = arith.addf %134, %133 : vector<2x32xf32>
    %136 = arith.divf %134, %135 : vector<2x32xf32>
    %137 = vector.extract_strided_slice %130 {offsets = [0, 32], sizes = [2, 32], strides = [1, 1]} : vector<2x128xf32> to vector<2x32xf32>
    %138 = arith.negf %137 : vector<2x32xf32>
    %139 = math.exp %138 : vector<2x32xf32>
    %cst_71 = arith.constant 1.000000e+00 : f32
    %140 = vector.broadcast %cst_71 : f32 to vector<2x32xf32>
    %141 = arith.addf %140, %139 : vector<2x32xf32>
    %142 = arith.divf %140, %141 : vector<2x32xf32>
    %143 = vector.extract_strided_slice %130 {offsets = [0, 64], sizes = [2, 32], strides = [1, 1]} : vector<2x128xf32> to vector<2x32xf32>
    %144 = math.tanh %143 : vector<2x32xf32>
    %145 = vector.extract_strided_slice %130 {offsets = [0, 96], sizes = [2, 32], strides = [1, 1]} : vector<2x128xf32> to vector<2x32xf32>
    %146 = arith.negf %145 : vector<2x32xf32>
    %147 = math.exp %146 : vector<2x32xf32>
    %cst_72 = arith.constant 1.000000e+00 : f32
    %148 = vector.broadcast %cst_72 : f32 to vector<2x32xf32>
    %149 = arith.addf %148, %147 : vector<2x32xf32>
    %150 = arith.divf %148, %149 : vector<2x32xf32>
    %c0_73 = arith.constant 0 : index
    %c0_74 = arith.constant 0 : index
    %151 = vector.load %arg14[%c0_73, %c0_74] : memref<2x32xf32, #tpu.memory_space<vmem>>, vector<2x32xf32>
    %152 = arith.mulf %142, %151 : vector<2x32xf32>
    %153 = arith.mulf %136, %144 : vector<2x32xf32>
    %154 = arith.addf %152, %153 : vector<2x32xf32>
    %155 = math.tanh %154 : vector<2x32xf32>
    %156 = arith.mulf %150, %155 : vector<2x32xf32>
    %c0_75 = arith.constant 0 : index
    %c0_76 = arith.constant 0 : index
    %157 = vector.load %arg14[%c0_75, %c0_76] : memref<2x32xf32, #tpu.memory_space<vmem>>, vector<2x32xf32>
    tpu.vector_store %arg14[%c0_75, %c0_76], %154 {strides = array<i32>} : memref<2x32xf32, #tpu.memory_space<vmem>>, vector<2x32xf32>,
    %c0_77 = arith.constant 0 : index
    %c0_78 = arith.constant 0 : index
    %158 = vector.load %arg13[%c0_77, %c0_78] : memref<2x32xf32, #tpu.memory_space<vmem>>, vector<2x32xf32>
    tpu.vector_store %arg13[%c0_77, %c0_78], %156 {strides = array<i32>} : memref<2x32xf32, #tpu.memory_space<vmem>>, vector<2x32xf32>,
    %159 = vector.shape_cast %156 : vector<2x32xf32> to vector<2x1x32xf32>
    %c0_79 = arith.constant 0 : index
    %160 = arith.index_cast %c3_i32 : i32 to index
    %c0_80 = arith.constant 0 : index
    %161 = vector.load %arg12[%c0_79, %160, %c0_80] : memref<2x8x32xf32, #tpu.memory_space<vmem>>, vector<2x1x32xf32>
    tpu.vector_store %arg12[%c0_79, %160, %c0_80], %159 {strides = array<i32>} : memref<2x8x32xf32, #tpu.memory_space<vmem>>, vector<2x1x32xf32>,
    %c4_i32 = arith.constant 4 : i32
    %c0_81 = arith.constant 0 : index
    %162 = arith.index_cast %c4_i32 : i32 to index
    %c0_82 = arith.constant 0 : index
    %163 = vector.load %arg11[%c0_81, %162, %c0_82] : memref<2x8x128xf32, #tpu.memory_space<vmem>>, vector<2x1x128xf32>
    %164 = vector.shape_cast %163 : vector<2x1x128xf32> to vector<2x128xf32>
    %c0_83 = arith.constant 0 : index
    %c0_84 = arith.constant 0 : index
    %165 = vector.load %arg13[%c0_83, %c0_84] : memref<2x32xf32, #tpu.memory_space<vmem>>, vector<2x32xf32>
    %cst_85 = arith.constant dense<0.000000e+00> : vector<2x128xf32>
    %166 = tpu.matmul %165, %13, %cst_85 {dimension_numbers = #tpu.dot_dimension_numbers<[1], [0], [0], [1], [0, 0, 1, 1], [], []>} : vector<2x32xf32>, vector<32x128xf32>, vector<2x128xf32> -> vector<2x128xf32>
    %167 = arith.addf %164, %166 : vector<2x128xf32>
    %168 = vector.extract_strided_slice %167 {offsets = [0, 0], sizes = [2, 32], strides = [1, 1]} : vector<2x128xf32> to vector<2x32xf32>
    %169 = arith.negf %168 : vector<2x32xf32>
    %170 = math.exp %169 : vector<2x32xf32>
    %cst_86 = arith.constant 1.000000e+00 : f32
    %171 = vector.broadcast %cst_86 : f32 to vector<2x32xf32>
    %172 = arith.addf %171, %170 : vector<2x32xf32>
    %173 = arith.divf %171, %172 : vector<2x32xf32>
    %174 = vector.extract_strided_slice %167 {offsets = [0, 32], sizes = [2, 32], strides = [1, 1]} : vector<2x128xf32> to vector<2x32xf32>
    %175 = arith.negf %174 : vector<2x32xf32>
    %176 = math.exp %175 : vector<2x32xf32>
    %cst_87 = arith.constant 1.000000e+00 : f32
    %177 = vector.broadcast %cst_87 : f32 to vector<2x32xf32>
    %178 = arith.addf %177, %176 : vector<2x32xf32>
    %179 = arith.divf %177, %178 : vector<2x32xf32>
    %180 = vector.extract_strided_slice %167 {offsets = [0, 64], sizes = [2, 32], strides = [1, 1]} : vector<2x128xf32> to vector<2x32xf32>
    %181 = math.tanh %180 : vector<2x32xf32>
    %182 = vector.extract_strided_slice %167 {offsets = [0, 96], sizes = [2, 32], strides = [1, 1]} : vector<2x128xf32> to vector<2x32xf32>
    %183 = arith.negf %182 : vector<2x32xf32>
    %184 = math.exp %183 : vector<2x32xf32>
    %cst_88 = arith.constant 1.000000e+00 : f32
    %185 = vector.broadcast %cst_88 : f32 to vector<2x32xf32>
    %186 = arith.addf %185, %184 : vector<2x32xf32>
    %187 = arith.divf %185, %186 : vector<2x32xf32>
    %c0_89 = arith.constant 0 : index
    %c0_90 = arith.constant 0 : index
    %188 = vector.load %arg14[%c0_89, %c0_90] : memref<2x32xf32, #tpu.memory_space<vmem>>, vector<2x32xf32>
    %189 = arith.mulf %179, %188 : vector<2x32xf32>
    %190 = arith.mulf %173, %181 : vector<2x32xf32>
    %191 = arith.addf %189, %190 : vector<2x32xf32>
    %192 = math.tanh %191 : vector<2x32xf32>
    %193 = arith.mulf %187, %192 : vector<2x32xf32>
    %c0_91 = arith.constant 0 : index
    %c0_92 = arith.constant 0 : index
    %194 = vector.load %arg14[%c0_91, %c0_92] : memref<2x32xf32, #tpu.memory_space<vmem>>, vector<2x32xf32>
    tpu.vector_store %arg14[%c0_91, %c0_92], %191 {strides = array<i32>} : memref<2x32xf32, #tpu.memory_space<vmem>>, vector<2x32xf32>,
    %c0_93 = arith.constant 0 : index
    %c0_94 = arith.constant 0 : index
    %195 = vector.load %arg13[%c0_93, %c0_94] : memref<2x32xf32, #tpu.memory_space<vmem>>, vector<2x32xf32>
    tpu.vector_store %arg13[%c0_93, %c0_94], %193 {strides = array<i32>} : memref<2x32xf32, #tpu.memory_space<vmem>>, vector<2x32xf32>,
    %196 = vector.shape_cast %193 : vector<2x32xf32> to vector<2x1x32xf32>
    %c0_95 = arith.constant 0 : index
    %197 = arith.index_cast %c4_i32 : i32 to index
    %c0_96 = arith.constant 0 : index
    %198 = vector.load %arg12[%c0_95, %197, %c0_96] : memref<2x8x32xf32, #tpu.memory_space<vmem>>, vector<2x1x32xf32>
    tpu.vector_store %arg12[%c0_95, %197, %c0_96], %196 {strides = array<i32>} : memref<2x8x32xf32, #tpu.memory_space<vmem>>, vector<2x1x32xf32>,
    %c5_i32 = arith.constant 5 : i32
    %c0_97 = arith.constant 0 : index
    %199 = arith.index_cast %c5_i32 : i32 to index
    %c0_98 = arith.constant 0 : index
    %200 = vector.load %arg11[%c0_97, %199, %c0_98] : memref<2x8x128xf32, #tpu.memory_space<vmem>>, vector<2x1x128xf32>
    %201 = vector.shape_cast %200 : vector<2x1x128xf32> to vector<2x128xf32>
    %c0_99 = arith.constant 0 : index
    %c0_100 = arith.constant 0 : index
    %202 = vector.load %arg13[%c0_99, %c0_100] : memref<2x32xf32, #tpu.memory_space<vmem>>, vector<2x32xf32>
    %cst_101 = arith.constant dense<0.000000e+00> : vector<2x128xf32>
    %203 = tpu.matmul %202, %13, %cst_101 {dimension_numbers = #tpu.dot_dimension_numbers<[1], [0], [0], [1], [0, 0, 1, 1], [], []>} : vector<2x32xf32>, vector<32x128xf32>, vector<2x128xf32> -> vector<2x128xf32>
    %204 = arith.addf %201, %203 : vector<2x128xf32>
    %205 = vector.extract_strided_slice %204 {offsets = [0, 0], sizes = [2, 32], strides = [1, 1]} : vector<2x128xf32> to vector<2x32xf32>
    %206 = arith.negf %205 : vector<2x32xf32>
    %207 = math.exp %206 : vector<2x32xf32>
    %cst_102 = arith.constant 1.000000e+00 : f32
    %208 = vector.broadcast %cst_102 : f32 to vector<2x32xf32>
    %209 = arith.addf %208, %207 : vector<2x32xf32>
    %210 = arith.divf %208, %209 : vector<2x32xf32>
    %211 = vector.extract_strided_slice %204 {offsets = [0, 32], sizes = [2, 32], strides = [1, 1]} : vector<2x128xf32> to vector<2x32xf32>
    %212 = arith.negf %211 : vector<2x32xf32>
    %213 = math.exp %212 : vector<2x32xf32>
    %cst_103 = arith.constant 1.000000e+00 : f32
    %214 = vector.broadcast %cst_103 : f32 to vector<2x32xf32>
    %215 = arith.addf %214, %213 : vector<2x32xf32>
    %216 = arith.divf %214, %215 : vector<2x32xf32>
    %217 = vector.extract_strided_slice %204 {offsets = [0, 64], sizes = [2, 32], strides = [1, 1]} : vector<2x128xf32> to vector<2x32xf32>
    %218 = math.tanh %217 : vector<2x32xf32>
    %219 = vector.extract_strided_slice %204 {offsets = [0, 96], sizes = [2, 32], strides = [1, 1]} : vector<2x128xf32> to vector<2x32xf32>
    %220 = arith.negf %219 : vector<2x32xf32>
    %221 = math.exp %220 : vector<2x32xf32>
    %cst_104 = arith.constant 1.000000e+00 : f32
    %222 = vector.broadcast %cst_104 : f32 to vector<2x32xf32>
    %223 = arith.addf %222, %221 : vector<2x32xf32>
    %224 = arith.divf %222, %223 : vector<2x32xf32>
    %c0_105 = arith.constant 0 : index
    %c0_106 = arith.constant 0 : index
    %225 = vector.load %arg14[%c0_105, %c0_106] : memref<2x32xf32, #tpu.memory_space<vmem>>, vector<2x32xf32>
    %226 = arith.mulf %216, %225 : vector<2x32xf32>
    %227 = arith.mulf %210, %218 : vector<2x32xf32>
    %228 = arith.addf %226, %227 : vector<2x32xf32>
    %229 = math.tanh %228 : vector<2x32xf32>
    %230 = arith.mulf %224, %229 : vector<2x32xf32>
    %c0_107 = arith.constant 0 : index
    %c0_108 = arith.constant 0 : index
    %231 = vector.load %arg14[%c0_107, %c0_108] : memref<2x32xf32, #tpu.memory_space<vmem>>, vector<2x32xf32>
    tpu.vector_store %arg14[%c0_107, %c0_108], %228 {strides = array<i32>} : memref<2x32xf32, #tpu.memory_space<vmem>>, vector<2x32xf32>,
    %c0_109 = arith.constant 0 : index
    %c0_110 = arith.constant 0 : index
    %232 = vector.load %arg13[%c0_109, %c0_110] : memref<2x32xf32, #tpu.memory_space<vmem>>, vector<2x32xf32>
    tpu.vector_store %arg13[%c0_109, %c0_110], %230 {strides = array<i32>} : memref<2x32xf32, #tpu.memory_space<vmem>>, vector<2x32xf32>,
    %233 = vector.shape_cast %230 : vector<2x32xf32> to vector<2x1x32xf32>
    %c0_111 = arith.constant 0 : index
    %234 = arith.index_cast %c5_i32 : i32 to index
    %c0_112 = arith.constant 0 : index
    %235 = vector.load %arg12[%c0_111, %234, %c0_112] : memref<2x8x32xf32, #tpu.memory_space<vmem>>, vector<2x1x32xf32>
    tpu.vector_store %arg12[%c0_111, %234, %c0_112], %233 {strides = array<i32>} : memref<2x8x32xf32, #tpu.memory_space<vmem>>, vector<2x1x32xf32>,
    %c6_i32 = arith.constant 6 : i32
    %c0_113 = arith.constant 0 : index
    %236 = arith.index_cast %c6_i32 : i32 to index
    %c0_114 = arith.constant 0 : index
    %237 = vector.load %arg11[%c0_113, %236, %c0_114] : memref<2x8x128xf32, #tpu.memory_space<vmem>>, vector<2x1x128xf32>
    %238 = vector.shape_cast %237 : vector<2x1x128xf32> to vector<2x128xf32>
    %c0_115 = arith.constant 0 : index
    %c0_116 = arith.constant 0 : index
    %239 = vector.load %arg13[%c0_115, %c0_116] : memref<2x32xf32, #tpu.memory_space<vmem>>, vector<2x32xf32>
    %cst_117 = arith.constant dense<0.000000e+00> : vector<2x128xf32>
    %240 = tpu.matmul %239, %13, %cst_117 {dimension_numbers = #tpu.dot_dimension_numbers<[1], [0], [0], [1], [0, 0, 1, 1], [], []>} : vector<2x32xf32>, vector<32x128xf32>, vector<2x128xf32> -> vector<2x128xf32>
    %241 = arith.addf %238, %240 : vector<2x128xf32>
    %242 = vector.extract_strided_slice %241 {offsets = [0, 0], sizes = [2, 32], strides = [1, 1]} : vector<2x128xf32> to vector<2x32xf32>
    %243 = arith.negf %242 : vector<2x32xf32>
    %244 = math.exp %243 : vector<2x32xf32>
    %cst_118 = arith.constant 1.000000e+00 : f32
    %245 = vector.broadcast %cst_118 : f32 to vector<2x32xf32>
    %246 = arith.addf %245, %244 : vector<2x32xf32>
    %247 = arith.divf %245, %246 : vector<2x32xf32>
    %248 = vector.extract_strided_slice %241 {offsets = [0, 32], sizes = [2, 32], strides = [1, 1]} : vector<2x128xf32> to vector<2x32xf32>
    %249 = arith.negf %248 : vector<2x32xf32>
    %250 = math.exp %249 : vector<2x32xf32>
    %cst_119 = arith.constant 1.000000e+00 : f32
    %251 = vector.broadcast %cst_119 : f32 to vector<2x32xf32>
    %252 = arith.addf %251, %250 : vector<2x32xf32>
    %253 = arith.divf %251, %252 : vector<2x32xf32>
    %254 = vector.extract_strided_slice %241 {offsets = [0, 64], sizes = [2, 32], strides = [1, 1]} : vector<2x128xf32> to vector<2x32xf32>
    %255 = math.tanh %254 : vector<2x32xf32>
    %256 = vector.extract_strided_slice %241 {offsets = [0, 96], sizes = [2, 32], strides = [1, 1]} : vector<2x128xf32> to vector<2x32xf32>
    %257 = arith.negf %256 : vector<2x32xf32>
    %258 = math.exp %257 : vector<2x32xf32>
    %cst_120 = arith.constant 1.000000e+00 : f32
    %259 = vector.broadcast %cst_120 : f32 to vector<2x32xf32>
    %260 = arith.addf %259, %258 : vector<2x32xf32>
    %261 = arith.divf %259, %260 : vector<2x32xf32>
    %c0_121 = arith.constant 0 : index
    %c0_122 = arith.constant 0 : index
    %262 = vector.load %arg14[%c0_121, %c0_122] : memref<2x32xf32, #tpu.memory_space<vmem>>, vector<2x32xf32>
    %263 = arith.mulf %253, %262 : vector<2x32xf32>
    %264 = arith.mulf %247, %255 : vector<2x32xf32>
    %265 = arith.addf %263, %264 : vector<2x32xf32>
    %266 = math.tanh %265 : vector<2x32xf32>
    %267 = arith.mulf %261, %266 : vector<2x32xf32>
    %c0_123 = arith.constant 0 : index
    %c0_124 = arith.constant 0 : index
    %268 = vector.load %arg14[%c0_123, %c0_124] : memref<2x32xf32, #tpu.memory_space<vmem>>, vector<2x32xf32>
    tpu.vector_store %arg14[%c0_123, %c0_124], %265 {strides = array<i32>} : memref<2x32xf32, #tpu.memory_space<vmem>>, vector<2x32xf32>,
    %c0_125 = arith.constant 0 : index
    %c0_126 = arith.constant 0 : index
    %269 = vector.load %arg13[%c0_125, %c0_126] : memref<2x32xf32, #tpu.memory_space<vmem>>, vector<2x32xf32>
    tpu.vector_store %arg13[%c0_125, %c0_126], %267 {strides = array<i32>} : memref<2x32xf32, #tpu.memory_space<vmem>>, vector<2x32xf32>,
    %270 = vector.shape_cast %267 : vector<2x32xf32> to vector<2x1x32xf32>
    %c0_127 = arith.constant 0 : index
    %271 = arith.index_cast %c6_i32 : i32 to index
    %c0_128 = arith.constant 0 : index
    %272 = vector.load %arg12[%c0_127, %271, %c0_128] : memref<2x8x32xf32, #tpu.memory_space<vmem>>, vector<2x1x32xf32>
    tpu.vector_store %arg12[%c0_127, %271, %c0_128], %270 {strides = array<i32>} : memref<2x8x32xf32, #tpu.memory_space<vmem>>, vector<2x1x32xf32>,
    %c7_i32 = arith.constant 7 : i32
    %c0_129 = arith.constant 0 : index
    %273 = arith.index_cast %c7_i32 : i32 to index
    %c0_130 = arith.constant 0 : index
    %274 = vector.load %arg11[%c0_129, %273, %c0_130] : memref<2x8x128xf32, #tpu.memory_space<vmem>>, vector<2x1x128xf32>
    %275 = vector.shape_cast %274 : vector<2x1x128xf32> to vector<2x128xf32>
    %c0_131 = arith.constant 0 : index
    %c0_132 = arith.constant 0 : index
    %276 = vector.load %arg13[%c0_131, %c0_132] : memref<2x32xf32, #tpu.memory_space<vmem>>, vector<2x32xf32>
    %cst_133 = arith.constant dense<0.000000e+00> : vector<2x128xf32>
    %277 = tpu.matmul %276, %13, %cst_133 {dimension_numbers = #tpu.dot_dimension_numbers<[1], [0], [0], [1], [0, 0, 1, 1], [], []>} : vector<2x32xf32>, vector<32x128xf32>, vector<2x128xf32> -> vector<2x128xf32>
    %278 = arith.addf %275, %277 : vector<2x128xf32>
    %279 = vector.extract_strided_slice %278 {offsets = [0, 0], sizes = [2, 32], strides = [1, 1]} : vector<2x128xf32> to vector<2x32xf32>
    %280 = arith.negf %279 : vector<2x32xf32>
    %281 = math.exp %280 : vector<2x32xf32>
    %cst_134 = arith.constant 1.000000e+00 : f32
    %282 = vector.broadcast %cst_134 : f32 to vector<2x32xf32>
    %283 = arith.addf %282, %281 : vector<2x32xf32>
    %284 = arith.divf %282, %283 : vector<2x32xf32>
    %285 = vector.extract_strided_slice %278 {offsets = [0, 32], sizes = [2, 32], strides = [1, 1]} : vector<2x128xf32> to vector<2x32xf32>
    %286 = arith.negf %285 : vector<2x32xf32>
    %287 = math.exp %286 : vector<2x32xf32>
    %cst_135 = arith.constant 1.000000e+00 : f32
    %288 = vector.broadcast %cst_135 : f32 to vector<2x32xf32>
    %289 = arith.addf %288, %287 : vector<2x32xf32>
    %290 = arith.divf %288, %289 : vector<2x32xf32>
    %291 = vector.extract_strided_slice %278 {offsets = [0, 64], sizes = [2, 32], strides = [1, 1]} : vector<2x128xf32> to vector<2x32xf32>
    %292 = math.tanh %291 : vector<2x32xf32>
    %293 = vector.extract_strided_slice %278 {offsets = [0, 96], sizes = [2, 32], strides = [1, 1]} : vector<2x128xf32> to vector<2x32xf32>
    %294 = arith.negf %293 : vector<2x32xf32>
    %295 = math.exp %294 : vector<2x32xf32>
    %cst_136 = arith.constant 1.000000e+00 : f32
    %296 = vector.broadcast %cst_136 : f32 to vector<2x32xf32>
    %297 = arith.addf %296, %295 : vector<2x32xf32>
    %298 = arith.divf %296, %297 : vector<2x32xf32>
    %c0_137 = arith.constant 0 : index
    %c0_138 = arith.constant 0 : index
    %299 = vector.load %arg14[%c0_137, %c0_138] : memref<2x32xf32, #tpu.memory_space<vmem>>, vector<2x32xf32>
    %300 = arith.mulf %290, %299 : vector<2x32xf32>
    %301 = arith.mulf %284, %292 : vector<2x32xf32>
    %302 = arith.addf %300, %301 : vector<2x32xf32>
    %303 = math.tanh %302 : vector<2x32xf32>
    %304 = arith.mulf %298, %303 : vector<2x32xf32>
    %c0_139 = arith.constant 0 : index
    %c0_140 = arith.constant 0 : index
    %305 = vector.load %arg14[%c0_139, %c0_140] : memref<2x32xf32, #tpu.memory_space<vmem>>, vector<2x32xf32>
    tpu.vector_store %arg14[%c0_139, %c0_140], %302 {strides = array<i32>} : memref<2x32xf32, #tpu.memory_space<vmem>>, vector<2x32xf32>,
    %c0_141 = arith.constant 0 : index
    %c0_142 = arith.constant 0 : index
    %306 = vector.load %arg13[%c0_141, %c0_142] : memref<2x32xf32, #tpu.memory_space<vmem>>, vector<2x32xf32>
    tpu.vector_store %arg13[%c0_141, %c0_142], %304 {strides = array<i32>} : memref<2x32xf32, #tpu.memory_space<vmem>>, vector<2x32xf32>,
    %307 = vector.shape_cast %304 : vector<2x32xf32> to vector<2x1x32xf32>
    %c0_143 = arith.constant 0 : index
    %308 = arith.index_cast %c7_i32 : i32 to index
    %c0_144 = arith.constant 0 : index
    %309 = vector.load %arg12[%c0_143, %308, %c0_144] : memref<2x8x32xf32, #tpu.memory_space<vmem>>, vector<2x1x32xf32>
    tpu.vector_store %arg12[%c0_143, %308, %c0_144], %307 {strides = array<i32>} : memref<2x8x32xf32, #tpu.memory_space<vmem>>, vector<2x1x32xf32>,
    %c8_i32 = arith.constant 8 : i32
    %c0_145 = arith.constant 0 : index
    %c0_146 = arith.constant 0 : index
    %c0_147 = arith.constant 0 : index
    %310 = vector.load %arg12[%c0_145, %c0_146, %c0_147] : memref<2x8x32xf32, #tpu.memory_space<vmem>>, vector<2x8x32xf32>
    %311 = vector.shape_cast %310 : vector<2x8x32xf32> to vector<16x32xf32>
    %c0_148 = arith.constant 0 : index
    %c0_149 = arith.constant 0 : index
    %312 = vector.load %arg5[%c0_148, %c0_149] : memref<32x128xf32, #tpu.memory_space<vmem>>, vector<32x128xf32>
    %cst_150 = arith.constant dense<0.000000e+00> : vector<16x128xf32>
    %313 = tpu.matmul %311, %312, %cst_150 {dimension_numbers = #tpu.dot_dimension_numbers<[1], [0], [0], [1], [0, 0, 1, 1], [], []>} : vector<16x32xf32>, vector<32x128xf32>, vector<16x128xf32> -> vector<16x128xf32>
    %c0_151 = arith.constant 0 : index
    %c0_152 = arith.constant 0 : index
    %314 = vector.load %arg7[%c0_151, %c0_152] : memref<1x128xf32, #tpu.memory_space<vmem>>, vector<1x128xf32>
    %315 = vector.broadcast %314 : vector<1x128xf32> to vector<16x128xf32>
    %316 = arith.addf %313, %315 : vector<16x128xf32>
    %317 = vector.shape_cast %316 : vector<16x128xf32> to vector<2x8x128xf32>
    %c0_153 = arith.constant 0 : index
    %c0_154 = arith.constant 0 : index
    %c0_155 = arith.constant 0 : index
    %318 = vector.load %arg11[%c0_153, %c0_154, %c0_155] : memref<2x8x128xf32, #tpu.memory_space<vmem>>, vector<2x8x128xf32>
    tpu.vector_store %arg11[%c0_153, %c0_154, %c0_155], %317 {strides = array<i32>} : memref<2x8x128xf32, #tpu.memory_space<vmem>>, vector<2x8x128xf32>,
    %cst_156 = arith.constant 0.000000e+00 : f32
    %319 = vector.broadcast %cst_156 : f32 to vector<2x32xf32>
    %c0_157 = arith.constant 0 : index
    %c0_158 = arith.constant 0 : index
    %320 = vector.load %arg13[%c0_157, %c0_158] : memref<2x32xf32, #tpu.memory_space<vmem>>, vector<2x32xf32>
    tpu.vector_store %arg13[%c0_157, %c0_158], %319 {strides = array<i32>} : memref<2x32xf32, #tpu.memory_space<vmem>>, vector<2x32xf32>,
    %cst_159 = arith.constant 0.000000e+00 : f32
    %321 = vector.broadcast %cst_159 : f32 to vector<2x32xf32>
    %c0_160 = arith.constant 0 : index
    %c0_161 = arith.constant 0 : index
    %322 = vector.load %arg14[%c0_160, %c0_161] : memref<2x32xf32, #tpu.memory_space<vmem>>, vector<2x32xf32>
    tpu.vector_store %arg14[%c0_160, %c0_161], %321 {strides = array<i32>} : memref<2x32xf32, #tpu.memory_space<vmem>>, vector<2x32xf32>,
    %c0_162 = arith.constant 0 : index
    %c0_163 = arith.constant 0 : index
    %323 = vector.load %arg6[%c0_162, %c0_163] : memref<32x128xf32, #tpu.memory_space<vmem>>, vector<32x128xf32>
    %c0_i32_164 = arith.constant 0 : i32
    %c0_165 = arith.constant 0 : index
    %324 = arith.index_cast %c0_i32_164 : i32 to index
    %c0_166 = arith.constant 0 : index
    %325 = vector.load %arg11[%c0_165, %324, %c0_166] : memref<2x8x128xf32, #tpu.memory_space<vmem>>, vector<2x1x128xf32>
    %326 = vector.shape_cast %325 : vector<2x1x128xf32> to vector<2x128xf32>
    %c0_167 = arith.constant 0 : index
    %c0_168 = arith.constant 0 : index
    %327 = vector.load %arg13[%c0_167, %c0_168] : memref<2x32xf32, #tpu.memory_space<vmem>>, vector<2x32xf32>
    %cst_169 = arith.constant dense<0.000000e+00> : vector<2x128xf32>
    %328 = tpu.matmul %327, %323, %cst_169 {dimension_numbers = #tpu.dot_dimension_numbers<[1], [0], [0], [1], [0, 0, 1, 1], [], []>} : vector<2x32xf32>, vector<32x128xf32>, vector<2x128xf32> -> vector<2x128xf32>
    %329 = arith.addf %326, %328 : vector<2x128xf32>
    %330 = vector.extract_strided_slice %329 {offsets = [0, 0], sizes = [2, 32], strides = [1, 1]} : vector<2x128xf32> to vector<2x32xf32>
    %331 = arith.negf %330 : vector<2x32xf32>
    %332 = math.exp %331 : vector<2x32xf32>
    %cst_170 = arith.constant 1.000000e+00 : f32
    %333 = vector.broadcast %cst_170 : f32 to vector<2x32xf32>
    %334 = arith.addf %333, %332 : vector<2x32xf32>
    %335 = arith.divf %333, %334 : vector<2x32xf32>
    %336 = vector.extract_strided_slice %329 {offsets = [0, 32], sizes = [2, 32], strides = [1, 1]} : vector<2x128xf32> to vector<2x32xf32>
    %337 = arith.negf %336 : vector<2x32xf32>
    %338 = math.exp %337 : vector<2x32xf32>
    %cst_171 = arith.constant 1.000000e+00 : f32
    %339 = vector.broadcast %cst_171 : f32 to vector<2x32xf32>
    %340 = arith.addf %339, %338 : vector<2x32xf32>
    %341 = arith.divf %339, %340 : vector<2x32xf32>
    %342 = vector.extract_strided_slice %329 {offsets = [0, 64], sizes = [2, 32], strides = [1, 1]} : vector<2x128xf32> to vector<2x32xf32>
    %343 = math.tanh %342 : vector<2x32xf32>
    %344 = vector.extract_strided_slice %329 {offsets = [0, 96], sizes = [2, 32], strides = [1, 1]} : vector<2x128xf32> to vector<2x32xf32>
    %345 = arith.negf %344 : vector<2x32xf32>
    %346 = math.exp %345 : vector<2x32xf32>
    %cst_172 = arith.constant 1.000000e+00 : f32
    %347 = vector.broadcast %cst_172 : f32 to vector<2x32xf32>
    %348 = arith.addf %347, %346 : vector<2x32xf32>
    %349 = arith.divf %347, %348 : vector<2x32xf32>
    %c0_173 = arith.constant 0 : index
    %c0_174 = arith.constant 0 : index
    %350 = vector.load %arg14[%c0_173, %c0_174] : memref<2x32xf32, #tpu.memory_space<vmem>>, vector<2x32xf32>
    %351 = arith.mulf %341, %350 : vector<2x32xf32>
    %352 = arith.mulf %335, %343 : vector<2x32xf32>
    %353 = arith.addf %351, %352 : vector<2x32xf32>
    %354 = math.tanh %353 : vector<2x32xf32>
    %355 = arith.mulf %349, %354 : vector<2x32xf32>
    %c0_175 = arith.constant 0 : index
    %c0_176 = arith.constant 0 : index
    %356 = vector.load %arg14[%c0_175, %c0_176] : memref<2x32xf32, #tpu.memory_space<vmem>>, vector<2x32xf32>
    tpu.vector_store %arg14[%c0_175, %c0_176], %353 {strides = array<i32>} : memref<2x32xf32, #tpu.memory_space<vmem>>, vector<2x32xf32>,
    %c0_177 = arith.constant 0 : index
    %c0_178 = arith.constant 0 : index
    %357 = vector.load %arg13[%c0_177, %c0_178] : memref<2x32xf32, #tpu.memory_space<vmem>>, vector<2x32xf32>
    tpu.vector_store %arg13[%c0_177, %c0_178], %355 {strides = array<i32>} : memref<2x32xf32, #tpu.memory_space<vmem>>, vector<2x32xf32>,
    %358 = vector.shape_cast %355 : vector<2x32xf32> to vector<2x1x32xf32>
    %c0_179 = arith.constant 0 : index
    %359 = arith.index_cast %c0_i32_164 : i32 to index
    %c0_180 = arith.constant 0 : index
    %360 = vector.load %arg12[%c0_179, %359, %c0_180] : memref<2x8x32xf32, #tpu.memory_space<vmem>>, vector<2x1x32xf32>
    tpu.vector_store %arg12[%c0_179, %359, %c0_180], %358 {strides = array<i32>} : memref<2x8x32xf32, #tpu.memory_space<vmem>>, vector<2x1x32xf32>,
    %c1_i32_181 = arith.constant 1 : i32
    %c0_182 = arith.constant 0 : index
    %361 = arith.index_cast %c1_i32_181 : i32 to index
    %c0_183 = arith.constant 0 : index
    %362 = vector.load %arg11[%c0_182, %361, %c0_183] : memref<2x8x128xf32, #tpu.memory_space<vmem>>, vector<2x1x128xf32>
    %363 = vector.shape_cast %362 : vector<2x1x128xf32> to vector<2x128xf32>
    %c0_184 = arith.constant 0 : index
    %c0_185 = arith.constant 0 : index
    %364 = vector.load %arg13[%c0_184, %c0_185] : memref<2x32xf32, #tpu.memory_space<vmem>>, vector<2x32xf32>
    %cst_186 = arith.constant dense<0.000000e+00> : vector<2x128xf32>
    %365 = tpu.matmul %364, %323, %cst_186 {dimension_numbers = #tpu.dot_dimension_numbers<[1], [0], [0], [1], [0, 0, 1, 1], [], []>} : vector<2x32xf32>, vector<32x128xf32>, vector<2x128xf32> -> vector<2x128xf32>
    %366 = arith.addf %363, %365 : vector<2x128xf32>
    %367 = vector.extract_strided_slice %366 {offsets = [0, 0], sizes = [2, 32], strides = [1, 1]} : vector<2x128xf32> to vector<2x32xf32>
    %368 = arith.negf %367 : vector<2x32xf32>
    %369 = math.exp %368 : vector<2x32xf32>
    %cst_187 = arith.constant 1.000000e+00 : f32
    %370 = vector.broadcast %cst_187 : f32 to vector<2x32xf32>
    %371 = arith.addf %370, %369 : vector<2x32xf32>
    %372 = arith.divf %370, %371 : vector<2x32xf32>
    %373 = vector.extract_strided_slice %366 {offsets = [0, 32], sizes = [2, 32], strides = [1, 1]} : vector<2x128xf32> to vector<2x32xf32>
    %374 = arith.negf %373 : vector<2x32xf32>
    %375 = math.exp %374 : vector<2x32xf32>
    %cst_188 = arith.constant 1.000000e+00 : f32
    %376 = vector.broadcast %cst_188 : f32 to vector<2x32xf32>
    %377 = arith.addf %376, %375 : vector<2x32xf32>
    %378 = arith.divf %376, %377 : vector<2x32xf32>
    %379 = vector.extract_strided_slice %366 {offsets = [0, 64], sizes = [2, 32], strides = [1, 1]} : vector<2x128xf32> to vector<2x32xf32>
    %380 = math.tanh %379 : vector<2x32xf32>
    %381 = vector.extract_strided_slice %366 {offsets = [0, 96], sizes = [2, 32], strides = [1, 1]} : vector<2x128xf32> to vector<2x32xf32>
    %382 = arith.negf %381 : vector<2x32xf32>
    %383 = math.exp %382 : vector<2x32xf32>
    %cst_189 = arith.constant 1.000000e+00 : f32
    %384 = vector.broadcast %cst_189 : f32 to vector<2x32xf32>
    %385 = arith.addf %384, %383 : vector<2x32xf32>
    %386 = arith.divf %384, %385 : vector<2x32xf32>
    %c0_190 = arith.constant 0 : index
    %c0_191 = arith.constant 0 : index
    %387 = vector.load %arg14[%c0_190, %c0_191] : memref<2x32xf32, #tpu.memory_space<vmem>>, vector<2x32xf32>
    %388 = arith.mulf %378, %387 : vector<2x32xf32>
    %389 = arith.mulf %372, %380 : vector<2x32xf32>
    %390 = arith.addf %388, %389 : vector<2x32xf32>
    %391 = math.tanh %390 : vector<2x32xf32>
    %392 = arith.mulf %386, %391 : vector<2x32xf32>
    %c0_192 = arith.constant 0 : index
    %c0_193 = arith.constant 0 : index
    %393 = vector.load %arg14[%c0_192, %c0_193] : memref<2x32xf32, #tpu.memory_space<vmem>>, vector<2x32xf32>
    tpu.vector_store %arg14[%c0_192, %c0_193], %390 {strides = array<i32>} : memref<2x32xf32, #tpu.memory_space<vmem>>, vector<2x32xf32>,
    %c0_194 = arith.constant 0 : index
    %c0_195 = arith.constant 0 : index
    %394 = vector.load %arg13[%c0_194, %c0_195] : memref<2x32xf32, #tpu.memory_space<vmem>>, vector<2x32xf32>
    tpu.vector_store %arg13[%c0_194, %c0_195], %392 {strides = array<i32>} : memref<2x32xf32, #tpu.memory_space<vmem>>, vector<2x32xf32>,
    %395 = vector.shape_cast %392 : vector<2x32xf32> to vector<2x1x32xf32>
    %c0_196 = arith.constant 0 : index
    %396 = arith.index_cast %c1_i32_181 : i32 to index
    %c0_197 = arith.constant 0 : index
    %397 = vector.load %arg12[%c0_196, %396, %c0_197] : memref<2x8x32xf32, #tpu.memory_space<vmem>>, vector<2x1x32xf32>
    tpu.vector_store %arg12[%c0_196, %396, %c0_197], %395 {strides = array<i32>} : memref<2x8x32xf32, #tpu.memory_space<vmem>>, vector<2x1x32xf32>,
    %c2_i32_198 = arith.constant 2 : i32
    %c0_199 = arith.constant 0 : index
    %398 = arith.index_cast %c2_i32_198 : i32 to index
    %c0_200 = arith.constant 0 : index
    %399 = vector.load %arg11[%c0_199, %398, %c0_200] : memref<2x8x128xf32, #tpu.memory_space<vmem>>, vector<2x1x128xf32>
    %400 = vector.shape_cast %399 : vector<2x1x128xf32> to vector<2x128xf32>
    %c0_201 = arith.constant 0 : index
    %c0_202 = arith.constant 0 : index
    %401 = vector.load %arg13[%c0_201, %c0_202] : memref<2x32xf32, #tpu.memory_space<vmem>>, vector<2x32xf32>
    %cst_203 = arith.constant dense<0.000000e+00> : vector<2x128xf32>
    %402 = tpu.matmul %401, %323, %cst_203 {dimension_numbers = #tpu.dot_dimension_numbers<[1], [0], [0], [1], [0, 0, 1, 1], [], []>} : vector<2x32xf32>, vector<32x128xf32>, vector<2x128xf32> -> vector<2x128xf32>
    %403 = arith.addf %400, %402 : vector<2x128xf32>
    %404 = vector.extract_strided_slice %403 {offsets = [0, 0], sizes = [2, 32], strides = [1, 1]} : vector<2x128xf32> to vector<2x32xf32>
    %405 = arith.negf %404 : vector<2x32xf32>
    %406 = math.exp %405 : vector<2x32xf32>
    %cst_204 = arith.constant 1.000000e+00 : f32
    %407 = vector.broadcast %cst_204 : f32 to vector<2x32xf32>
    %408 = arith.addf %407, %406 : vector<2x32xf32>
    %409 = arith.divf %407, %408 : vector<2x32xf32>
    %410 = vector.extract_strided_slice %403 {offsets = [0, 32], sizes = [2, 32], strides = [1, 1]} : vector<2x128xf32> to vector<2x32xf32>
    %411 = arith.negf %410 : vector<2x32xf32>
    %412 = math.exp %411 : vector<2x32xf32>
    %cst_205 = arith.constant 1.000000e+00 : f32
    %413 = vector.broadcast %cst_205 : f32 to vector<2x32xf32>
    %414 = arith.addf %413, %412 : vector<2x32xf32>
    %415 = arith.divf %413, %414 : vector<2x32xf32>
    %416 = vector.extract_strided_slice %403 {offsets = [0, 64], sizes = [2, 32], strides = [1, 1]} : vector<2x128xf32> to vector<2x32xf32>
    %417 = math.tanh %416 : vector<2x32xf32>
    %418 = vector.extract_strided_slice %403 {offsets = [0, 96], sizes = [2, 32], strides = [1, 1]} : vector<2x128xf32> to vector<2x32xf32>
    %419 = arith.negf %418 : vector<2x32xf32>
    %420 = math.exp %419 : vector<2x32xf32>
    %cst_206 = arith.constant 1.000000e+00 : f32
    %421 = vector.broadcast %cst_206 : f32 to vector<2x32xf32>
    %422 = arith.addf %421, %420 : vector<2x32xf32>
    %423 = arith.divf %421, %422 : vector<2x32xf32>
    %c0_207 = arith.constant 0 : index
    %c0_208 = arith.constant 0 : index
    %424 = vector.load %arg14[%c0_207, %c0_208] : memref<2x32xf32, #tpu.memory_space<vmem>>, vector<2x32xf32>
    %425 = arith.mulf %415, %424 : vector<2x32xf32>
    %426 = arith.mulf %409, %417 : vector<2x32xf32>
    %427 = arith.addf %425, %426 : vector<2x32xf32>
    %428 = math.tanh %427 : vector<2x32xf32>
    %429 = arith.mulf %423, %428 : vector<2x32xf32>
    %c0_209 = arith.constant 0 : index
    %c0_210 = arith.constant 0 : index
    %430 = vector.load %arg14[%c0_209, %c0_210] : memref<2x32xf32, #tpu.memory_space<vmem>>, vector<2x32xf32>
    tpu.vector_store %arg14[%c0_209, %c0_210], %427 {strides = array<i32>} : memref<2x32xf32, #tpu.memory_space<vmem>>, vector<2x32xf32>,
    %c0_211 = arith.constant 0 : index
    %c0_212 = arith.constant 0 : index
    %431 = vector.load %arg13[%c0_211, %c0_212] : memref<2x32xf32, #tpu.memory_space<vmem>>, vector<2x32xf32>
    tpu.vector_store %arg13[%c0_211, %c0_212], %429 {strides = array<i32>} : memref<2x32xf32, #tpu.memory_space<vmem>>, vector<2x32xf32>,
    %432 = vector.shape_cast %429 : vector<2x32xf32> to vector<2x1x32xf32>
    %c0_213 = arith.constant 0 : index
    %433 = arith.index_cast %c2_i32_198 : i32 to index
    %c0_214 = arith.constant 0 : index
    %434 = vector.load %arg12[%c0_213, %433, %c0_214] : memref<2x8x32xf32, #tpu.memory_space<vmem>>, vector<2x1x32xf32>
    tpu.vector_store %arg12[%c0_213, %433, %c0_214], %432 {strides = array<i32>} : memref<2x8x32xf32, #tpu.memory_space<vmem>>, vector<2x1x32xf32>,
    %c3_i32_215 = arith.constant 3 : i32
    %c0_216 = arith.constant 0 : index
    %435 = arith.index_cast %c3_i32_215 : i32 to index
    %c0_217 = arith.constant 0 : index
    %436 = vector.load %arg11[%c0_216, %435, %c0_217] : memref<2x8x128xf32, #tpu.memory_space<vmem>>, vector<2x1x128xf32>
    %437 = vector.shape_cast %436 : vector<2x1x128xf32> to vector<2x128xf32>
    %c0_218 = arith.constant 0 : index
    %c0_219 = arith.constant 0 : index
    %438 = vector.load %arg13[%c0_218, %c0_219] : memref<2x32xf32, #tpu.memory_space<vmem>>, vector<2x32xf32>
    %cst_220 = arith.constant dense<0.000000e+00> : vector<2x128xf32>
    %439 = tpu.matmul %438, %323, %cst_220 {dimension_numbers = #tpu.dot_dimension_numbers<[1], [0], [0], [1], [0, 0, 1, 1], [], []>} : vector<2x32xf32>, vector<32x128xf32>, vector<2x128xf32> -> vector<2x128xf32>
    %440 = arith.addf %437, %439 : vector<2x128xf32>
    %441 = vector.extract_strided_slice %440 {offsets = [0, 0], sizes = [2, 32], strides = [1, 1]} : vector<2x128xf32> to vector<2x32xf32>
    %442 = arith.negf %441 : vector<2x32xf32>
    %443 = math.exp %442 : vector<2x32xf32>
    %cst_221 = arith.constant 1.000000e+00 : f32
    %444 = vector.broadcast %cst_221 : f32 to vector<2x32xf32>
    %445 = arith.addf %444, %443 : vector<2x32xf32>
    %446 = arith.divf %444, %445 : vector<2x32xf32>
    %447 = vector.extract_strided_slice %440 {offsets = [0, 32], sizes = [2, 32], strides = [1, 1]} : vector<2x128xf32> to vector<2x32xf32>
    %448 = arith.negf %447 : vector<2x32xf32>
    %449 = math.exp %448 : vector<2x32xf32>
    %cst_222 = arith.constant 1.000000e+00 : f32
    %450 = vector.broadcast %cst_222 : f32 to vector<2x32xf32>
    %451 = arith.addf %450, %449 : vector<2x32xf32>
    %452 = arith.divf %450, %451 : vector<2x32xf32>
    %453 = vector.extract_strided_slice %440 {offsets = [0, 64], sizes = [2, 32], strides = [1, 1]} : vector<2x128xf32> to vector<2x32xf32>
    %454 = math.tanh %453 : vector<2x32xf32>
    %455 = vector.extract_strided_slice %440 {offsets = [0, 96], sizes = [2, 32], strides = [1, 1]} : vector<2x128xf32> to vector<2x32xf32>
    %456 = arith.negf %455 : vector<2x32xf32>
    %457 = math.exp %456 : vector<2x32xf32>
    %cst_223 = arith.constant 1.000000e+00 : f32
    %458 = vector.broadcast %cst_223 : f32 to vector<2x32xf32>
    %459 = arith.addf %458, %457 : vector<2x32xf32>
    %460 = arith.divf %458, %459 : vector<2x32xf32>
    %c0_224 = arith.constant 0 : index
    %c0_225 = arith.constant 0 : index
    %461 = vector.load %arg14[%c0_224, %c0_225] : memref<2x32xf32, #tpu.memory_space<vmem>>, vector<2x32xf32>
    %462 = arith.mulf %452, %461 : vector<2x32xf32>
    %463 = arith.mulf %446, %454 : vector<2x32xf32>
    %464 = arith.addf %462, %463 : vector<2x32xf32>
    %465 = math.tanh %464 : vector<2x32xf32>
    %466 = arith.mulf %460, %465 : vector<2x32xf32>
    %c0_226 = arith.constant 0 : index
    %c0_227 = arith.constant 0 : index
    %467 = vector.load %arg14[%c0_226, %c0_227] : memref<2x32xf32, #tpu.memory_space<vmem>>, vector<2x32xf32>
    tpu.vector_store %arg14[%c0_226, %c0_227], %464 {strides = array<i32>} : memref<2x32xf32, #tpu.memory_space<vmem>>, vector<2x32xf32>,
    %c0_228 = arith.constant 0 : index
    %c0_229 = arith.constant 0 : index
    %468 = vector.load %arg13[%c0_228, %c0_229] : memref<2x32xf32, #tpu.memory_space<vmem>>, vector<2x32xf32>
    tpu.vector_store %arg13[%c0_228, %c0_229], %466 {strides = array<i32>} : memref<2x32xf32, #tpu.memory_space<vmem>>, vector<2x32xf32>,
    %469 = vector.shape_cast %466 : vector<2x32xf32> to vector<2x1x32xf32>
    %c0_230 = arith.constant 0 : index
    %470 = arith.index_cast %c3_i32_215 : i32 to index
    %c0_231 = arith.constant 0 : index
    %471 = vector.load %arg12[%c0_230, %470, %c0_231] : memref<2x8x32xf32, #tpu.memory_space<vmem>>, vector<2x1x32xf32>
    tpu.vector_store %arg12[%c0_230, %470, %c0_231], %469 {strides = array<i32>} : memref<2x8x32xf32, #tpu.memory_space<vmem>>, vector<2x1x32xf32>,
    %c4_i32_232 = arith.constant 4 : i32
    %c0_233 = arith.constant 0 : index
    %472 = arith.index_cast %c4_i32_232 : i32 to index
    %c0_234 = arith.constant 0 : index
    %473 = vector.load %arg11[%c0_233, %472, %c0_234] : memref<2x8x128xf32, #tpu.memory_space<vmem>>, vector<2x1x128xf32>
    %474 = vector.shape_cast %473 : vector<2x1x128xf32> to vector<2x128xf32>
    %c0_235 = arith.constant 0 : index
    %c0_236 = arith.constant 0 : index
    %475 = vector.load %arg13[%c0_235, %c0_236] : memref<2x32xf32, #tpu.memory_space<vmem>>, vector<2x32xf32>
    %cst_237 = arith.constant dense<0.000000e+00> : vector<2x128xf32>
    %476 = tpu.matmul %475, %323, %cst_237 {dimension_numbers = #tpu.dot_dimension_numbers<[1], [0], [0], [1], [0, 0, 1, 1], [], []>} : vector<2x32xf32>, vector<32x128xf32>, vector<2x128xf32> -> vector<2x128xf32>
    %477 = arith.addf %474, %476 : vector<2x128xf32>
    %478 = vector.extract_strided_slice %477 {offsets = [0, 0], sizes = [2, 32], strides = [1, 1]} : vector<2x128xf32> to vector<2x32xf32>
    %479 = arith.negf %478 : vector<2x32xf32>
    %480 = math.exp %479 : vector<2x32xf32>
    %cst_238 = arith.constant 1.000000e+00 : f32
    %481 = vector.broadcast %cst_238 : f32 to vector<2x32xf32>
    %482 = arith.addf %481, %480 : vector<2x32xf32>
    %483 = arith.divf %481, %482 : vector<2x32xf32>
    %484 = vector.extract_strided_slice %477 {offsets = [0, 32], sizes = [2, 32], strides = [1, 1]} : vector<2x128xf32> to vector<2x32xf32>
    %485 = arith.negf %484 : vector<2x32xf32>
    %486 = math.exp %485 : vector<2x32xf32>
    %cst_239 = arith.constant 1.000000e+00 : f32
    %487 = vector.broadcast %cst_239 : f32 to vector<2x32xf32>
    %488 = arith.addf %487, %486 : vector<2x32xf32>
    %489 = arith.divf %487, %488 : vector<2x32xf32>
    %490 = vector.extract_strided_slice %477 {offsets = [0, 64], sizes = [2, 32], strides = [1, 1]} : vector<2x128xf32> to vector<2x32xf32>
    %491 = math.tanh %490 : vector<2x32xf32>
    %492 = vector.extract_strided_slice %477 {offsets = [0, 96], sizes = [2, 32], strides = [1, 1]} : vector<2x128xf32> to vector<2x32xf32>
    %493 = arith.negf %492 : vector<2x32xf32>
    %494 = math.exp %493 : vector<2x32xf32>
    %cst_240 = arith.constant 1.000000e+00 : f32
    %495 = vector.broadcast %cst_240 : f32 to vector<2x32xf32>
    %496 = arith.addf %495, %494 : vector<2x32xf32>
    %497 = arith.divf %495, %496 : vector<2x32xf32>
    %c0_241 = arith.constant 0 : index
    %c0_242 = arith.constant 0 : index
    %498 = vector.load %arg14[%c0_241, %c0_242] : memref<2x32xf32, #tpu.memory_space<vmem>>, vector<2x32xf32>
    %499 = arith.mulf %489, %498 : vector<2x32xf32>
    %500 = arith.mulf %483, %491 : vector<2x32xf32>
    %501 = arith.addf %499, %500 : vector<2x32xf32>
    %502 = math.tanh %501 : vector<2x32xf32>
    %503 = arith.mulf %497, %502 : vector<2x32xf32>
    %c0_243 = arith.constant 0 : index
    %c0_244 = arith.constant 0 : index
    %504 = vector.load %arg14[%c0_243, %c0_244] : memref<2x32xf32, #tpu.memory_space<vmem>>, vector<2x32xf32>
    tpu.vector_store %arg14[%c0_243, %c0_244], %501 {strides = array<i32>} : memref<2x32xf32, #tpu.memory_space<vmem>>, vector<2x32xf32>,
    %c0_245 = arith.constant 0 : index
    %c0_246 = arith.constant 0 : index
    %505 = vector.load %arg13[%c0_245, %c0_246] : memref<2x32xf32, #tpu.memory_space<vmem>>, vector<2x32xf32>
    tpu.vector_store %arg13[%c0_245, %c0_246], %503 {strides = array<i32>} : memref<2x32xf32, #tpu.memory_space<vmem>>, vector<2x32xf32>,
    %506 = vector.shape_cast %503 : vector<2x32xf32> to vector<2x1x32xf32>
    %c0_247 = arith.constant 0 : index
    %507 = arith.index_cast %c4_i32_232 : i32 to index
    %c0_248 = arith.constant 0 : index
    %508 = vector.load %arg12[%c0_247, %507, %c0_248] : memref<2x8x32xf32, #tpu.memory_space<vmem>>, vector<2x1x32xf32>
    tpu.vector_store %arg12[%c0_247, %507, %c0_248], %506 {strides = array<i32>} : memref<2x8x32xf32, #tpu.memory_space<vmem>>, vector<2x1x32xf32>,
    %c5_i32_249 = arith.constant 5 : i32
    %c0_250 = arith.constant 0 : index
    %509 = arith.index_cast %c5_i32_249 : i32 to index
    %c0_251 = arith.constant 0 : index
    %510 = vector.load %arg11[%c0_250, %509, %c0_251] : memref<2x8x128xf32, #tpu.memory_space<vmem>>, vector<2x1x128xf32>
    %511 = vector.shape_cast %510 : vector<2x1x128xf32> to vector<2x128xf32>
    %c0_252 = arith.constant 0 : index
    %c0_253 = arith.constant 0 : index
    %512 = vector.load %arg13[%c0_252, %c0_253] : memref<2x32xf32, #tpu.memory_space<vmem>>, vector<2x32xf32>
    %cst_254 = arith.constant dense<0.000000e+00> : vector<2x128xf32>
    %513 = tpu.matmul %512, %323, %cst_254 {dimension_numbers = #tpu.dot_dimension_numbers<[1], [0], [0], [1], [0, 0, 1, 1], [], []>} : vector<2x32xf32>, vector<32x128xf32>, vector<2x128xf32> -> vector<2x128xf32>
    %514 = arith.addf %511, %513 : vector<2x128xf32>
    %515 = vector.extract_strided_slice %514 {offsets = [0, 0], sizes = [2, 32], strides = [1, 1]} : vector<2x128xf32> to vector<2x32xf32>
    %516 = arith.negf %515 : vector<2x32xf32>
    %517 = math.exp %516 : vector<2x32xf32>
    %cst_255 = arith.constant 1.000000e+00 : f32
    %518 = vector.broadcast %cst_255 : f32 to vector<2x32xf32>
    %519 = arith.addf %518, %517 : vector<2x32xf32>
    %520 = arith.divf %518, %519 : vector<2x32xf32>
    %521 = vector.extract_strided_slice %514 {offsets = [0, 32], sizes = [2, 32], strides = [1, 1]} : vector<2x128xf32> to vector<2x32xf32>
    %522 = arith.negf %521 : vector<2x32xf32>
    %523 = math.exp %522 : vector<2x32xf32>
    %cst_256 = arith.constant 1.000000e+00 : f32
    %524 = vector.broadcast %cst_256 : f32 to vector<2x32xf32>
    %525 = arith.addf %524, %523 : vector<2x32xf32>
    %526 = arith.divf %524, %525 : vector<2x32xf32>
    %527 = vector.extract_strided_slice %514 {offsets = [0, 64], sizes = [2, 32], strides = [1, 1]} : vector<2x128xf32> to vector<2x32xf32>
    %528 = math.tanh %527 : vector<2x32xf32>
    %529 = vector.extract_strided_slice %514 {offsets = [0, 96], sizes = [2, 32], strides = [1, 1]} : vector<2x128xf32> to vector<2x32xf32>
    %530 = arith.negf %529 : vector<2x32xf32>
    %531 = math.exp %530 : vector<2x32xf32>
    %cst_257 = arith.constant 1.000000e+00 : f32
    %532 = vector.broadcast %cst_257 : f32 to vector<2x32xf32>
    %533 = arith.addf %532, %531 : vector<2x32xf32>
    %534 = arith.divf %532, %533 : vector<2x32xf32>
    %c0_258 = arith.constant 0 : index
    %c0_259 = arith.constant 0 : index
    %535 = vector.load %arg14[%c0_258, %c0_259] : memref<2x32xf32, #tpu.memory_space<vmem>>, vector<2x32xf32>
    %536 = arith.mulf %526, %535 : vector<2x32xf32>
    %537 = arith.mulf %520, %528 : vector<2x32xf32>
    %538 = arith.addf %536, %537 : vector<2x32xf32>
    %539 = math.tanh %538 : vector<2x32xf32>
    %540 = arith.mulf %534, %539 : vector<2x32xf32>
    %c0_260 = arith.constant 0 : index
    %c0_261 = arith.constant 0 : index
    %541 = vector.load %arg14[%c0_260, %c0_261] : memref<2x32xf32, #tpu.memory_space<vmem>>, vector<2x32xf32>
    tpu.vector_store %arg14[%c0_260, %c0_261], %538 {strides = array<i32>} : memref<2x32xf32, #tpu.memory_space<vmem>>, vector<2x32xf32>,
    %c0_262 = arith.constant 0 : index
    %c0_263 = arith.constant 0 : index
    %542 = vector.load %arg13[%c0_262, %c0_263] : memref<2x32xf32, #tpu.memory_space<vmem>>, vector<2x32xf32>
    tpu.vector_store %arg13[%c0_262, %c0_263], %540 {strides = array<i32>} : memref<2x32xf32, #tpu.memory_space<vmem>>, vector<2x32xf32>,
    %543 = vector.shape_cast %540 : vector<2x32xf32> to vector<2x1x32xf32>
    %c0_264 = arith.constant 0 : index
    %544 = arith.index_cast %c5_i32_249 : i32 to index
    %c0_265 = arith.constant 0 : index
    %545 = vector.load %arg12[%c0_264, %544, %c0_265] : memref<2x8x32xf32, #tpu.memory_space<vmem>>, vector<2x1x32xf32>
    tpu.vector_store %arg12[%c0_264, %544, %c0_265], %543 {strides = array<i32>} : memref<2x8x32xf32, #tpu.memory_space<vmem>>, vector<2x1x32xf32>,
    %c6_i32_266 = arith.constant 6 : i32
    %c0_267 = arith.constant 0 : index
    %546 = arith.index_cast %c6_i32_266 : i32 to index
    %c0_268 = arith.constant 0 : index
    %547 = vector.load %arg11[%c0_267, %546, %c0_268] : memref<2x8x128xf32, #tpu.memory_space<vmem>>, vector<2x1x128xf32>
    %548 = vector.shape_cast %547 : vector<2x1x128xf32> to vector<2x128xf32>
    %c0_269 = arith.constant 0 : index
    %c0_270 = arith.constant 0 : index
    %549 = vector.load %arg13[%c0_269, %c0_270] : memref<2x32xf32, #tpu.memory_space<vmem>>, vector<2x32xf32>
    %cst_271 = arith.constant dense<0.000000e+00> : vector<2x128xf32>
    %550 = tpu.matmul %549, %323, %cst_271 {dimension_numbers = #tpu.dot_dimension_numbers<[1], [0], [0], [1], [0, 0, 1, 1], [], []>} : vector<2x32xf32>, vector<32x128xf32>, vector<2x128xf32> -> vector<2x128xf32>
    %551 = arith.addf %548, %550 : vector<2x128xf32>
    %552 = vector.extract_strided_slice %551 {offsets = [0, 0], sizes = [2, 32], strides = [1, 1]} : vector<2x128xf32> to vector<2x32xf32>
    %553 = arith.negf %552 : vector<2x32xf32>
    %554 = math.exp %553 : vector<2x32xf32>
    %cst_272 = arith.constant 1.000000e+00 : f32
    %555 = vector.broadcast %cst_272 : f32 to vector<2x32xf32>
    %556 = arith.addf %555, %554 : vector<2x32xf32>
    %557 = arith.divf %555, %556 : vector<2x32xf32>
    %558 = vector.extract_strided_slice %551 {offsets = [0, 32], sizes = [2, 32], strides = [1, 1]} : vector<2x128xf32> to vector<2x32xf32>
    %559 = arith.negf %558 : vector<2x32xf32>
    %560 = math.exp %559 : vector<2x32xf32>
    %cst_273 = arith.constant 1.000000e+00 : f32
    %561 = vector.broadcast %cst_273 : f32 to vector<2x32xf32>
    %562 = arith.addf %561, %560 : vector<2x32xf32>
    %563 = arith.divf %561, %562 : vector<2x32xf32>
    %564 = vector.extract_strided_slice %551 {offsets = [0, 64], sizes = [2, 32], strides = [1, 1]} : vector<2x128xf32> to vector<2x32xf32>
    %565 = math.tanh %564 : vector<2x32xf32>
    %566 = vector.extract_strided_slice %551 {offsets = [0, 96], sizes = [2, 32], strides = [1, 1]} : vector<2x128xf32> to vector<2x32xf32>
    %567 = arith.negf %566 : vector<2x32xf32>
    %568 = math.exp %567 : vector<2x32xf32>
    %cst_274 = arith.constant 1.000000e+00 : f32
    %569 = vector.broadcast %cst_274 : f32 to vector<2x32xf32>
    %570 = arith.addf %569, %568 : vector<2x32xf32>
    %571 = arith.divf %569, %570 : vector<2x32xf32>
    %c0_275 = arith.constant 0 : index
    %c0_276 = arith.constant 0 : index
    %572 = vector.load %arg14[%c0_275, %c0_276] : memref<2x32xf32, #tpu.memory_space<vmem>>, vector<2x32xf32>
    %573 = arith.mulf %563, %572 : vector<2x32xf32>
    %574 = arith.mulf %557, %565 : vector<2x32xf32>
    %575 = arith.addf %573, %574 : vector<2x32xf32>
    %576 = math.tanh %575 : vector<2x32xf32>
    %577 = arith.mulf %571, %576 : vector<2x32xf32>
    %c0_277 = arith.constant 0 : index
    %c0_278 = arith.constant 0 : index
    %578 = vector.load %arg14[%c0_277, %c0_278] : memref<2x32xf32, #tpu.memory_space<vmem>>, vector<2x32xf32>
    tpu.vector_store %arg14[%c0_277, %c0_278], %575 {strides = array<i32>} : memref<2x32xf32, #tpu.memory_space<vmem>>, vector<2x32xf32>,
    %c0_279 = arith.constant 0 : index
    %c0_280 = arith.constant 0 : index
    %579 = vector.load %arg13[%c0_279, %c0_280] : memref<2x32xf32, #tpu.memory_space<vmem>>, vector<2x32xf32>
    tpu.vector_store %arg13[%c0_279, %c0_280], %577 {strides = array<i32>} : memref<2x32xf32, #tpu.memory_space<vmem>>, vector<2x32xf32>,
    %580 = vector.shape_cast %577 : vector<2x32xf32> to vector<2x1x32xf32>
    %c0_281 = arith.constant 0 : index
    %581 = arith.index_cast %c6_i32_266 : i32 to index
    %c0_282 = arith.constant 0 : index
    %582 = vector.load %arg12[%c0_281, %581, %c0_282] : memref<2x8x32xf32, #tpu.memory_space<vmem>>, vector<2x1x32xf32>
    tpu.vector_store %arg12[%c0_281, %581, %c0_282], %580 {strides = array<i32>} : memref<2x8x32xf32, #tpu.memory_space<vmem>>, vector<2x1x32xf32>,
    %c7_i32_283 = arith.constant 7 : i32
    %c0_284 = arith.constant 0 : index
    %583 = arith.index_cast %c7_i32_283 : i32 to index
    %c0_285 = arith.constant 0 : index
    %584 = vector.load %arg11[%c0_284, %583, %c0_285] : memref<2x8x128xf32, #tpu.memory_space<vmem>>, vector<2x1x128xf32>
    %585 = vector.shape_cast %584 : vector<2x1x128xf32> to vector<2x128xf32>
    %c0_286 = arith.constant 0 : index
    %c0_287 = arith.constant 0 : index
    %586 = vector.load %arg13[%c0_286, %c0_287] : memref<2x32xf32, #tpu.memory_space<vmem>>, vector<2x32xf32>
    %cst_288 = arith.constant dense<0.000000e+00> : vector<2x128xf32>
    %587 = tpu.matmul %586, %323, %cst_288 {dimension_numbers = #tpu.dot_dimension_numbers<[1], [0], [0], [1], [0, 0, 1, 1], [], []>} : vector<2x32xf32>, vector<32x128xf32>, vector<2x128xf32> -> vector<2x128xf32>
    %588 = arith.addf %585, %587 : vector<2x128xf32>
    %589 = vector.extract_strided_slice %588 {offsets = [0, 0], sizes = [2, 32], strides = [1, 1]} : vector<2x128xf32> to vector<2x32xf32>
    %590 = arith.negf %589 : vector<2x32xf32>
    %591 = math.exp %590 : vector<2x32xf32>
    %cst_289 = arith.constant 1.000000e+00 : f32
    %592 = vector.broadcast %cst_289 : f32 to vector<2x32xf32>
    %593 = arith.addf %592, %591 : vector<2x32xf32>
    %594 = arith.divf %592, %593 : vector<2x32xf32>
    %595 = vector.extract_strided_slice %588 {offsets = [0, 32], sizes = [2, 32], strides = [1, 1]} : vector<2x128xf32> to vector<2x32xf32>
    %596 = arith.negf %595 : vector<2x32xf32>
    %597 = math.exp %596 : vector<2x32xf32>
    %cst_290 = arith.constant 1.000000e+00 : f32
    %598 = vector.broadcast %cst_290 : f32 to vector<2x32xf32>
    %599 = arith.addf %598, %597 : vector<2x32xf32>
    %600 = arith.divf %598, %599 : vector<2x32xf32>
    %601 = vector.extract_strided_slice %588 {offsets = [0, 64], sizes = [2, 32], strides = [1, 1]} : vector<2x128xf32> to vector<2x32xf32>
    %602 = math.tanh %601 : vector<2x32xf32>
    %603 = vector.extract_strided_slice %588 {offsets = [0, 96], sizes = [2, 32], strides = [1, 1]} : vector<2x128xf32> to vector<2x32xf32>
    %604 = arith.negf %603 : vector<2x32xf32>
    %605 = math.exp %604 : vector<2x32xf32>
    %cst_291 = arith.constant 1.000000e+00 : f32
    %606 = vector.broadcast %cst_291 : f32 to vector<2x32xf32>
    %607 = arith.addf %606, %605 : vector<2x32xf32>
    %608 = arith.divf %606, %607 : vector<2x32xf32>
    %c0_292 = arith.constant 0 : index
    %c0_293 = arith.constant 0 : index
    %609 = vector.load %arg14[%c0_292, %c0_293] : memref<2x32xf32, #tpu.memory_space<vmem>>, vector<2x32xf32>
    %610 = arith.mulf %600, %609 : vector<2x32xf32>
    %611 = arith.mulf %594, %602 : vector<2x32xf32>
    %612 = arith.addf %610, %611 : vector<2x32xf32>
    %613 = math.tanh %612 : vector<2x32xf32>
    %614 = arith.mulf %608, %613 : vector<2x32xf32>
    %c0_294 = arith.constant 0 : index
    %c0_295 = arith.constant 0 : index
    %615 = vector.load %arg14[%c0_294, %c0_295] : memref<2x32xf32, #tpu.memory_space<vmem>>, vector<2x32xf32>
    tpu.vector_store %arg14[%c0_294, %c0_295], %612 {strides = array<i32>} : memref<2x32xf32, #tpu.memory_space<vmem>>, vector<2x32xf32>,
    %c0_296 = arith.constant 0 : index
    %c0_297 = arith.constant 0 : index
    %616 = vector.load %arg13[%c0_296, %c0_297] : memref<2x32xf32, #tpu.memory_space<vmem>>, vector<2x32xf32>
    tpu.vector_store %arg13[%c0_296, %c0_297], %614 {strides = array<i32>} : memref<2x32xf32, #tpu.memory_space<vmem>>, vector<2x32xf32>,
    %617 = vector.shape_cast %614 : vector<2x32xf32> to vector<2x1x32xf32>
    %c0_298 = arith.constant 0 : index
    %618 = arith.index_cast %c7_i32_283 : i32 to index
    %c0_299 = arith.constant 0 : index
    %619 = vector.load %arg12[%c0_298, %618, %c0_299] : memref<2x8x32xf32, #tpu.memory_space<vmem>>, vector<2x1x32xf32>
    tpu.vector_store %arg12[%c0_298, %618, %c0_299], %617 {strides = array<i32>} : memref<2x8x32xf32, #tpu.memory_space<vmem>>, vector<2x1x32xf32>,
    %c8_i32_300 = arith.constant 8 : i32
    %c0_301 = arith.constant 0 : index
    %c0_302 = arith.constant 0 : index
    %c0_303 = arith.constant 0 : index
    %620 = vector.load %arg12[%c0_301, %c0_302, %c0_303] : memref<2x8x32xf32, #tpu.memory_space<vmem>>, vector<2x8x32xf32>
    %621 = vector.shape_cast %620 : vector<2x8x32xf32> to vector<16x32xf32>
    %c0_304 = arith.constant 0 : index
    %c0_305 = arith.constant 0 : index
    %622 = vector.load %arg8[%c0_304, %c0_305] : memref<32x8xf32, #tpu.memory_space<vmem>>, vector<32x8xf32>
    %cst_306 = arith.constant dense<0.000000e+00> : vector<16x8xf32>
    %623 = tpu.matmul %621, %622, %cst_306 {dimension_numbers = #tpu.dot_dimension_numbers<[1], [0], [0], [1], [0, 0, 1, 1], [], []>} : vector<16x32xf32>, vector<32x8xf32>, vector<16x8xf32> -> vector<16x8xf32>
    %c0_307 = arith.constant 0 : index
    %c0_308 = arith.constant 0 : index
    %624 = vector.load %arg9[%c0_307, %c0_308] : memref<1x8xf32, #tpu.memory_space<vmem>>, vector<1x8xf32>
    %625 = vector.broadcast %624 : vector<1x8xf32> to vector<16x8xf32>
    %626 = arith.addf %623, %625 : vector<16x8xf32>
    %627 = vector.shape_cast %626 : vector<16x8xf32> to vector<2x8x8xf32>
    %c0_309 = arith.constant 0 : index
    %c0_310 = arith.constant 0 : index
    %c0_311 = arith.constant 0 : index
    %628 = vector.load %arg10[%c0_309, %c0_310, %c0_311] : memref<2x8x8xf32, #tpu.memory_space<vmem>>, vector<2x8x8xf32>
    tpu.vector_store %arg10[%c0_309, %c0_310, %c0_311], %627 {strides = array<i32>} : memref<2x8x8xf32, #tpu.memory_space<vmem>>, vector<2x8x8xf32>,
    return
  }
  func.func @transform_0(%arg0: i32) -> (i32, i32, i32) {
    %c0_i32 = arith.constant 0 : i32
    %c0_i32_0 = arith.constant 0 : i32
    %c0_i32_1 = arith.constant 0 : i32
    %c0_i32_2 = arith.constant 0 : i32
    return %c0_i32, %c0_i32_0, %c0_i32_1 : i32, i32, i32
  }
  func.func @transform_1(%arg0: i32) -> (i32, i32) {
    %c0_i32 = arith.constant 0 : i32
    %c0_i32_0 = arith.constant 0 : i32
    %c0_i32_1 = arith.constant 0 : i32
    return %c0_i32, %c0_i32_0 : i32, i32
  }
  func.func @transform_2(%arg0: i32) -> (i32, i32) {
    %c0_i32 = arith.constant 0 : i32
    %c0_i32_0 = arith.constant 0 : i32
    %c0_i32_1 = arith.constant 0 : i32
    return %c0_i32, %c0_i32_0 : i32, i32
  }
  func.func @transform_3(%arg0: i32) -> (i32, i32) {
    %c0_i32 = arith.constant 0 : i32
    %c0_i32_0 = arith.constant 0 : i32
    %c0_i32_1 = arith.constant 0 : i32
    return %c0_i32, %c0_i32_0 : i32, i32
  }
  func.func @transform_4(%arg0: i32) -> (i32, i32) {
    %c0_i32 = arith.constant 0 : i32
    %c0_i32_0 = arith.constant 0 : i32
    %c0_i32_1 = arith.constant 0 : i32
    return %c0_i32, %c0_i32_0 : i32, i32
  }
  func.func @transform_5(%arg0: i32) -> (i32, i32) {
    %c0_i32 = arith.constant 0 : i32
    %c0_i32_0 = arith.constant 0 : i32
    %c0_i32_1 = arith.constant 0 : i32
    return %c0_i32, %c0_i32_0 : i32, i32
  }
  func.func @transform_6(%arg0: i32) -> (i32, i32) {
    %c0_i32 = arith.constant 0 : i32
    %c0_i32_0 = arith.constant 0 : i32
    %c0_i32_1 = arith.constant 0 : i32
    return %c0_i32, %c0_i32_0 : i32, i32
  }
  func.func @transform_7(%arg0: i32) -> (i32, i32) {
    %c0_i32 = arith.constant 0 : i32
    %c0_i32_0 = arith.constant 0 : i32
    %c0_i32_1 = arith.constant 0 : i32
    return %c0_i32, %c0_i32_0 : i32, i32
  }
  func.func @transform_8(%arg0: i32) -> (i32, i32) {
    %c0_i32 = arith.constant 0 : i32
    %c0_i32_0 = arith.constant 0 : i32
    %c0_i32_1 = arith.constant 0 : i32
    return %c0_i32, %c0_i32_0 : i32, i32
  }
  func.func @transform_9(%arg0: i32) -> (i32, i32, i32) {
    %c0_i32 = arith.constant 0 : i32
    %c0_i32_0 = arith.constant 0 : i32
    %c0_i32_1 = arith.constant 0 : i32
    %c0_i32_2 = arith.constant 0 : i32
    return %c0_i32, %c0_i32_0, %c0_i32_1 : i32, i32, i32
  }
}

</mosaic_0001>

<bundles_post_ra>
// kernel: baseline_lstm_forward.1
= control target key start
LH: loop header
LB: loop body
LE: loop exit
PB: predicated region body
PF: predicated region fallthrough
CT: control target
= control target key end

     0   :  { %14 = vsyncpa [#allocation7], 0  ;;  %s4447_s0 = inlined_call_operand.vmem [shape: f32[2,8,16], index: 0, kind: input, shape index: {}]   ;;  %s4448_s1 = inlined_call_operand.hbm [shape: f32[16,128], index: 1, kind: input, shape index: {}]   ;;  %s4449_s2 = inlined_call_operand.vmem [shape: f32[32,128], index: 2, kind: input, shape index: {}]   ;;  %s4450_s3 = inlined_call_operand.vmem [shape: f32[1,128], index: 3, kind: input, shape index: {}]   ;;  %s4451_s4 = inlined_call_operand.vmem [shape: f32[32,128], index: 4, kind: input, shape index: {}]   ;;  %s4452_s5 = inlined_call_operand.vmem [shape: f32[32,128], index: 5, kind: input, shape index: {}]   ;;  %s4453_s6 = inlined_call_operand.vmem [shape: f32[1,128], index: 6, kind: input, shape index: {}]   ;;  %s4454_s7 = inlined_call_operand.vmem [shape: f32[32,8], index: 7, kind: input, shape index: {}]   ;;  %s4455_s8 = inlined_call_operand.vmem [shape: f32[1,8], index: 8, kind: input, shape index: {}]   ;;  %s4456_s9 = inlined_call_operand.hbm [shape: f32[2,8,8], index: 9, kind: output, shape index: {}]  }
   0x1   :  { %15 = vsyncpa [#allocation8], 0  ;;  %s3764_s30 = smov [#allocation6]   ;;  %s3716_s13 = scalar_lea.hbm %s4448_s1, 256 }
   0x2   :  { %s23_s10 = sshll.u32 %s3764_s30, 4  ;;  %p3717_p0 = scmp.ne.s32.totalorder %s4448_s1, %s3716_s13  ;;  %s24_s10 = int_to_ptr.vmem [resolvable:$true] %s23_s10 }
   0x3   :  { %p3720_p1 = scmp.lt.u32.totalorder %s3716_s13, %s4448_s1 }
   0x5   :  { %p3722_p2 = pnand %p3720_p1, %p3717_p0 }
   0x7   :  { %3725 = shalt.err (!%p3722_p2)
}
   0x8   :  { %s3726_s18 = scalar_lea.vmem %s24_s10, 256  ;;  %p3731_p4 = scmp.lt.s32.totalorder %s24_s10, %s24_s10 }
   0x9   :  { %p3727_p3 = scmp.ne.s32.totalorder %s24_s10, %s3726_s18  ;;  %p3732_p5 = scmp.lt.s32.totalorder %s3726_s18, %s3726_s18 }
   0xb   :  { %p3733_p6 = por %p3732_p5, %p3731_p4 }
   0xd   :  { %p3734_p7 = pnand %p3733_p6, %p3727_p3 }
   0xf   :  { %3737 = shalt.err (!%p3734_p7)
}
  0x10   :  { %s3765_s19 = smov 128   ;;  %s3766_s20 = smov 8  }
  0x11   :  { %29 = dma.hbm_to_vmem [thread:$0]  %s4448_s1, 256, %s24_s10, [#allocation7], %s3765_s19, %s3765_s19, %s3766_s20  }
  0x12   :  { %3760 = dma.done.wait [#allocation7], 256  }
  0x13   :  { %3761 = vsyncadd [#allocation7], 4294967040  ;;  %v3767_v0 = vmov 0.0|0.0   ;;  %vm3768_vm0 = vmmov 0   ;;  %v3769_v1 = vmov 0.0   ;;  %vm142_vm1 = vcmask 254976  }
  0x14   :  { %3338 = vmatprep.subr.bf16.mxu1 %v3767_v0  ;;  %3144 = vmatprep.mubr.msk.f32.mxu1 %vm3768_vm0, %v3769_v1  ;;  %143 = vst.msk [vmem:[#allocation4] sm:$0x3] %vm142_vm1, %v3769_v1  ;;  %144 = vst.msk [vmem:[#allocation5] sm:$0x3] %vm142_vm1, %v3769_v1  ;;  %vm58_vm2 = vcmask 130048   ;;  %v49_v2 = vld [vmem:[#allocation6] sm:$0xff] }
  0x15   :  { %v50_v3 = vld [vmem:[#allocation6 + $0x8] sm:$0xff]  ;;  %v47_v4 = vld [vmem:[%s4447_s0] sm:$0xff]  ;;  %v148_v10 = vld [vmem:[%s4449_s2 + $0x18] sm:$0xff]  ;;  %s3770_s13 = smov 32   ;;  %vm152_vm3 = vcmask 261120   ;;  %s3771_s14 = smov 64  }
  0x16   :  { %v3334_v5 = vpack.c.bf16 %v50_v3, %v49_v2  ;;  %3133 = vmatprep.mubr.msk.f32.mxu0 %vm58_vm2, %v47_v4  ;;  %v145_v6 = vld [vmem:[%s4449_s2] sm:$0xff]  ;;  %v146_v7 = vld [vmem:[%s4449_s2 + $0x8] sm:$0xff]  ;;  %v147_v9 = vld [vmem:[%s4449_s2 + $0x10] sm:$0xff]  ;;  %vm292_vm4 = vcmask 1041409   ;;  %vm312_vm5 = vcmask 253952   ;;  %vm2956_vm6 = vcmask 64512  }
  0x17   :  { %v3856_v8 = vpack.c.bf16 %v146_v7, %v145_v6  ;;  %v48_v12 = vld [vmem:[%s4447_s0 + $0x8] sm:$0xff]  ;;  %v3868_v13 = vpack.c.bf16 %v148_v10, %v147_v9  ;;  %v2976_v16 = vld [vmem:[%s4450_s3] ss:$0 sm:$0xff]  ;;  %s3772_s3 = smov 96  }
  0x18   :  { %3335 = vmatprep.subr.bf16.mxu0 %v3334_v5 }
  0x19   :  { %3337 = vmatpush3.bf16.msra.mxu0 %v3334_v5  ;;  %3340 = vmatpush3.bf16.msra.mxu1 %v3856_v8 }
  0x1a   :  { %3341 = vmatprep.subr.bf16.mxu1 %v3767_v0  ;;  %3344 = vmatprep.subr.bf16.mxu0 %v3767_v0 }
  0x1b   :  { %v246_v11 = vld [vmem:[#allocation5] sm:$0x3]  ;;  %v151_v15 = vld [vmem:[#allocation4] sm:$0x3] }
  0x1c   :  { %v248_v14 = vrot.slane %v246_v11, 1  ;;  %3134 = vmatmul.mubr.msk.f32.vlgmr.msra.gmra.mrb[0].mxu0 %vm58_vm2, %v48_v12 }
  0x1d   :  { %3343 = vmatpush3.bf16.msra.mxu1 %v3868_v13  ;;  %3346 = vmatpush3.bf16.msra.mxu0 %v3856_v8 }
  0x1e   :  { %251 = vrot.lane.b32.xlu1 %v248_v14, %s3770_s13  ;;  %3347 = vmatprep.subr.bf16.mxu0 %v3767_v0 }
  0x1f   :  { %3155 = vmatprep.mubr.msk.f32.mxu0 %vm3768_vm0, %v3769_v1  ;;  %3350 = vmatprep.subr.bf16.mxu1 %v3767_v0 }
  0x20   :  { %3145 = vmatmul.mubr.msk.f32.vlgmr.msra.gmra.mrb[0].mxu1 %vm152_vm3, %v151_v15 }
  0x21   :  { %3349 = vmatpush3.bf16.msra.mxu0 %v3868_v13  ;;  %3352 = vmatpush3.bf16.msra.mxu1 %v3856_v8 }
  0x22   :  { %249 = vrot.lane.b32.xlu1 %v246_v11, %s3770_s13  ;;  %3353 = vmatprep.subr.bf16.mxu1 %v3767_v0 }
  0x23   :  { %3166 = vmatprep.mubr.msk.f32.mxu1 %vm3768_vm0, %v3769_v1  ;;  %3356 = vmatprep.subr.bf16.mxu0 %v3767_v0 }
  0x25   :  { %3355 = vmatpush3.bf16.msra.mxu1 %v3868_v13 }
  0x26   :  { %3362 = vmatprep.subr.bf16.mxu1 %v3767_v0 }
  0x90   :  { %v252_v42 = vpop.permute.xlu1 %251 }
  0x94   :  { %v250_v44 = vpop.permute.xlu1 %249 }
  0xef   :  { %v3135_v17 = vpop.f32.mrb[0].mxu0 }
  0xf0   :  { %v137_v18 = vadd.f32 %v3135_v17, %v2976_v16  ;;  %v131_v19 = vpop.f32.mrb[1].mxu0 }
  0xf1   :  { %v132_v20 = vadd.f32 %v2976_v16, %v131_v19 }
  0xf2   :  { %141 = vst [vmem:[#allocation2 + $0x8] sm:$0xff] %v137_v18 }
  0xf3   :  { %140 = vst [vmem:[#allocation2] sm:$0xff] %v132_v20  ;;  %v222_v21 = vpop.f32.mrb[0].mxu1 }
  0xf4   :  { %v3146_v22 = vpop.f32.mrb[1].mxu1  ;;  %v227_v23 = vrot.slane %v222_v21, 1 }
  0xf9   :  { %v150_v24 = vld [vmem:[#allocation2 + $0x8] sm:$0x1]  ;;  %v316_v6 = vld [vmem:[#allocation2 + $0x9] sm:$0x1] }
  0xfa   :  { %v149_v25 = vld [vmem:[#allocation2] sm:$0x1]  ;;  %v231_v26 = vadd.f32 %v227_v23, %v150_v24  ;;  %v315_v63 = vld [vmem:[#allocation2 + $0x1] sm:$0x1] }
  0xfb   :  { %v230_v27 = vadd.f32 %v222_v21, %v149_v25 }
  0xfc   :  { %3460 = vtanh.f32 %v231_v26  ;;  %v2981_v30 = vmul.f32 -1.442695, %v231_v26 }
  0xfd   :  { %3462 = vtanh.f32 %v230_v27  ;;  %v2980_v31 = vmul.f32 -1.442695, %v230_v27 }
  0xfe   :  { %3464 = vpow2.f32 %v2981_v30 }
  0xff   :  { %3466 = vpow2.f32 %v2980_v31 }
 0x106   :  { %v3461_v28 = vpop.eup %3460 }
 0x107   :  { %261 = vrot.lane.b32.xlu0 %v3461_v28, %s3771_s14  ;;  %v3463_v29 = vpop.eup %3462 }
 0x108   :  { %v3465_v32 = vpop.eup %3464 }
 0x109   :  { %v239_v33 = vadd.f32 1.0, %v3465_v32  ;;  %v3467_v34 = vpop.eup %3466 }
 0x10a   :  { %v238_v35 = vadd.f32 1.0, %v3467_v34 }
 0x10b   :  { %259 = vrot.lane.b32.xlu0 %v3463_v29, %s3771_s14  ;;  %3468 = vrcp.f32 %v239_v33 }
 0x10c   :  { %3470 = vrcp.f32 %v238_v35 }
 0x115   :  { %v3469_v36 = vpop.eup %3468 }
 0x116   :  { %v3471_v39 = vpop.eup %3470  ;;  %v256_v43 = vmul.f32 %v3469_v36, %v252_v42 }
 0x117   :  { %v255_v47 = vmul.f32 %v3471_v39, %v250_v44 }
 0x179   :  { %v262_v37 = vpop.permute.xlu0 %261 }
 0x17a   :  { %v266_v38 = vmul.f32 %v3469_v36, %v262_v37 }
 0x17c   :  { %271 = vrot.lane.b32.xlu0 %v266_v38, %s3770_s13 }
 0x17d   :  { %v260_v40 = vpop.permute.xlu0 %259 }
 0x17e   :  { %v265_v41 = vmul.f32 %v3471_v39, %v260_v40 }
 0x180   :  { %269 = vrot.lane.b32.xlu1 %v265_v41, %s3770_s13 }
 0x1ee   :  { %v272_v45 = vpop.permute.xlu0 %271 }
 0x1ef   :  { %v276_v46 = vadd.f32 %v272_v45, %v256_v43 }
 0x1f1   :  { %3472 = vtanh.f32 %v276_v46  ;;  %v291_v52 = vrot.slane %v276_v46, 7 }
 0x1f2   :  { %v270_v48 = vpop.permute.xlu1 %269 }
 0x1f3   :  { %v275_v49 = vadd.f32 %v270_v48, %v255_v47  ;;  %v478_v47 = vld [vmem:[#allocation2 + $0x2] sm:$0x1] }
 0x1f5   :  { %3474 = vtanh.f32 %v275_v49  ;;  %v293_v53 = vsel %vm292_vm4, %v291_v52, %v275_v49  ;;  %v479_v52 = vld [vmem:[#allocation2 + $0xa] sm:$0x1] }
 0x1fb   :  { %v3473_v50 = vpop.eup %3472 }
 0x1fc   :  { %283 = vrot.lane.b32.xlu0 %v3473_v50, %s3771_s14 }
 0x1ff   :  { %v3475_v51 = vpop.eup %3474 }
 0x200   :  { %281 = vrot.lane.b32.xlu1 %v3475_v51, %s3771_s14 }
 0x204   :  { %294 = vrot.lane.b32.xlu1 %v293_v53, %s3772_s3 }
 0x26e   :  { %v284_v54 = vpop.permute.xlu0 %283 }
 0x26f   :  { %v3901_v55 = vmul.f32 %v3469_v36, %v284_v54 }
 0x271   :  { %v300_v57 = vrot.slane %v3901_v55, 7 }
 0x272   :  { %v282_v56 = vpop.permute.xlu1 %281 }
 0x273   :  { %v3904_v58 = vmul.f32 %v3471_v39, %v282_v56 }
 0x275   :  { %v301_v59 = vsel %vm292_vm4, %v300_v57, %v3904_v58 }
 0x276   :  { %302 = vrot.lane.b32.xlu0 %v301_v59, %s3770_s13  ;;  %v295_v60 = vpop.permute.xlu1 %294 }
 0x277   :  { %297 = vst.msk [vmem:[#allocation5] sm:$0x3] %vm142_vm1, %v295_v60 }
 0x27e   :  { %v411_v11 = vld [vmem:[#allocation5] sm:$0x3] }
 0x27f   :  { %v413_v12 = vrot.slane %v411_v11, 1 }
 0x2e8   :  { %v303_v61 = vpop.permute.xlu0 %302 }
 0x2e9   :  { %305 = vst.msk [vmem:[#allocation4] sm:$0x3] %vm142_vm1, %v303_v61 }
 0x2f0   :  { %v317_v62 = vld [vmem:[#allocation4] sm:$0x3] }
 0x2f1   :  { %3156 = vmatmul.mubr.msk.f32.vlgmr.msra.gmra.mrb[2].mxu0 %vm152_vm3, %v317_v62 }
 0x2f2   :  { %3358 = vmatpush3.bf16.msra.mxu0 %v3856_v8  ;;  %3177 = vmatprep.mubr.msk.f32.mxu0 %vm3768_vm0, %v3769_v1 }
 0x2f3   :  { %3359 = vmatprep.subr.bf16.mxu0 %v3767_v0 }
 0x2f6   :  { %3361 = vmatpush3.bf16.msra.mxu0 %v3868_v13 }
 0x2f7   :  { %3368 = vmatprep.subr.bf16.mxu0 %v3767_v0 }
 0x3c4   :  { %v387_v2 = vpop.f32.mrb[2].mxu0 }
 0x3c5   :  { %v392_v3 = vrot.slane %v387_v2, 1  ;;  %v395_v4 = vadd.f32 %v387_v2, %v315_v63  ;;  %v3157_v5 = vpop.f32.mrb[3].mxu0 }
 0x3c7   :  { %v396_v7 = vadd.f32 %v392_v3, %v316_v6  ;;  %3476 = vtanh.f32 %v395_v4  ;;  %v2983_v14 = vmul.f32 -1.442695, %v395_v4 }
 0x3c9   :  { %3478 = vtanh.f32 %v396_v7  ;;  %v2984_v15 = vmul.f32 -1.442695, %v396_v7 }
 0x3ca   :  { %3480 = vpow2.f32 %v2983_v14 }
 0x3cb   :  { %3482 = vpow2.f32 %v2984_v15 }
 0x3d1   :  { %v3477_v9 = vpop.eup %3476 }
 0x3d2   :  { %424 = vrot.lane.b32.xlu1 %v3477_v9, %s3771_s14 }
 0x3d3   :  { %v3479_v10 = vpop.eup %3478 }
 0x3d4   :  { %426 = vrot.lane.b32.xlu0 %v3479_v10, %s3771_s14  ;;  %v3481_v16 = vpop.eup %3480 }
 0x3d5   :  { %v3483_v17 = vpop.eup %3482  ;;  %v403_v18 = vadd.f32 1.0, %v3481_v16 }
 0x3d6   :  { %414 = vrot.lane.b32.xlu1 %v411_v11, %s3770_s13  ;;  %v404_v19 = vadd.f32 1.0, %v3483_v17 }
 0x3d7   :  { %3484 = vrcp.f32 %v403_v18 }
 0x3d8   :  { %416 = vrot.lane.b32.xlu0 %v413_v12, %s3770_s13  ;;  %3486 = vrcp.f32 %v404_v19 }
 0x3e1   :  { %v3485_v20 = vpop.eup %3484 }
 0x3e2   :  { %v3487_v23 = vpop.eup %3486 }
 0x444   :  { %v425_v21 = vpop.permute.xlu1 %424 }
 0x445   :  { %v430_v22 = vmul.f32 %v3485_v20, %v425_v21 }
 0x446   :  { %v427_v24 = vpop.permute.xlu0 %426 }
 0x447   :  { %434 = vrot.lane.b32.xlu1 %v430_v22, %s3770_s13  ;;  %v431_v25 = vmul.f32 %v3487_v23, %v427_v24 }
 0x448   :  { %v415_v26 = vpop.permute.xlu1 %414 }
 0x449   :  { %436 = vrot.lane.b32.xlu0 %v431_v25, %s3770_s13  ;;  %v420_v27 = vmul.f32 %v3485_v20, %v415_v26 }
 0x44a   :  { %v417_v28 = vpop.permute.xlu0 %416 }
 0x44b   :  { %v421_v31 = vmul.f32 %v3487_v23, %v417_v28 }
 0x4b9   :  { %v435_v29 = vpop.permute.xlu1 %434 }
 0x4ba   :  { %v440_v30 = vadd.f32 %v435_v29, %v420_v27 }
 0x4bb   :  { %v437_v32 = vpop.permute.xlu0 %436 }
 0x4bc   :  { %3488 = vtanh.f32 %v440_v30  ;;  %v441_v33 = vadd.f32 %v437_v32, %v421_v31 }
 0x4be   :  { %3490 = vtanh.f32 %v441_v33  ;;  %v456_v35 = vrot.slane %v441_v33, 7  ;;  %v641_v33 = vld [vmem:[#allocation2 + $0x3] sm:$0x1] }
 0x4c0   :  { %v457_v37 = vsel %vm292_vm4, %v456_v35, %v440_v30 }
 0x4c6   :  { %v3489_v34 = vpop.eup %3488 }
 0x4c7   :  { %446 = vrot.lane.b32.xlu1 %v3489_v34, %s3771_s14 }
 0x4c8   :  { %v3491_v36 = vpop.eup %3490 }
 0x4c9   :  { %448 = vrot.lane.b32.xlu0 %v3491_v36, %s3771_s14 }
 0x4cb   :  { %458 = vrot.lane.b32.xlu1 %v457_v37, %s3772_s3 }
 0x539   :  { %v447_v38 = vpop.permute.xlu1 %446 }
 0x53a   :  { %v3931_v42 = vmul.f32 %v3485_v20, %v447_v38  ;;  %v642_v38 = vld [vmem:[#allocation2 + $0xb] sm:$0x1] }
 0x53b   :  { %v449_v39 = vpop.permute.xlu0 %448 }
 0x53c   :  { %v3928_v40 = vmul.f32 %v3487_v23, %v449_v39 }
 0x53d   :  { %v459_v41 = vpop.permute.xlu1 %458 }
 0x53e   :  { %461 = vst.msk [vmem:[#allocation5] sm:$0x3] %vm142_vm1, %v459_v41  ;;  %v464_v43 = vrot.slane %v3928_v40, 7 }
 0x540   :  { %v465_v44 = vsel %vm292_vm4, %v464_v43, %v3931_v42 }
 0x541   :  { %466 = vrot.lane.b32.xlu0 %v465_v44, %s3770_s13 }
 0x545   :  { %v574_v57 = vld [vmem:[#allocation5] sm:$0x3] }
 0x546   :  { %v576_v59 = vrot.slane %v574_v57, 1 }
 0x5b3   :  { %v467_v45 = vpop.permute.xlu0 %466 }
 0x5b4   :  { %469 = vst.msk [vmem:[#allocation4] sm:$0x3] %vm142_vm1, %v467_v45 }
 0x5bb   :  { %v480_v46 = vld [vmem:[#allocation4] sm:$0x3] }
 0x5bc   :  { %3167 = vmatmul.mubr.msk.f32.vlgmr.msra.gmra.mrb[2].mxu1 %vm152_vm3, %v480_v46 }
 0x5bd   :  { %3364 = vmatpush3.bf16.msra.mxu1 %v3856_v8  ;;  %3188 = vmatprep.mubr.msk.f32.mxu1 %vm3768_vm0, %v3769_v1 }
 0x5be   :  { %3365 = vmatprep.subr.bf16.mxu1 %v3767_v0 }
 0x5c1   :  { %3367 = vmatpush3.bf16.msra.mxu1 %v3868_v13 }
 0x5c2   :  { %3374 = vmatprep.subr.bf16.mxu1 %v3767_v0 }
 0x68f   :  { %v550_v48 = vpop.f32.mrb[2].mxu1 }
 0x690   :  { %v555_v49 = vrot.slane %v550_v48, 1  ;;  %v558_v50 = vadd.f32 %v550_v48, %v478_v47  ;;  %v3168_v51 = vpop.f32.mrb[3].mxu1 }
 0x692   :  { %v559_v53 = vadd.f32 %v555_v49, %v479_v52  ;;  %3492 = vtanh.f32 %v558_v50  ;;  %v2986_v60 = vmul.f32 -1.442695, %v558_v50 }
 0x694   :  { %3494 = vtanh.f32 %v559_v53  ;;  %v2987_v61 = vmul.f32 -1.442695, %v559_v53 }
 0x695   :  { %3496 = vpow2.f32 %v2986_v60 }
 0x696   :  { %3498 = vpow2.f32 %v2987_v61 }
 0x69c   :  { %v3493_v54 = vpop.eup %3492 }
 0x69d   :  { %587 = vrot.lane.b32.xlu1 %v3493_v54, %s3771_s14 }
 0x69e   :  { %v3495_v56 = vpop.eup %3494 }
 0x69f   :  { %589 = vrot.lane.b32.xlu0 %v3495_v56, %s3771_s14  ;;  %v3497_v62 = vpop.eup %3496 }
 0x6a0   :  { %v3499_v63 = vpop.eup %3498  ;;  %v566_v2 = vadd.f32 1.0, %v3497_v62 }
 0x6a1   :  { %577 = vrot.lane.b32.xlu1 %v574_v57, %s3770_s13  ;;  %v567_v3 = vadd.f32 1.0, %v3499_v63 }
 0x6a2   :  { %3500 = vrcp.f32 %v566_v2 }
 0x6a3   :  { %579 = vrot.lane.b32.xlu0 %v576_v59, %s3770_s13  ;;  %3502 = vrcp.f32 %v567_v3 }
 0x6ac   :  { %v3501_v4 = vpop.eup %3500 }
 0x6ad   :  { %v3503_v7 = vpop.eup %3502 }
 0x70f   :  { %v588_v5 = vpop.permute.xlu1 %587 }
 0x710   :  { %v593_v6 = vmul.f32 %v3501_v4, %v588_v5 }
 0x711   :  { %v590_v9 = vpop.permute.xlu0 %589 }
 0x712   :  { %597 = vrot.lane.b32.xlu1 %v593_v6, %s3770_s13  ;;  %v594_v10 = vmul.f32 %v3503_v7, %v590_v9 }
 0x713   :  { %v578_v11 = vpop.permute.xlu1 %577 }
 0x714   :  { %599 = vrot.lane.b32.xlu0 %v594_v10, %s3770_s13  ;;  %v583_v12 = vmul.f32 %v3501_v4, %v578_v11 }
 0x715   :  { %v580_v14 = vpop.permute.xlu0 %579 }
 0x716   :  { %v584_v17 = vmul.f32 %v3503_v7, %v580_v14 }
 0x784   :  { %v598_v15 = vpop.permute.xlu1 %597 }
 0x785   :  { %v603_v16 = vadd.f32 %v598_v15, %v583_v12 }
 0x786   :  { %v600_v18 = vpop.permute.xlu0 %599 }
 0x787   :  { %3504 = vtanh.f32 %v603_v16  ;;  %v604_v19 = vadd.f32 %v600_v18, %v584_v17 }
 0x789   :  { %3506 = vtanh.f32 %v604_v19  ;;  %v619_v21 = vrot.slane %v604_v19, 7 }
 0x78b   :  { %v620_v23 = vsel %vm292_vm4, %v619_v21, %v603_v16  ;;  %v804_v21 = vld [vmem:[#allocation2 + $0x4] sm:$0x1] }
 0x791   :  { %v3505_v20 = vpop.eup %3504 }
 0x792   :  { %609 = vrot.lane.b32.xlu1 %v3505_v20, %s3771_s14 }
 0x793   :  { %v3507_v22 = vpop.eup %3506 }
 0x794   :  { %611 = vrot.lane.b32.xlu0 %v3507_v22, %s3771_s14 }
 0x796   :  { %621 = vrot.lane.b32.xlu1 %v620_v23, %s3772_s3 }
 0x804   :  { %v610_v24 = vpop.permute.xlu1 %609 }
 0x805   :  { %v3958_v28 = vmul.f32 %v3501_v4, %v610_v24 }
 0x806   :  { %v612_v25 = vpop.permute.xlu0 %611 }
 0x807   :  { %v3955_v26 = vmul.f32 %v3503_v7, %v612_v25 }
 0x808   :  { %v622_v27 = vpop.permute.xlu1 %621 }
 0x809   :  { %624 = vst.msk [vmem:[#allocation5] sm:$0x3] %vm142_vm1, %v622_v27  ;;  %v627_v29 = vrot.slane %v3955_v26, 7  ;;  %v805_v27 = vld [vmem:[#allocation2 + $0xc] sm:$0x1] }
 0x80b   :  { %v628_v30 = vsel %vm292_vm4, %v627_v29, %v3958_v28 }
 0x80c   :  { %629 = vrot.lane.b32.xlu0 %v628_v30, %s3770_s13 }
 0x810   :  { %v737_v44 = vld [vmem:[#allocation5] sm:$0x3] }
 0x811   :  { %v739_v45 = vrot.slane %v737_v44, 1 }
 0x87e   :  { %v630_v31 = vpop.permute.xlu0 %629 }
 0x87f   :  { %632 = vst.msk [vmem:[#allocation4] sm:$0x3] %vm142_vm1, %v630_v31 }
 0x886   :  { %v643_v32 = vld [vmem:[#allocation4] sm:$0x3] }
 0x887   :  { %3178 = vmatmul.mubr.msk.f32.vlgmr.msra.gmra.mrb[4].mxu0 %vm152_vm3, %v643_v32 }
 0x888   :  { %3370 = vmatpush3.bf16.msra.mxu0 %v3856_v8  ;;  %3199 = vmatprep.mubr.msk.f32.mxu0 %vm3768_vm0, %v3769_v1 }
 0x889   :  { %3371 = vmatprep.subr.bf16.mxu0 %v3767_v0 }
 0x88c   :  { %3373 = vmatpush3.bf16.msra.mxu0 %v3868_v13 }
 0x88d   :  { %3380 = vmatprep.subr.bf16.mxu0 %v3767_v0 }
 0x95a   :  { %v713_v34 = vpop.f32.mrb[4].mxu0 }
 0x95b   :  { %v718_v35 = vrot.slane %v713_v34, 1  ;;  %v721_v36 = vadd.f32 %v713_v34, %v641_v33  ;;  %v3179_v37 = vpop.f32.mrb[5].mxu0 }
 0x95d   :  { %v722_v39 = vadd.f32 %v718_v35, %v642_v38  ;;  %3508 = vtanh.f32 %v721_v36  ;;  %v2989_v46 = vmul.f32 -1.442695, %v721_v36 }
 0x95f   :  { %3510 = vtanh.f32 %v722_v39  ;;  %v2990_v47 = vmul.f32 -1.442695, %v722_v39 }
 0x960   :  { %3512 = vpow2.f32 %v2989_v46 }
 0x961   :  { %3514 = vpow2.f32 %v2990_v47 }
 0x967   :  { %v3509_v41 = vpop.eup %3508 }
 0x968   :  { %750 = vrot.lane.b32.xlu1 %v3509_v41, %s3771_s14 }
 0x969   :  { %v3511_v43 = vpop.eup %3510 }
 0x96a   :  { %752 = vrot.lane.b32.xlu0 %v3511_v43, %s3771_s14  ;;  %v3513_v48 = vpop.eup %3512 }
 0x96b   :  { %v3515_v49 = vpop.eup %3514  ;;  %v729_v50 = vadd.f32 1.0, %v3513_v48 }
 0x96c   :  { %740 = vrot.lane.b32.xlu1 %v737_v44, %s3770_s13  ;;  %v730_v51 = vadd.f32 1.0, %v3515_v49 }
 0x96d   :  { %3516 = vrcp.f32 %v729_v50 }
 0x96e   :  { %742 = vrot.lane.b32.xlu0 %v739_v45, %s3770_s13  ;;  %3518 = vrcp.f32 %v730_v51 }
 0x977   :  { %v3517_v52 = vpop.eup %3516 }
 0x978   :  { %v3519_v56 = vpop.eup %3518 }
 0x9da   :  { %v751_v53 = vpop.permute.xlu1 %750 }
 0x9db   :  { %v756_v54 = vmul.f32 %v3517_v52, %v751_v53 }
 0x9dc   :  { %v753_v57 = vpop.permute.xlu0 %752 }
 0x9dd   :  { %760 = vrot.lane.b32.xlu1 %v756_v54, %s3770_s13  ;;  %v757_v59 = vmul.f32 %v3519_v56, %v753_v57 }
 0x9de   :  { %v741_v60 = vpop.permute.xlu1 %740 }
 0x9df   :  { %762 = vrot.lane.b32.xlu0 %v757_v59, %s3770_s13  ;;  %v746_v61 = vmul.f32 %v3517_v52, %v741_v60 }
 0x9e0   :  { %v743_v62 = vpop.permute.xlu0 %742 }
 0x9e1   :  { %v747_v3 = vmul.f32 %v3519_v56, %v743_v62 }
 0xa4f   :  { %v761_v63 = vpop.permute.xlu1 %760 }
 0xa50   :  { %v766_v2 = vadd.f32 %v761_v63, %v746_v61 }
 0xa51   :  { %v763_v4 = vpop.permute.xlu0 %762 }
 0xa52   :  { %3520 = vtanh.f32 %v766_v2  ;;  %v767_v5 = vadd.f32 %v763_v4, %v747_v3 }
 0xa54   :  { %3522 = vtanh.f32 %v767_v5  ;;  %v782_v7 = vrot.slane %v767_v5, 7 }
 0xa56   :  { %v783_v10 = vsel %vm292_vm4, %v782_v7, %v766_v2 }
 0xa5c   :  { %v3521_v6 = vpop.eup %3520 }
 0xa5d   :  { %772 = vrot.lane.b32.xlu1 %v3521_v6, %s3771_s14 }
 0xa5e   :  { %v3523_v9 = vpop.eup %3522 }
 0xa5f   :  { %774 = vrot.lane.b32.xlu0 %v3523_v9, %s3771_s14 }
 0xa61   :  { %784 = vrot.lane.b32.xlu1 %v783_v10, %s3772_s3  ;;  %v967_v10 = vld [vmem:[#allocation2 + $0x5] sm:$0x1] }
 0xacf   :  { %v773_v11 = vpop.permute.xlu1 %772 }
 0xad0   :  { %v3985_v16 = vmul.f32 %v3517_v52, %v773_v11 }
 0xad1   :  { %v775_v12 = vpop.permute.xlu0 %774 }
 0xad2   :  { %v3982_v14 = vmul.f32 %v3519_v56, %v775_v12 }
 0xad3   :  { %v785_v15 = vpop.permute.xlu1 %784 }
 0xad4   :  { %787 = vst.msk [vmem:[#allocation5] sm:$0x3] %vm142_vm1, %v785_v15  ;;  %v790_v17 = vrot.slane %v3982_v14, 7 }
 0xad6   :  { %v791_v18 = vsel %vm292_vm4, %v790_v17, %v3985_v16 }
 0xad7   :  { %792 = vrot.lane.b32.xlu0 %v791_v18, %s3770_s13  ;;  %v968_v18 = vld [vmem:[#allocation2 + $0xd] sm:$0x1] }
 0xadb   :  { %v900_v32 = vld [vmem:[#allocation5] sm:$0x3] }
 0xadc   :  { %v902_v33 = vrot.slane %v900_v32, 1 }
 0xb49   :  { %v793_v19 = vpop.permute.xlu0 %792 }
 0xb4a   :  { %795 = vst.msk [vmem:[#allocation4] sm:$0x3] %vm142_vm1, %v793_v19 }
 0xb51   :  { %v806_v20 = vld [vmem:[#allocation4] sm:$0x3] }
 0xb52   :  { %3189 = vmatmul.mubr.msk.f32.vlgmr.msra.gmra.mrb[4].mxu1 %vm152_vm3, %v806_v20 }
 0xb53   :  { %3376 = vmatpush3.bf16.msra.mxu1 %v3856_v8  ;;  %3210 = vmatprep.mubr.msk.f32.mxu1 %vm3768_vm0, %v3769_v1 }
 0xb54   :  { %3377 = vmatprep.subr.bf16.mxu1 %v3767_v0 }
 0xb57   :  { %3379 = vmatpush3.bf16.msra.mxu1 %v3868_v13 }
 0xc25   :  { %v876_v22 = vpop.f32.mrb[4].mxu1 }
 0xc26   :  { %v881_v23 = vrot.slane %v876_v22, 1  ;;  %v884_v24 = vadd.f32 %v876_v22, %v804_v21  ;;  %v3190_v25 = vpop.f32.mrb[5].mxu1 }
 0xc28   :  { %v885_v29 = vadd.f32 %v881_v23, %v805_v27  ;;  %3524 = vtanh.f32 %v884_v24  ;;  %v2992_v34 = vmul.f32 -1.442695, %v884_v24 }
 0xc2a   :  { %3526 = vtanh.f32 %v885_v29  ;;  %v2993_v35 = vmul.f32 -1.442695, %v885_v29 }
 0xc2b   :  { %3528 = vpow2.f32 %v2992_v34 }
 0xc2c   :  { %3530 = vpow2.f32 %v2993_v35 }
 0xc32   :  { %v3525_v30 = vpop.eup %3524 }
 0xc33   :  { %913 = vrot.lane.b32.xlu1 %v3525_v30, %s3771_s14 }
 0xc34   :  { %v3527_v31 = vpop.eup %3526 }
 0xc35   :  { %915 = vrot.lane.b32.xlu0 %v3527_v31, %s3771_s14  ;;  %v3529_v36 = vpop.eup %3528 }
 0xc36   :  { %v3531_v37 = vpop.eup %3530  ;;  %v892_v38 = vadd.f32 1.0, %v3529_v36 }
 0xc37   :  { %903 = vrot.lane.b32.xlu1 %v900_v32, %s3770_s13  ;;  %v893_v39 = vadd.f32 1.0, %v3531_v37 }
 0xc38   :  { %3532 = vrcp.f32 %v892_v38 }
 0xc39   :  { %905 = vrot.lane.b32.xlu0 %v902_v33, %s3770_s13  ;;  %3534 = vrcp.f32 %v893_v39 }
 0xc42   :  { %v3533_v41 = vpop.eup %3532 }
 0xc43   :  { %v3535_v45 = vpop.eup %3534 }
 0xca5   :  { %v914_v43 = vpop.permute.xlu1 %913 }
 0xca6   :  { %v919_v44 = vmul.f32 %v3533_v41, %v914_v43 }
 0xca7   :  { %v916_v46 = vpop.permute.xlu0 %915 }
 0xca8   :  { %923 = vrot.lane.b32.xlu1 %v919_v44, %s3770_s13  ;;  %v920_v47 = vmul.f32 %v3535_v45, %v916_v46 }
 0xca9   :  { %v904_v48 = vpop.permute.xlu1 %903 }
 0xcaa   :  { %925 = vrot.lane.b32.xlu0 %v920_v47, %s3770_s13  ;;  %v909_v49 = vmul.f32 %v3533_v41, %v904_v48 }
 0xcab   :  { %v906_v50 = vpop.permute.xlu0 %905 }
 0xcac   :  { %v910_v53 = vmul.f32 %v3535_v45, %v906_v50 }
 0xd1a   :  { %v924_v51 = vpop.permute.xlu1 %923 }
 0xd1b   :  { %v929_v52 = vadd.f32 %v924_v51, %v909_v49 }
 0xd1c   :  { %v926_v54 = vpop.permute.xlu0 %925 }
 0xd1d   :  { %3536 = vtanh.f32 %v929_v52  ;;  %v930_v56 = vadd.f32 %v926_v54, %v910_v53 }
 0xd1f   :  { %3538 = vtanh.f32 %v930_v56  ;;  %v945_v59 = vrot.slane %v930_v56, 7 }
 0xd21   :  { %v946_v61 = vsel %vm292_vm4, %v945_v59, %v929_v52 }
 0xd27   :  { %v3537_v57 = vpop.eup %3536 }
 0xd28   :  { %935 = vrot.lane.b32.xlu1 %v3537_v57, %s3771_s14 }
 0xd29   :  { %v3539_v60 = vpop.eup %3538 }
 0xd2a   :  { %937 = vrot.lane.b32.xlu0 %v3539_v60, %s3771_s14 }
 0xd2c   :  { %947 = vrot.lane.b32.xlu1 %v946_v61, %s3772_s3  ;;  %v1130_v61 = vld [vmem:[#allocation2 + $0x6] sm:$0x1] }
 0xd9a   :  { %v936_v62 = vpop.permute.xlu1 %935 }
 0xd9b   :  { %v4011_v4 = vmul.f32 %v3533_v41, %v936_v62 }
 0xd9c   :  { %v938_v63 = vpop.permute.xlu0 %937 }
 0xd9d   :  { %v4008_v2 = vmul.f32 %v3535_v45, %v938_v63 }
 0xd9e   :  { %v948_v3 = vpop.permute.xlu1 %947 }
 0xd9f   :  { %950 = vst.msk [vmem:[#allocation5] sm:$0x3] %vm142_vm1, %v948_v3  ;;  %v953_v5 = vrot.slane %v4008_v2, 7 }
 0xda1   :  { %v954_v6 = vsel %vm292_vm4, %v953_v5, %v4011_v4 }
 0xda2   :  { %955 = vrot.lane.b32.xlu0 %v954_v6, %s3770_s13  ;;  %v1131_v6 = vld [vmem:[#allocation2 + $0xe] sm:$0x1] }
 0xda6   :  { %v1063_v21 = vld [vmem:[#allocation5] sm:$0x3] }
 0xe14   :  { %v956_v7 = vpop.permute.xlu0 %955 }
 0xe15   :  { %958 = vst.msk [vmem:[#allocation4] sm:$0x3] %vm142_vm1, %v956_v7 }
 0xe1c   :  { %v969_v9 = vld [vmem:[#allocation4] sm:$0x3] }
 0xe1d   :  { %3200 = vmatmul.mubr.msk.f32.vlgmr.msra.gmra.mrb[6].mxu0 %vm152_vm3, %v969_v9 }
 0xe1e   :  { %3382 = vmatpush3.bf16.msra.mxu0 %v3856_v8  ;;  %3221 = vmatprep.mubr.msk.f32.mxu0 %vm3768_vm0, %v3769_v1 }
 0xe1f   :  { %3383 = vmatprep.subr.bf16.mxu0 %v3767_v0 }
 0xe22   :  { %3385 = vmatpush3.bf16.msra.mxu0 %v3868_v13  ;;  %v1065_v13 = vrot.slane %v1063_v21, 1 }
 0xe23   :  { %3394 = vmatprep.subr.bf16.mxu0 %v3767_v0 }
 0xef0   :  { %v1039_v11 = vpop.f32.mrb[6].mxu0 }
 0xef1   :  { %v1044_v12 = vrot.slane %v1039_v11, 1  ;;  %v1047_v15 = vadd.f32 %v1039_v11, %v967_v10  ;;  %v3201_v17 = vpop.f32.mrb[7].mxu0 }
 0xef3   :  { %v1048_v19 = vadd.f32 %v1044_v12, %v968_v18  ;;  %3540 = vtanh.f32 %v1047_v15  ;;  %v2995_v22 = vmul.f32 -1.442695, %v1047_v15 }
 0xef5   :  { %3542 = vtanh.f32 %v1048_v19  ;;  %v2996_v23 = vmul.f32 -1.442695, %v1048_v19 }
 0xef6   :  { %3544 = vpow2.f32 %v2995_v22 }
 0xef7   :  { %3546 = vpow2.f32 %v2996_v23 }
 0xefd   :  { %v3541_v20 = vpop.eup %3540 }
 0xefe   :  { %1076 = vrot.lane.b32.xlu1 %v3541_v20, %s3771_s14 }
 0xeff   :  { %v3543_v8 = vpop.eup %3542 }
 0xf00   :  { %1078 = vrot.lane.b32.xlu0 %v3543_v8, %s3771_s14  ;;  %v3545_v24 = vpop.eup %3544 }
 0xf01   :  { %v3547_v25 = vpop.eup %3546  ;;  %v1055_v27 = vadd.f32 1.0, %v3545_v24 }
 0xf02   :  { %1066 = vrot.lane.b32.xlu1 %v1063_v21, %s3770_s13  ;;  %v1056_v29 = vadd.f32 1.0, %v3547_v25 }
 0xf03   :  { %3548 = vrcp.f32 %v1055_v27 }
 0xf04   :  { %1068 = vrot.lane.b32.xlu0 %v1065_v13, %s3770_s13  ;;  %3550 = vrcp.f32 %v1056_v29 }
 0xf0d   :  { %v3549_v30 = vpop.eup %3548 }
 0xf0e   :  { %v3551_v33 = vpop.eup %3550 }
 0xf70   :  { %v1077_v31 = vpop.permute.xlu1 %1076 }
 0xf71   :  { %v1082_v32 = vmul.f32 %v3549_v30, %v1077_v31 }
 0xf72   :  { %v1079_v34 = vpop.permute.xlu0 %1078 }
 0xf73   :  { %1086 = vrot.lane.b32.xlu1 %v1082_v32, %s3770_s13  ;;  %v1083_v35 = vmul.f32 %v3551_v33, %v1079_v34 }
 0xf74   :  { %v1067_v36 = vpop.permute.xlu1 %1066 }
 0xf75   :  { %1088 = vrot.lane.b32.xlu0 %v1083_v35, %s3770_s13  ;;  %v1072_v37 = vmul.f32 %v3549_v30, %v1067_v36 }
 0xf76   :  { %v1069_v38 = vpop.permute.xlu0 %1068 }
 0xf77   :  { %v1073_v43 = vmul.f32 %v3551_v33, %v1069_v38 }
 0xfe5   :  { %v1087_v39 = vpop.permute.xlu1 %1086 }
 0xfe6   :  { %v1092_v41 = vadd.f32 %v1087_v39, %v1072_v37 }
 0xfe7   :  { %v1089_v44 = vpop.permute.xlu0 %1088 }
 0xfe8   :  { %3552 = vtanh.f32 %v1092_v41  ;;  %v1093_v45 = vadd.f32 %v1089_v44, %v1073_v43 }
 0xfea   :  { %3554 = vtanh.f32 %v1093_v45  ;;  %v1108_v47 = vrot.slane %v1093_v45, 7 }
 0xfec   :  { %v1109_v49 = vsel %vm292_vm4, %v1108_v47, %v1092_v41 }
 0xff2   :  { %v3553_v46 = vpop.eup %3552 }
 0xff3   :  { %1098 = vrot.lane.b32.xlu1 %v3553_v46, %s3771_s14 }
 0xff4   :  { %v3555_v48 = vpop.eup %3554 }
 0xff5   :  { %1100 = vrot.lane.b32.xlu0 %v3555_v48, %s3771_s14 }
 0xff7   :  { %1110 = vrot.lane.b32.xlu1 %v1109_v49, %s3772_s3 }
0x1065   :  { %v1099_v50 = vpop.permute.xlu1 %1098 }
0x1066   :  { %v4038_v54 = vmul.f32 %v3549_v30, %v1099_v50 }
0x1067   :  { %v1101_v51 = vpop.permute.xlu0 %1100 }
0x1068   :  { %v4035_v52 = vmul.f32 %v3551_v33, %v1101_v51  ;;  %v1293_v51 = vld [vmem:[#allocation2 + $0x7] sm:$0x1] }
0x1069   :  { %v1111_v53 = vpop.permute.xlu1 %1110 }
0x106a   :  { %1113 = vst.msk [vmem:[#allocation5] sm:$0x3] %vm142_vm1, %v1111_v53  ;;  %v1116_v56 = vrot.slane %v4035_v52, 7 }
0x106c   :  { %v1117_v57 = vsel %vm292_vm4, %v1116_v56, %v4038_v54 }
0x106d   :  { %1118 = vrot.lane.b32.xlu0 %v1117_v57, %s3770_s13 }
0x1071   :  { %v1226_v11 = vld [vmem:[#allocation5] sm:$0x3] }
0x1072   :  { %v1228_v12 = vrot.slane %v1226_v11, 1 }
0x10df   :  { %v1119_v59 = vpop.permute.xlu0 %1118 }
0x10e0   :  { %1121 = vst.msk [vmem:[#allocation4] sm:$0x3] %vm142_vm1, %v1119_v59 }
0x10e7   :  { %v1132_v60 = vld [vmem:[#allocation4] sm:$0x3] }
0x10e8   :  { %3211 = vmatmul.mubr.msk.f32.vlgmr.msra.gmra.mrb[6].mxu1 %vm152_vm3, %v1132_v60  ;;  %v1294_v60 = vld [vmem:[#allocation2 + $0xf] sm:$0x1] }
0x11bb   :  { %v1202_v62 = vpop.f32.mrb[6].mxu1 }
0x11bc   :  { %v1207_v63 = vrot.slane %v1202_v62, 1  ;;  %v1210_v3 = vadd.f32 %v1202_v62, %v1130_v61  ;;  %v3212_v5 = vpop.f32.mrb[7].mxu1 }
0x11be   :  { %v1211_v7 = vadd.f32 %v1207_v63, %v1131_v6  ;;  %3556 = vtanh.f32 %v1210_v3  ;;  %v2998_v15 = vmul.f32 -1.442695, %v1210_v3 }
0x11c0   :  { %3558 = vtanh.f32 %v1211_v7  ;;  %v2999_v17 = vmul.f32 -1.442695, %v1211_v7 }
0x11c1   :  { %3560 = vpow2.f32 %v2998_v15 }
0x11c2   :  { %3562 = vpow2.f32 %v2999_v17 }
0x11c8   :  { %v3557_v9 = vpop.eup %3556 }
0x11c9   :  { %1239 = vrot.lane.b32.xlu1 %v3557_v9, %s3771_s14 }
0x11ca   :  { %v3559_v10 = vpop.eup %3558 }
0x11cb   :  { %1241 = vrot.lane.b32.xlu0 %v3559_v10, %s3771_s14  ;;  %v3561_v18 = vpop.eup %3560 }
0x11cc   :  { %v3563_v19 = vpop.eup %3562  ;;  %v1218_v20 = vadd.f32 1.0, %v3561_v18 }
0x11cd   :  { %1229 = vrot.lane.b32.xlu1 %v1226_v11, %s3770_s13  ;;  %v1219_v8 = vadd.f32 1.0, %v3563_v19 }
0x11ce   :  { %3564 = vrcp.f32 %v1218_v20 }
0x11cf   :  { %1231 = vrot.lane.b32.xlu0 %v1228_v12, %s3770_s13  ;;  %3566 = vrcp.f32 %v1219_v8 }
0x11d8   :  { %v3565_v21 = vpop.eup %3564 }
0x11d9   :  { %v3567_v23 = vpop.eup %3566 }
0x123b   :  { %v1240_v13 = vpop.permute.xlu1 %1239 }
0x123c   :  { %v1245_v22 = vmul.f32 %v3565_v21, %v1240_v13 }
0x123d   :  { %v1242_v24 = vpop.permute.xlu0 %1241 }
0x123e   :  { %1249 = vrot.lane.b32.xlu1 %v1245_v22, %s3770_s13  ;;  %v1246_v25 = vmul.f32 %v3567_v23, %v1242_v24 }
0x123f   :  { %v1230_v27 = vpop.permute.xlu1 %1229 }
0x1240   :  { %1251 = vrot.lane.b32.xlu0 %v1246_v25, %s3770_s13  ;;  %v1235_v29 = vmul.f32 %v3565_v21, %v1230_v27 }
0x1241   :  { %v1232_v30 = vpop.permute.xlu0 %1231 }
0x1242   :  { %v1236_v33 = vmul.f32 %v3567_v23, %v1232_v30 }
0x12b0   :  { %v1250_v31 = vpop.permute.xlu1 %1249 }
0x12b1   :  { %v1255_v32 = vadd.f32 %v1250_v31, %v1235_v29 }
0x12b2   :  { %v1252_v34 = vpop.permute.xlu0 %1251 }
0x12b3   :  { %3568 = vtanh.f32 %v1255_v32  ;;  %v1256_v35 = vadd.f32 %v1252_v34, %v1236_v33  ;;  %v1557_v34 = vld [vmem:[%s4452_s5 + $0x18] sm:$0xff] }
0x12b5   :  { %3570 = vtanh.f32 %v1256_v35  ;;  %v1271_v37 = vrot.slane %v1256_v35, 7 }
0x12b7   :  { %v1272_v39 = vsel %vm292_vm4, %v1271_v37, %v1255_v32 }
0x12bd   :  { %v3569_v36 = vpop.eup %3568 }
0x12be   :  { %1261 = vrot.lane.b32.xlu1 %v3569_v36, %s3771_s14 }
0x12bf   :  { %v3571_v38 = vpop.eup %3570 }
0x12c0   :  { %1263 = vrot.lane.b32.xlu0 %v3571_v38, %s3771_s14 }
0x12c2   :  { %1273 = vrot.lane.b32.xlu1 %v1272_v39, %s3772_s3 }
0x1330   :  { %v1262_v41 = vpop.permute.xlu1 %1261 }
0x1331   :  { %v4059_v46 = vmul.f32 %v3565_v21, %v1262_v41 }
0x1332   :  { %v1264_v43 = vpop.permute.xlu0 %1263 }
0x1333   :  { %v4056_v44 = vmul.f32 %v3567_v23, %v1264_v43 }
0x1334   :  { %v1274_v45 = vpop.permute.xlu1 %1273 }
0x1335   :  { %1276 = vst.msk [vmem:[#allocation5] sm:$0x3] %vm142_vm1, %v1274_v45  ;;  %v1279_v47 = vrot.slane %v4056_v44, 7 }
0x1337   :  { %v1280_v48 = vsel %vm292_vm4, %v1279_v47, %v4059_v46 }
0x1338   :  { %1281 = vrot.lane.b32.xlu0 %v1280_v48, %s3770_s13 }
0x133c   :  { %v1389_v3 = vld [vmem:[#allocation5] sm:$0x3] }
0x133d   :  { %v1391_v5 = vrot.slane %v1389_v3, 1 }
0x13aa   :  { %v1282_v49 = vpop.permute.xlu0 %1281 }
0x13ab   :  { %1284 = vst.msk [vmem:[#allocation4] sm:$0x3] %vm142_vm1, %v1282_v49 }
0x13b2   :  { %v1295_v50 = vld [vmem:[#allocation4] sm:$0x3] }
0x13b3   :  { %3222 = vmatmul.mubr.msk.f32.vlgmr.msra.gmra.mrb[8].mxu0 %vm152_vm3, %v1295_v50 }
0x13b4   :  { %3243 = vmatprep.mubr.msk.f32.mxu0 %vm3768_vm0, %v3769_v1 }
0x1486   :  { %v1365_v53 = vpop.f32.mrb[8].mxu0 }
0x1487   :  { %v1370_v56 = vrot.slane %v1365_v53, 1  ;;  %v1373_v57 = vadd.f32 %v1365_v53, %v1293_v51  ;;  %v3223_v59 = vpop.f32.mrb[9].mxu0 }
0x1489   :  { %v1374_v61 = vadd.f32 %v1370_v56, %v1294_v60  ;;  %3572 = vtanh.f32 %v1373_v57  ;;  %v3001_v6 = vmul.f32 -1.442695, %v1373_v57 }
0x148b   :  { %3574 = vtanh.f32 %v1374_v61  ;;  %v3002_v7 = vmul.f32 -1.442695, %v1374_v61 }
0x148c   :  { %3576 = vpow2.f32 %v3001_v6 }
0x148d   :  { %3578 = vpow2.f32 %v3002_v7  ;;  %v3003_v7 = vld [vmem:[%s4453_s6] ss:$0 sm:$0xff] }
0x1493   :  { %v3573_v62 = vpop.eup %3572 }
0x1494   :  { %1402 = vrot.lane.b32.xlu0 %v3573_v62, %s3771_s14 }
0x1495   :  { %v3575_v63 = vpop.eup %3574 }
0x1496   :  { %1404 = vrot.lane.b32.xlu1 %v3575_v63, %s3771_s14  ;;  %v3577_v9 = vpop.eup %3576 }
0x1497   :  { %v3579_v10 = vpop.eup %3578  ;;  %v1381_v11 = vadd.f32 1.0, %v3577_v9 }
0x1498   :  { %1392 = vrot.lane.b32.xlu0 %v1389_v3, %s3770_s13  ;;  %v1382_v12 = vadd.f32 1.0, %v3579_v10 }
0x1499   :  { %3580 = vrcp.f32 %v1381_v11 }
0x149a   :  { %1394 = vrot.lane.b32.xlu1 %v1391_v5, %s3770_s13  ;;  %3582 = vrcp.f32 %v1382_v12 }
0x14a3   :  { %v3581_v15 = vpop.eup %3580 }
0x14a4   :  { %v3583_v19 = vpop.eup %3582 }
0x1506   :  { %v1403_v17 = vpop.permute.xlu0 %1402 }
0x1507   :  { %v1408_v18 = vmul.f32 %v3581_v15, %v1403_v17 }
0x1508   :  { %v1405_v20 = vpop.permute.xlu1 %1404 }
0x1509   :  { %1412 = vrot.lane.b32.xlu0 %v1408_v18, %s3770_s13  ;;  %v1409_v8 = vmul.f32 %v3583_v19, %v1405_v20 }
0x150a   :  { %v1393_v21 = vpop.permute.xlu0 %1392 }
0x150b   :  { %1414 = vrot.lane.b32.xlu1 %v1409_v8, %s3770_s13  ;;  %v1398_v13 = vmul.f32 %v3581_v15, %v1393_v21 }
0x150c   :  { %v1395_v22 = vpop.permute.xlu1 %1394 }
0x150d   :  { %v1399_v25 = vmul.f32 %v3583_v19, %v1395_v22 }
0x157b   :  { %v1413_v23 = vpop.permute.xlu0 %1412 }
0x157c   :  { %v1418_v24 = vadd.f32 %v1413_v23, %v1398_v13 }
0x157d   :  { %v1415_v27 = vpop.permute.xlu1 %1414 }
0x157e   :  { %3584 = vtanh.f32 %v1418_v24  ;;  %v1419_v29 = vadd.f32 %v1415_v27, %v1399_v25 }
0x1580   :  { %3586 = vtanh.f32 %v1419_v29  ;;  %v1434_v30 = vrot.slane %v1419_v29, 7 }
0x1582   :  { %v1435_v31 = vsel %vm292_vm4, %v1434_v30, %v1418_v24 }
0x1588   :  { %v3585_v32 = vpop.eup %3584 }
0x1589   :  { %1424 = vrot.lane.b32.xlu0 %v3585_v32, %s3771_s14 }
0x158a   :  { %v3587_v33 = vpop.eup %3586 }
0x158b   :  { %1426 = vrot.lane.b32.xlu1 %v3587_v33, %s3771_s14 }
0x158d   :  { %306 = vrot.lane.b32.xlu0 %v3904_v58, %s3770_s13  ;;  %v1458_v58 = vld [vmem:[%s4451_s4] sm:$0xff] }
0x158f   :  { %470 = vrot.lane.b32.xlu1 %v3931_v42, %s3770_s13  ;;  %v1460_v42 = vld [vmem:[%s4451_s4 + $0x10] sm:$0xff] }
0x1591   :  { %633 = vrot.lane.b32.xlu0 %v3958_v28, %s3770_s13 }
0x1593   :  { %796 = vrot.lane.b32.xlu1 %v3985_v16, %s3770_s13  ;;  %v1554_v16 = vld [vmem:[%s4452_s5] sm:$0xff] }
0x1595   :  { %959 = vrot.lane.b32.xlu0 %v4011_v4, %s3770_s13 }
0x1597   :  { %1122 = vrot.lane.b32.xlu1 %v4038_v54, %s3770_s13  ;;  %v1556_v54 = vld [vmem:[%s4452_s5 + $0x10] sm:$0xff] }
0x1598   :  { %v4135_v36 = vpack.c.bf16 %v1557_v34, %v1556_v54 }
0x1599   :  { %1285 = vrot.lane.b32.xlu0 %v4059_v46, %s3770_s13 }
0x159b   :  { %472 = vrot.lane.b32.xlu1 %v3928_v40, %s3770_s13 }
0x159d   :  { %308 = vrot.lane.b32.xlu0 %v3901_v55, %s3770_s13  ;;  %v1459_v55 = vld [vmem:[%s4451_s4 + $0x8] sm:$0xff] }
0x159e   :  { %v3386_v40 = vpack.c.bf16 %v1459_v55, %v1458_v58 }
0x159f   :  { %798 = vrot.lane.b32.xlu1 %v3982_v14, %s3770_s13 }
0x15a0   :  { %3387 = vmatprep.subr.bf16.mxu1 %v3386_v40 }
0x15a1   :  { %635 = vrot.lane.b32.xlu0 %v3955_v26, %s3770_s13  ;;  %3389 = vmatpush3.bf16.msra.mxu1 %v3386_v40  ;;  %v1461_v26 = vld [vmem:[%s4451_s4 + $0x18] sm:$0xff] }
0x15a2   :  { %v3390_v28 = vpack.c.bf16 %v1461_v26, %v1460_v42 }
0x15a3   :  { %1124 = vrot.lane.b32.xlu1 %v4035_v52, %s3770_s13 }
0x15a4   :  { %3391 = vmatprep.subr.bf16.mxu1 %v3390_v28 }
0x15a5   :  { %961 = vrot.lane.b32.xlu0 %v4008_v2, %s3770_s13  ;;  %3393 = vmatpush3.bf16.msra.mxu1 %v3390_v28  ;;  %v1555_v2 = vld [vmem:[%s4452_s5 + $0x8] sm:$0xff] }
0x15a6   :  { %v4124_v52 = vpack.c.bf16 %v1555_v2, %v1554_v16  ;;  %3400 = vmatprep.subr.bf16.mxu1 %v3767_v0 }
0x15a8   :  { %3396 = vmatpush3.bf16.msra.mxu0 %v4124_v52 }
0x15a9   :  { %1287 = vrot.lane.b32.xlu0 %v4056_v44, %s3770_s13  ;;  %3397 = vmatprep.subr.bf16.mxu0 %v3767_v0 }
0x15ac   :  { %3399 = vmatpush3.bf16.msra.mxu0 %v4135_v36 }
0x15ad   :  { %3406 = vmatprep.subr.bf16.mxu0 %v3767_v0 }
0x15fb   :  { %v1425_v14 = vpop.permute.xlu0 %1424 }
0x15fc   :  { %v1430_v4 = vmul.f32 %v3581_v15, %v1425_v14 }
0x15fd   :  { %v1427_v35 = vpop.permute.xlu1 %1426 }
0x15fe   :  { %1448 = vrot.lane.b32.xlu1 %v1430_v4, %s3770_s13  ;;  %v1431_v37 = vmul.f32 %v3583_v19, %v1427_v35 }
0x15ff   :  { %v307_v38 = vpop.permute.xlu0 %306 }
0x1600   :  { %313 = vst.msk [vmem:[#allocation3] sm:$0x1] %vm312_vm5, %v307_v38  ;;  %v1442_v39 = vrot.slane %v1431_v37, 7 }
0x1601   :  { %v471_v41 = vpop.permute.xlu1 %470 }
0x1602   :  { %1450 = vrot.lane.b32.xlu1 %v1431_v37, %s3770_s13  ;;  %476 = vst.msk [vmem:[#allocation3 + $0x1] sm:$0x1] %vm312_vm5, %v471_v41  ;;  %v1443_v44 = vsel %vm292_vm4, %v1442_v39, %v1430_v4 }
0x1603   :  { %v634_v43 = vpop.permute.xlu0 %633  ;;  %1444 = vrot.lane.b32.xlu0 %v1443_v44, %s3770_s13 }
0x1604   :  { %639 = vst.msk [vmem:[#allocation3 + $0x2] sm:$0x1] %vm312_vm5, %v634_v43 }
0x1605   :  { %v797_v45 = vpop.permute.xlu1 %796 }
0x1606   :  { %1436 = vrot.lane.b32.xlu1 %v1435_v31, %s3772_s3  ;;  %802 = vst.msk [vmem:[#allocation3 + $0x3] sm:$0x1] %vm312_vm5, %v797_v45 }
0x1607   :  { %v960_v46 = vpop.permute.xlu0 %959 }
0x1608   :  { %965 = vst.msk [vmem:[#allocation3 + $0x4] sm:$0x1] %vm312_vm5, %v960_v46 }
0x1609   :  { %v1123_v47 = vpop.permute.xlu1 %1122 }
0x160a   :  { %1128 = vst.msk [vmem:[#allocation3 + $0x5] sm:$0x1] %vm312_vm5, %v1123_v47 }
0x160b   :  { %v1286_v48 = vpop.permute.xlu0 %1285 }
0x160c   :  { %1291 = vst.msk [vmem:[#allocation3 + $0x6] sm:$0x1] %vm312_vm5, %v1286_v48 }
0x160d   :  { %v473_v49 = vpop.permute.xlu1 %472 }
0x160e   :  { %477 = vst.msk [vmem:[#allocation3 + $0x9] sm:$0x1] %vm312_vm5, %v473_v49 }
0x160f   :  { %v309_v50 = vpop.permute.xlu0 %308 }
0x1610   :  { %314 = vst.msk [vmem:[#allocation3 + $0x8] sm:$0x1] %vm312_vm5, %v309_v50 }
0x1611   :  { %v799_v51 = vpop.permute.xlu1 %798 }
0x1612   :  { %803 = vst.msk [vmem:[#allocation3 + $0xb] sm:$0x1] %vm312_vm5, %v799_v51 }
0x1613   :  { %v636_v53 = vpop.permute.xlu0 %635 }
0x1614   :  { %640 = vst.msk [vmem:[#allocation3 + $0xa] sm:$0x1] %vm312_vm5, %v636_v53 }
0x1615   :  { %v1125_v56 = vpop.permute.xlu1 %1124 }
0x1616   :  { %1129 = vst.msk [vmem:[#allocation3 + $0xd] sm:$0x1] %vm312_vm5, %v1125_v56 }
0x1617   :  { %v962_v57 = vpop.permute.xlu0 %961 }
0x1618   :  { %966 = vst.msk [vmem:[#allocation3 + $0xc] sm:$0x1] %vm312_vm5, %v962_v57 }
0x161b   :  { %v1288_v59 = vpop.permute.xlu0 %1287 }
0x161c   :  { %1292 = vst.msk [vmem:[#allocation3 + $0xe] sm:$0x1] %vm312_vm5, %v1288_v59 }
0x1670   :  { %v1449_v60 = vpop.permute.xlu1 %1448 }
0x1671   :  { %1454 = vst.msk [vmem:[#allocation3 + $0x7] sm:$0x1] %vm312_vm5, %v1449_v60 }
0x1674   :  { %v1451_v61 = vpop.permute.xlu1 %1450 }
0x1675   :  { %1455 = vst.msk [vmem:[#allocation3 + $0xf] sm:$0x1] %vm312_vm5, %v1451_v61  ;;  %v1445_v62 = vpop.permute.xlu0 %1444 }
0x1676   :  { %1447 = vst.msk [vmem:[#allocation4] sm:$0x3] %vm142_vm1, %v1445_v62 }
0x1677   :  { %1552 = vst.msk [vmem:[#allocation4] sm:$0x3] %vm142_vm1, %v3769_v1 }
0x1678   :  { %v1437_v63 = vpop.permute.xlu1 %1436  ;;  %v1456_v3 = vld [vmem:[#allocation3] sm:$0xff] }
0x1679   :  { %1439 = vst.msk [vmem:[#allocation5] sm:$0x3] %vm142_vm1, %v1437_v63  ;;  %3232 = vmatprep.mubr.msk.f32.mxu1 %vm152_vm3, %v1456_v3 }
0x167a   :  { %1553 = vst.msk [vmem:[#allocation5] sm:$0x3] %vm142_vm1, %v3769_v1 }
0x167c   :  { %v1457_v5 = vld [vmem:[#allocation3 + $0x8] sm:$0xff] }
0x167d   :  { %3233 = vmatmul.mubr.msk.f32.vlgmr.msra.gmra.mrb[8].mxu1 %vm152_vm3, %v1457_v5 }
0x167e   :  { %3402 = vmatpush3.bf16.msra.mxu1 %v4124_v52  ;;  %3254 = vmatprep.mubr.msk.f32.mxu1 %vm3768_vm0, %v3769_v1  ;;  %v1560_v6 = vld [vmem:[#allocation4] sm:$0x3] }
0x167f   :  { %3403 = vmatprep.subr.bf16.mxu1 %v3767_v0  ;;  %3244 = vmatmul.mubr.msk.f32.vlgmr.msra.gmra.mrb[10].mxu0 %vm152_vm3, %v1560_v6 }
0x1680   :  { %3408 = vmatpush3.bf16.msra.mxu0 %v4124_v52  ;;  %3265 = vmatprep.mubr.msk.f32.mxu0 %vm3768_vm0, %v3769_v1 }
0x1681   :  { %3409 = vmatprep.subr.bf16.mxu0 %v3767_v0  ;;  %v1654_v13 = vld [vmem:[#allocation5] sm:$0x3] }
0x1682   :  { %3405 = vmatpush3.bf16.msra.mxu1 %v4135_v36  ;;  %v1656_v24 = vrot.slane %v1654_v13, 1 }
0x1683   :  { %3412 = vmatprep.subr.bf16.mxu1 %v3767_v0 }
0x1684   :  { %3411 = vmatpush3.bf16.msra.mxu0 %v4135_v36 }
0x1685   :  { %3418 = vmatprep.subr.bf16.mxu0 %v3767_v0 }
0x1750   :  { %v3234_v9 = vpop.f32.mrb[8].mxu1 }
0x1751   :  { %v1547_v10 = vadd.f32 %v3234_v9, %v3003_v7  ;;  %v1541_v11 = vpop.f32.mrb[9].mxu1 }
0x1752   :  { %v1542_v12 = vadd.f32 %v3003_v7, %v1541_v11  ;;  %v1630_v15 = vpop.f32.mrb[10].mxu0 }
0x1753   :  { %1551 = vst [vmem:[#allocation2 + $0x8] sm:$0xff] %v1547_v10  ;;  %v3245_v17 = vpop.f32.mrb[11].mxu0  ;;  %v1635_v18 = vrot.slane %v1630_v15, 1 }
0x1754   :  { %1550 = vst [vmem:[#allocation2] sm:$0xff] %v1542_v12 }
0x175a   :  { %v1559_v19 = vld [vmem:[#allocation2 + $0x8] sm:$0x1]  ;;  %v1722_v61 = vld [vmem:[#allocation2 + $0x9] sm:$0x1] }
0x175b   :  { %v1558_v20 = vld [vmem:[#allocation2] sm:$0x1]  ;;  %v1639_v8 = vadd.f32 %v1635_v18, %v1559_v19  ;;  %v1721_v53 = vld [vmem:[#allocation2 + $0x1] sm:$0x1] }
0x175c   :  { %v1638_v21 = vadd.f32 %v1630_v15, %v1558_v20 }
0x175d   :  { %3588 = vtanh.f32 %v1639_v8  ;;  %v3008_v25 = vmul.f32 -1.442695, %v1639_v8 }
0x175e   :  { %3590 = vtanh.f32 %v1638_v21  ;;  %v3007_v27 = vmul.f32 -1.442695, %v1638_v21 }
0x175f   :  { %3592 = vpow2.f32 %v3008_v25 }
0x1760   :  { %3594 = vpow2.f32 %v3007_v27 }
0x1767   :  { %v3589_v22 = vpop.eup %3588 }
0x1768   :  { %v3591_v23 = vpop.eup %3590  ;;  %1669 = vrot.lane.b32.xlu0 %v3589_v22, %s3771_s14 }
0x1769   :  { %1667 = vrot.lane.b32.xlu1 %v3591_v23, %s3771_s14  ;;  %v3593_v29 = vpop.eup %3592 }
0x176a   :  { %v3595_v30 = vpop.eup %3594  ;;  %v1647_v31 = vadd.f32 1.0, %v3593_v29 }
0x176b   :  { %v1646_v32 = vadd.f32 1.0, %v3595_v30 }
0x176c   :  { %1659 = vrot.lane.b32.xlu0 %v1656_v24, %s3770_s13  ;;  %3596 = vrcp.f32 %v1647_v31 }
0x176d   :  { %1657 = vrot.lane.b32.xlu1 %v1654_v13, %s3770_s13  ;;  %3598 = vrcp.f32 %v1646_v32 }
0x1776   :  { %v3597_v33 = vpop.eup %3596 }
0x1777   :  { %v3599_v55 = vpop.eup %3598 }
0x17da   :  { %v1670_v58 = vpop.permute.xlu0 %1669 }
0x17db   :  { %v1674_v40 = vmul.f32 %v3597_v33, %v1670_v58  ;;  %v1668_v42 = vpop.permute.xlu1 %1667 }
0x17dc   :  { %v1673_v26 = vmul.f32 %v3599_v55, %v1668_v42 }
0x17dd   :  { %1679 = vrot.lane.b32.xlu0 %v1674_v40, %s3770_s13 }
0x17de   :  { %1677 = vrot.lane.b32.xlu1 %v1673_v26, %s3770_s13  ;;  %v1660_v28 = vpop.permute.xlu0 %1659 }
0x17df   :  { %v1658_v14 = vpop.permute.xlu1 %1657  ;;  %v1664_v16 = vmul.f32 %v3597_v33, %v1660_v28 }
0x17e0   :  { %v1663_v2 = vmul.f32 %v3599_v55, %v1658_v14 }
0x184f   :  { %v1680_v4 = vpop.permute.xlu0 %1679 }
0x1850   :  { %v1684_v54 = vadd.f32 %v1680_v4, %v1664_v16  ;;  %v1678_v34 = vpop.permute.xlu1 %1677 }
0x1851   :  { %v1683_v35 = vadd.f32 %v1678_v34, %v1663_v2 }
0x1852   :  { %3600 = vtanh.f32 %v1684_v54  ;;  %v1699_v39 = vrot.slane %v1684_v54, 7  ;;  %v1884_v54 = vld [vmem:[#allocation2 + $0x2] sm:$0x1] }
0x1853   :  { %3602 = vtanh.f32 %v1683_v35 }
0x1854   :  { %v1700_v41 = vsel %vm292_vm4, %v1699_v39, %v1683_v35  ;;  %v1885_v39 = vld [vmem:[#allocation2 + $0xa] sm:$0x1] }
0x185c   :  { %v3601_v37 = vpop.eup %3600 }
0x185d   :  { %v3603_v38 = vpop.eup %3602  ;;  %1691 = vrot.lane.b32.xlu0 %v3601_v37, %s3771_s14 }
0x185e   :  { %1689 = vrot.lane.b32.xlu1 %v3603_v38, %s3771_s14 }
0x1862   :  { %1701 = vrot.lane.b32.xlu1 %v1700_v41, %s3772_s3 }
0x18cf   :  { %v1692_v43 = vpop.permute.xlu0 %1691 }
0x18d0   :  { %v4194_v44 = vmul.f32 %v3597_v33, %v1692_v43  ;;  %v1690_v45 = vpop.permute.xlu1 %1689 }
0x18d1   :  { %v4196_v46 = vmul.f32 %v3599_v55, %v1690_v45 }
0x18d2   :  { %v1707_v47 = vrot.slane %v4194_v44, 7 }
0x18d4   :  { %v1702_v48 = vpop.permute.xlu1 %1701  ;;  %v1708_v49 = vsel %vm292_vm4, %v1707_v47, %v4196_v46 }
0x18d5   :  { %1704 = vst.msk [vmem:[#allocation5] sm:$0x3] %vm142_vm1, %v1702_v48  ;;  %1709 = vrot.lane.b32.xlu0 %v1708_v49, %s3770_s13 }
0x18dc   :  { %v1817_v5 = vld [vmem:[#allocation5] sm:$0x3] }
0x18dd   :  { %v1819_v6 = vrot.slane %v1817_v5, 1 }
0x1947   :  { %v1710_v50 = vpop.permute.xlu0 %1709 }
0x1948   :  { %1712 = vst.msk [vmem:[#allocation4] sm:$0x3] %vm142_vm1, %v1710_v50 }
0x194f   :  { %v1723_v51 = vld [vmem:[#allocation4] sm:$0x3] }
0x1950   :  { %3255 = vmatmul.mubr.msk.f32.vlgmr.msra.gmra.mrb[10].mxu1 %vm152_vm3, %v1723_v51 }
0x1951   :  { %3414 = vmatpush3.bf16.msra.mxu1 %v4124_v52  ;;  %3276 = vmatprep.mubr.msk.f32.mxu1 %vm3768_vm0, %v3769_v1 }
0x1952   :  { %3415 = vmatprep.subr.bf16.mxu1 %v3767_v0 }
0x1955   :  { %3417 = vmatpush3.bf16.msra.mxu1 %v4135_v36 }
0x1956   :  { %3424 = vmatprep.subr.bf16.mxu1 %v3767_v0 }
0x1a23   :  { %v1793_v56 = vpop.f32.mrb[10].mxu1 }
0x1a24   :  { %v1798_v57 = vrot.slane %v1793_v56, 1  ;;  %v1801_v59 = vadd.f32 %v1793_v56, %v1721_v53  ;;  %v3256_v60 = vpop.f32.mrb[11].mxu1 }
0x1a26   :  { %v1802_v62 = vadd.f32 %v1798_v57, %v1722_v61  ;;  %3604 = vtanh.f32 %v1801_v59  ;;  %v3010_v7 = vmul.f32 -1.442695, %v1801_v59 }
0x1a28   :  { %3606 = vtanh.f32 %v1802_v62  ;;  %v3011_v9 = vmul.f32 -1.442695, %v1802_v62 }
0x1a29   :  { %3608 = vpow2.f32 %v3010_v7 }
0x1a2a   :  { %3610 = vpow2.f32 %v3011_v9 }
0x1a30   :  { %v3605_v63 = vpop.eup %3604 }
0x1a31   :  { %1830 = vrot.lane.b32.xlu1 %v3605_v63, %s3771_s14 }
0x1a32   :  { %v3607_v3 = vpop.eup %3606 }
0x1a33   :  { %1832 = vrot.lane.b32.xlu0 %v3607_v3, %s3771_s14  ;;  %v3609_v10 = vpop.eup %3608 }
0x1a34   :  { %v3611_v11 = vpop.eup %3610  ;;  %v1809_v12 = vadd.f32 1.0, %v3609_v10 }
0x1a35   :  { %1820 = vrot.lane.b32.xlu1 %v1817_v5, %s3770_s13  ;;  %v1810_v15 = vadd.f32 1.0, %v3611_v11 }
0x1a36   :  { %3612 = vrcp.f32 %v1809_v12 }
0x1a37   :  { %1822 = vrot.lane.b32.xlu0 %v1819_v6, %s3770_s13  ;;  %3614 = vrcp.f32 %v1810_v15 }
0x1a40   :  { %v3613_v17 = vpop.eup %3612 }
0x1a41   :  { %v3615_v20 = vpop.eup %3614 }
0x1aa3   :  { %v1831_v18 = vpop.permute.xlu1 %1830 }
0x1aa4   :  { %v1836_v19 = vmul.f32 %v3613_v17, %v1831_v18 }
0x1aa5   :  { %v1833_v8 = vpop.permute.xlu0 %1832 }
0x1aa6   :  { %1840 = vrot.lane.b32.xlu1 %v1836_v19, %s3770_s13  ;;  %v1837_v21 = vmul.f32 %v3615_v20, %v1833_v8 }
0x1aa7   :  { %v1821_v13 = vpop.permute.xlu1 %1820 }
0x1aa8   :  { %1842 = vrot.lane.b32.xlu0 %v1837_v21, %s3770_s13  ;;  %v1826_v22 = vmul.f32 %v3613_v17, %v1821_v13 }
0x1aa9   :  { %v1823_v23 = vpop.permute.xlu0 %1822 }
0x1aaa   :  { %v1827_v27 = vmul.f32 %v3615_v20, %v1823_v23 }
0x1b18   :  { %v1841_v24 = vpop.permute.xlu1 %1840 }
0x1b19   :  { %v1846_v25 = vadd.f32 %v1841_v24, %v1826_v22 }
0x1b1a   :  { %v1843_v29 = vpop.permute.xlu0 %1842 }
0x1b1b   :  { %3616 = vtanh.f32 %v1846_v25  ;;  %v1847_v30 = vadd.f32 %v1843_v29, %v1827_v27 }
0x1b1d   :  { %3618 = vtanh.f32 %v1847_v30  ;;  %v1862_v32 = vrot.slane %v1847_v30, 7  ;;  %v2047_v30 = vld [vmem:[#allocation2 + $0x3] sm:$0x1] }
0x1b1f   :  { %v1863_v58 = vsel %vm292_vm4, %v1862_v32, %v1846_v25 }
0x1b25   :  { %v3617_v31 = vpop.eup %3616 }
0x1b26   :  { %1852 = vrot.lane.b32.xlu1 %v3617_v31, %s3771_s14 }
0x1b27   :  { %v3619_v33 = vpop.eup %3618 }
0x1b28   :  { %1854 = vrot.lane.b32.xlu0 %v3619_v33, %s3771_s14 }
0x1b2a   :  { %1864 = vrot.lane.b32.xlu1 %v1863_v58, %s3772_s3 }
0x1b98   :  { %v1853_v55 = vpop.permute.xlu1 %1852 }
0x1b99   :  { %v4224_v28 = vmul.f32 %v3613_v17, %v1853_v55  ;;  %v2048_v55 = vld [vmem:[#allocation2 + $0xb] sm:$0x1] }
0x1b9a   :  { %v1855_v40 = vpop.permute.xlu0 %1854 }
0x1b9b   :  { %v4221_v42 = vmul.f32 %v3615_v20, %v1855_v40 }
0x1b9c   :  { %v1865_v26 = vpop.permute.xlu1 %1864 }
0x1b9d   :  { %1867 = vst.msk [vmem:[#allocation5] sm:$0x3] %vm142_vm1, %v1865_v26  ;;  %v1870_v14 = vrot.slane %v4221_v42, 7 }
0x1b9f   :  { %v1871_v16 = vsel %vm292_vm4, %v1870_v14, %v4224_v28 }
0x1ba0   :  { %1872 = vrot.lane.b32.xlu0 %v1871_v16, %s3770_s13 }
0x1ba4   :  { %v1980_v47 = vld [vmem:[#allocation5] sm:$0x3] }
0x1ba5   :  { %v1982_v48 = vrot.slane %v1980_v47, 1 }
0x1c12   :  { %v1873_v2 = vpop.permute.xlu0 %1872 }
0x1c13   :  { %1875 = vst.msk [vmem:[#allocation4] sm:$0x3] %vm142_vm1, %v1873_v2 }
0x1c1a   :  { %v1886_v4 = vld [vmem:[#allocation4] sm:$0x3] }
0x1c1b   :  { %3266 = vmatmul.mubr.msk.f32.vlgmr.msra.gmra.mrb[12].mxu0 %vm152_vm3, %v1886_v4 }
0x1c1c   :  { %3420 = vmatpush3.bf16.msra.mxu0 %v4124_v52  ;;  %3287 = vmatprep.mubr.msk.f32.mxu0 %vm3768_vm0, %v3769_v1 }
0x1c1d   :  { %3421 = vmatprep.subr.bf16.mxu0 %v3767_v0 }
0x1c20   :  { %3423 = vmatpush3.bf16.msra.mxu0 %v4135_v36 }
0x1c21   :  { %3430 = vmatprep.subr.bf16.mxu0 %v3767_v0 }
0x1cee   :  { %v1956_v34 = vpop.f32.mrb[12].mxu0 }
0x1cef   :  { %v1961_v35 = vrot.slane %v1956_v34, 1  ;;  %v1964_v37 = vadd.f32 %v1956_v34, %v1884_v54  ;;  %v3267_v38 = vpop.f32.mrb[13].mxu0 }
0x1cf1   :  { %v1965_v41 = vadd.f32 %v1961_v35, %v1885_v39  ;;  %3620 = vtanh.f32 %v1964_v37  ;;  %v3013_v49 = vmul.f32 -1.442695, %v1964_v37 }
0x1cf3   :  { %3622 = vtanh.f32 %v1965_v41  ;;  %v3014_v50 = vmul.f32 -1.442695, %v1965_v41 }
0x1cf4   :  { %3624 = vpow2.f32 %v3013_v49 }
0x1cf5   :  { %3626 = vpow2.f32 %v3014_v50 }
0x1cfb   :  { %v3621_v43 = vpop.eup %3620 }
0x1cfc   :  { %1993 = vrot.lane.b32.xlu1 %v3621_v43, %s3771_s14 }
0x1cfd   :  { %v3623_v45 = vpop.eup %3622 }
0x1cfe   :  { %1995 = vrot.lane.b32.xlu0 %v3623_v45, %s3771_s14  ;;  %v3625_v51 = vpop.eup %3624 }
0x1cff   :  { %v3627_v53 = vpop.eup %3626  ;;  %v1972_v56 = vadd.f32 1.0, %v3625_v51 }
0x1d00   :  { %1983 = vrot.lane.b32.xlu1 %v1980_v47, %s3770_s13  ;;  %v1973_v57 = vadd.f32 1.0, %v3627_v53 }
0x1d01   :  { %3628 = vrcp.f32 %v1972_v56 }
0x1d02   :  { %1985 = vrot.lane.b32.xlu0 %v1982_v48, %s3770_s13  ;;  %3630 = vrcp.f32 %v1973_v57 }
0x1d0b   :  { %v3629_v59 = vpop.eup %3628 }
0x1d0c   :  { %v3631_v62 = vpop.eup %3630 }
0x1d6e   :  { %v1994_v60 = vpop.permute.xlu1 %1993 }
0x1d6f   :  { %v1999_v61 = vmul.f32 %v3629_v59, %v1994_v60 }
0x1d70   :  { %v1996_v63 = vpop.permute.xlu0 %1995 }
0x1d71   :  { %2003 = vrot.lane.b32.xlu1 %v1999_v61, %s3770_s13  ;;  %v2000_v3 = vmul.f32 %v3631_v62, %v1996_v63 }
0x1d72   :  { %v1984_v5 = vpop.permute.xlu1 %1983 }
0x1d73   :  { %2005 = vrot.lane.b32.xlu0 %v2000_v3, %s3770_s13  ;;  %v1989_v6 = vmul.f32 %v3629_v59, %v1984_v5 }
0x1d74   :  { %v1986_v7 = vpop.permute.xlu0 %1985 }
0x1d75   :  { %v1990_v11 = vmul.f32 %v3631_v62, %v1986_v7 }
0x1de3   :  { %v2004_v9 = vpop.permute.xlu1 %2003 }
0x1de4   :  { %v2009_v10 = vadd.f32 %v2004_v9, %v1989_v6 }
0x1de5   :  { %v2006_v12 = vpop.permute.xlu0 %2005 }
0x1de6   :  { %3632 = vtanh.f32 %v2009_v10  ;;  %v2010_v15 = vadd.f32 %v2006_v12, %v1990_v11 }
0x1de8   :  { %3634 = vtanh.f32 %v2010_v15  ;;  %v2025_v18 = vrot.slane %v2010_v15, 7 }
0x1dea   :  { %v2026_v20 = vsel %vm292_vm4, %v2025_v18, %v2009_v10  ;;  %v2210_v18 = vld [vmem:[#allocation2 + $0x4] sm:$0x1] }
0x1df0   :  { %v3633_v17 = vpop.eup %3632 }
0x1df1   :  { %2015 = vrot.lane.b32.xlu1 %v3633_v17, %s3771_s14 }
0x1df2   :  { %v3635_v19 = vpop.eup %3634 }
0x1df3   :  { %2017 = vrot.lane.b32.xlu0 %v3635_v19, %s3771_s14 }
0x1df5   :  { %2027 = vrot.lane.b32.xlu1 %v2026_v20, %s3772_s3 }
0x1e63   :  { %v2016_v8 = vpop.permute.xlu1 %2015 }
0x1e64   :  { %v4251_v23 = vmul.f32 %v3629_v59, %v2016_v8 }
0x1e65   :  { %v2018_v21 = vpop.permute.xlu0 %2017 }
0x1e66   :  { %v4248_v13 = vmul.f32 %v3631_v62, %v2018_v21 }
0x1e67   :  { %v2028_v22 = vpop.permute.xlu1 %2027 }
0x1e68   :  { %2030 = vst.msk [vmem:[#allocation5] sm:$0x3] %vm142_vm1, %v2028_v22  ;;  %v2033_v24 = vrot.slane %v4248_v13, 7  ;;  %v2211_v22 = vld [vmem:[#allocation2 + $0xc] sm:$0x1] }
0x1e6a   :  { %v2034_v25 = vsel %vm292_vm4, %v2033_v24, %v4251_v23 }
0x1e6b   :  { %2035 = vrot.lane.b32.xlu0 %v2034_v25, %s3770_s13 }
0x1e6f   :  { %v2143_v16 = vld [vmem:[#allocation5] sm:$0x3] }
0x1e70   :  { %v2145_v2 = vrot.slane %v2143_v16, 1 }
0x1edd   :  { %v2036_v27 = vpop.permute.xlu0 %2035 }
0x1ede   :  { %2038 = vst.msk [vmem:[#allocation4] sm:$0x3] %vm142_vm1, %v2036_v27 }
0x1ee5   :  { %v2049_v29 = vld [vmem:[#allocation4] sm:$0x3] }
0x1ee6   :  { %3277 = vmatmul.mubr.msk.f32.vlgmr.msra.gmra.mrb[12].mxu1 %vm152_vm3, %v2049_v29 }
0x1ee7   :  { %3426 = vmatpush3.bf16.msra.mxu1 %v4124_v52  ;;  %3298 = vmatprep.mubr.msk.f32.mxu1 %vm3768_vm0, %v3769_v1 }
0x1ee8   :  { %3427 = vmatprep.subr.bf16.mxu1 %v3767_v0 }
0x1eeb   :  { %3429 = vmatpush3.bf16.msra.mxu1 %v4135_v36 }
0x1eec   :  { %3436 = vmatprep.subr.bf16.mxu1 %v3767_v0 }
0x1fb9   :  { %v2119_v31 = vpop.f32.mrb[12].mxu1 }
0x1fba   :  { %v2124_v32 = vrot.slane %v2119_v31, 1  ;;  %v2127_v33 = vadd.f32 %v2119_v31, %v2047_v30  ;;  %v3278_v58 = vpop.f32.mrb[13].mxu1 }
0x1fbc   :  { %v2128_v40 = vadd.f32 %v2124_v32, %v2048_v55  ;;  %3636 = vtanh.f32 %v2127_v33  ;;  %v3016_v4 = vmul.f32 -1.442695, %v2127_v33 }
0x1fbe   :  { %3638 = vtanh.f32 %v2128_v40  ;;  %v3017_v54 = vmul.f32 -1.442695, %v2128_v40 }
0x1fbf   :  { %3640 = vpow2.f32 %v3016_v4 }
0x1fc0   :  { %3642 = vpow2.f32 %v3017_v54 }
0x1fc6   :  { %v3637_v26 = vpop.eup %3636 }
0x1fc7   :  { %2156 = vrot.lane.b32.xlu1 %v3637_v26, %s3771_s14 }
0x1fc8   :  { %v3639_v14 = vpop.eup %3638 }
0x1fc9   :  { %2158 = vrot.lane.b32.xlu0 %v3639_v14, %s3771_s14  ;;  %v3641_v34 = vpop.eup %3640 }
0x1fca   :  { %v3643_v35 = vpop.eup %3642  ;;  %v2135_v37 = vadd.f32 1.0, %v3641_v34 }
0x1fcb   :  { %2146 = vrot.lane.b32.xlu1 %v2143_v16, %s3770_s13  ;;  %v2136_v38 = vadd.f32 1.0, %v3643_v35 }
0x1fcc   :  { %3644 = vrcp.f32 %v2135_v37 }
0x1fcd   :  { %2148 = vrot.lane.b32.xlu0 %v2145_v2, %s3770_s13  ;;  %3646 = vrcp.f32 %v2136_v38 }
0x1fd6   :  { %v3645_v39 = vpop.eup %3644 }
0x1fd7   :  { %v3647_v45 = vpop.eup %3646 }
0x2039   :  { %v2157_v41 = vpop.permute.xlu1 %2156 }
0x203a   :  { %v2162_v43 = vmul.f32 %v3645_v39, %v2157_v41 }
0x203b   :  { %v2159_v47 = vpop.permute.xlu0 %2158 }
0x203c   :  { %2166 = vrot.lane.b32.xlu1 %v2162_v43, %s3770_s13  ;;  %v2163_v48 = vmul.f32 %v3647_v45, %v2159_v47 }
0x203d   :  { %v2147_v49 = vpop.permute.xlu1 %2146 }
0x203e   :  { %2168 = vrot.lane.b32.xlu0 %v2163_v48, %s3770_s13  ;;  %v2152_v50 = vmul.f32 %v3645_v39, %v2147_v49 }
0x203f   :  { %v2149_v51 = vpop.permute.xlu0 %2148 }
0x2040   :  { %v2153_v57 = vmul.f32 %v3647_v45, %v2149_v51 }
0x20ae   :  { %v2167_v53 = vpop.permute.xlu1 %2166 }
0x20af   :  { %v2172_v56 = vadd.f32 %v2167_v53, %v2152_v50 }
0x20b0   :  { %v2169_v59 = vpop.permute.xlu0 %2168 }
0x20b1   :  { %3648 = vtanh.f32 %v2172_v56  ;;  %v2173_v60 = vadd.f32 %v2169_v59, %v2153_v57 }
0x20b3   :  { %3650 = vtanh.f32 %v2173_v60  ;;  %v2188_v62 = vrot.slane %v2173_v60, 7 }
0x20b5   :  { %v2189_v3 = vsel %vm292_vm4, %v2188_v62, %v2172_v56 }
0x20bb   :  { %v3649_v61 = vpop.eup %3648 }
0x20bc   :  { %2178 = vrot.lane.b32.xlu1 %v3649_v61, %s3771_s14 }
0x20bd   :  { %v3651_v63 = vpop.eup %3650 }
0x20be   :  { %2180 = vrot.lane.b32.xlu0 %v3651_v63, %s3771_s14 }
0x20c0   :  { %2190 = vrot.lane.b32.xlu1 %v2189_v3, %s3772_s3  ;;  %v2373_v3 = vld [vmem:[#allocation2 + $0x5] sm:$0x1] }
0x212e   :  { %v2179_v5 = vpop.permute.xlu1 %2178 }
0x212f   :  { %v4278_v10 = vmul.f32 %v3645_v39, %v2179_v5 }
0x2130   :  { %v2181_v6 = vpop.permute.xlu0 %2180 }
0x2131   :  { %v4275_v7 = vmul.f32 %v3647_v45, %v2181_v6 }
0x2132   :  { %v2191_v9 = vpop.permute.xlu1 %2190 }
0x2133   :  { %2193 = vst.msk [vmem:[#allocation5] sm:$0x3] %vm142_vm1, %v2191_v9  ;;  %v2196_v11 = vrot.slane %v4275_v7, 7 }
0x2135   :  { %v2197_v12 = vsel %vm292_vm4, %v2196_v11, %v4278_v10 }
0x2136   :  { %2198 = vrot.lane.b32.xlu0 %v2197_v12, %s3770_s13  ;;  %v2374_v12 = vld [vmem:[#allocation2 + $0xd] sm:$0x1] }
0x213a   :  { %v2306_v29 = vld [vmem:[#allocation5] sm:$0x3] }
0x213b   :  { %v2308_v30 = vrot.slane %v2306_v29, 1 }
0x21a8   :  { %v2199_v15 = vpop.permute.xlu0 %2198 }
0x21a9   :  { %2201 = vst.msk [vmem:[#allocation4] sm:$0x3] %vm142_vm1, %v2199_v15 }
0x21b0   :  { %v2212_v17 = vld [vmem:[#allocation4] sm:$0x3] }
0x21b1   :  { %3288 = vmatmul.mubr.msk.f32.vlgmr.msra.gmra.mrb[14].mxu0 %vm152_vm3, %v2212_v17 }
0x21b2   :  { %3432 = vmatpush3.bf16.msra.mxu0 %v4124_v52  ;;  %3309 = vmatprep.mubr.msk.f32.mxu0 %vm3768_vm0, %v3769_v1 }
0x21b3   :  { %3433 = vmatprep.subr.bf16.mxu0 %v3767_v0 }
0x21b6   :  { %3435 = vmatpush3.bf16.msra.mxu0 %v4135_v36 }
0x2284   :  { %v2282_v19 = vpop.f32.mrb[14].mxu0 }
0x2285   :  { %v2287_v20 = vrot.slane %v2282_v19, 1  ;;  %v2290_v8 = vadd.f32 %v2282_v19, %v2210_v18  ;;  %v3289_v21 = vpop.f32.mrb[15].mxu0 }
0x2287   :  { %v2291_v24 = vadd.f32 %v2287_v20, %v2211_v22  ;;  %3652 = vtanh.f32 %v2290_v8  ;;  %v3019_v31 = vmul.f32 -1.442695, %v2290_v8 }
0x2289   :  { %3654 = vtanh.f32 %v2291_v24  ;;  %v3020_v32 = vmul.f32 -1.442695, %v2291_v24 }
0x228a   :  { %3656 = vpow2.f32 %v3019_v31 }
0x228b   :  { %3658 = vpow2.f32 %v3020_v32 }
0x2291   :  { %v3653_v25 = vpop.eup %3652 }
0x2292   :  { %2319 = vrot.lane.b32.xlu1 %v3653_v25, %s3771_s14 }
0x2293   :  { %v3655_v27 = vpop.eup %3654 }
0x2294   :  { %2321 = vrot.lane.b32.xlu0 %v3655_v27, %s3771_s14  ;;  %v3657_v33 = vpop.eup %3656 }
0x2295   :  { %v3659_v58 = vpop.eup %3658  ;;  %v2298_v55 = vadd.f32 1.0, %v3657_v33 }
0x2296   :  { %2309 = vrot.lane.b32.xlu1 %v2306_v29, %s3770_s13  ;;  %v2299_v40 = vadd.f32 1.0, %v3659_v58 }
0x2297   :  { %3660 = vrcp.f32 %v2298_v55 }
0x2298   :  { %2311 = vrot.lane.b32.xlu0 %v2308_v30, %s3770_s13  ;;  %3662 = vrcp.f32 %v2299_v40 }
0x22a1   :  { %v3661_v26 = vpop.eup %3660 }
0x22a2   :  { %v3663_v2 = vpop.eup %3662 }
0x2304   :  { %v2320_v14 = vpop.permute.xlu1 %2319 }
0x2305   :  { %v2325_v16 = vmul.f32 %v3661_v26, %v2320_v14 }
0x2306   :  { %v2322_v4 = vpop.permute.xlu0 %2321 }
0x2307   :  { %2329 = vrot.lane.b32.xlu1 %v2325_v16, %s3770_s13  ;;  %v2326_v54 = vmul.f32 %v3663_v2, %v2322_v4 }
0x2308   :  { %v2310_v34 = vpop.permute.xlu1 %2309 }
0x2309   :  { %2331 = vrot.lane.b32.xlu0 %v2326_v54, %s3770_s13  ;;  %v2315_v35 = vmul.f32 %v3661_v26, %v2310_v34 }
0x230a   :  { %v2312_v37 = vpop.permute.xlu0 %2311 }
0x230b   :  { %v2316_v41 = vmul.f32 %v3663_v2, %v2312_v37 }
0x2379   :  { %v2330_v38 = vpop.permute.xlu1 %2329 }
0x237a   :  { %v2335_v39 = vadd.f32 %v2330_v38, %v2315_v35 }
0x237b   :  { %v2332_v43 = vpop.permute.xlu0 %2331 }
0x237c   :  { %3664 = vtanh.f32 %v2335_v39  ;;  %v2336_v45 = vadd.f32 %v2332_v43, %v2316_v41 }
0x237e   :  { %3666 = vtanh.f32 %v2336_v45  ;;  %v2351_v48 = vrot.slane %v2336_v45, 7 }
0x2380   :  { %v2352_v50 = vsel %vm292_vm4, %v2351_v48, %v2335_v39  ;;  %v2536_v48 = vld [vmem:[#allocation2 + $0x6] sm:$0x1] }
0x2386   :  { %v3665_v47 = vpop.eup %3664 }
0x2387   :  { %2341 = vrot.lane.b32.xlu1 %v3665_v47, %s3771_s14 }
0x2388   :  { %v3667_v49 = vpop.eup %3666 }
0x2389   :  { %2343 = vrot.lane.b32.xlu0 %v3667_v49, %s3771_s14 }
0x238b   :  { %2353 = vrot.lane.b32.xlu1 %v2352_v50, %s3772_s3 }
0x23f9   :  { %v2342_v51 = vpop.permute.xlu1 %2341 }
0x23fa   :  { %v4304_v59 = vmul.f32 %v3661_v26, %v2342_v51 }
0x23fb   :  { %v2344_v53 = vpop.permute.xlu0 %2343 }
0x23fc   :  { %v4301_v56 = vmul.f32 %v3663_v2, %v2344_v53 }
0x23fd   :  { %v2354_v57 = vpop.permute.xlu1 %2353 }
0x23fe   :  { %2356 = vst.msk [vmem:[#allocation5] sm:$0x3] %vm142_vm1, %v2354_v57  ;;  %v2359_v60 = vrot.slane %v4301_v56, 7  ;;  %v2537_v57 = vld [vmem:[#allocation2 + $0xe] sm:$0x1] }
0x2400   :  { %v2360_v61 = vsel %vm292_vm4, %v2359_v60, %v4304_v59 }
0x2401   :  { %2361 = vrot.lane.b32.xlu0 %v2360_v61, %s3770_s13 }
0x2405   :  { %v2469_v18 = vld [vmem:[#allocation5] sm:$0x3] }
0x2473   :  { %v2362_v62 = vpop.permute.xlu0 %2361 }
0x2474   :  { %2364 = vst.msk [vmem:[#allocation4] sm:$0x3] %vm142_vm1, %v2362_v62 }
0x247b   :  { %v2375_v63 = vld [vmem:[#allocation4] sm:$0x3] }
0x247c   :  { %3299 = vmatmul.mubr.msk.f32.vlgmr.msra.gmra.mrb[14].mxu1 %vm152_vm3, %v2375_v63 }
0x247d   :  { %3438 = vmatpush3.bf16.msra.mxu1 %v4124_v52  ;;  %3320 = vmatprep.mubr.msk.f32.mxu1 %vm3768_vm0, %v3769_v1 }
0x247e   :  { %3439 = vmatprep.subr.bf16.mxu1 %v3767_v0  ;;  %v2471_v0 = vrot.slane %v2469_v18, 1 }
0x2481   :  { %3441 = vmatpush3.bf16.msra.mxu1 %v4135_v36 }
0x254f   :  { %v2445_v5 = vpop.f32.mrb[14].mxu1 }
0x2550   :  { %v2450_v6 = vrot.slane %v2445_v5, 1  ;;  %v2453_v9 = vadd.f32 %v2445_v5, %v2373_v3  ;;  %v3300_v11 = vpop.f32.mrb[15].mxu1 }
0x2552   :  { %v2454_v15 = vadd.f32 %v2450_v6, %v2374_v12  ;;  %3668 = vtanh.f32 %v2453_v9  ;;  %v3022_v1 = vmul.f32 -1.442695, %v2453_v9 }
0x2554   :  { %3670 = vtanh.f32 %v2454_v15  ;;  %v3023_v36 = vmul.f32 -1.442695, %v2454_v15 }
0x2555   :  { %3672 = vpow2.f32 %v3022_v1 }
0x2556   :  { %3674 = vpow2.f32 %v3023_v36 }
0x255c   :  { %v3669_v17 = vpop.eup %3668 }
0x255d   :  { %2482 = vrot.lane.b32.xlu1 %v3669_v17, %s3771_s14 }
0x255e   :  { %v3671_v52 = vpop.eup %3670 }
0x255f   :  { %2484 = vrot.lane.b32.xlu0 %v3671_v52, %s3771_s14  ;;  %v3673_v19 = vpop.eup %3672 }
0x2560   :  { %v3675_v20 = vpop.eup %3674  ;;  %v2461_v8 = vadd.f32 1.0, %v3673_v19 }
0x2561   :  { %2472 = vrot.lane.b32.xlu1 %v2469_v18, %s3770_s13  ;;  %v2462_v21 = vadd.f32 1.0, %v3675_v20 }
0x2562   :  { %3676 = vrcp.f32 %v2461_v8 }
0x2563   :  { %2474 = vrot.lane.b32.xlu0 %v2471_v0, %s3770_s13  ;;  %3678 = vrcp.f32 %v2462_v21 }
0x256c   :  { %v3677_v22 = vpop.eup %3676 }
0x256d   :  { %v3679_v27 = vpop.eup %3678 }
0x25cf   :  { %v2483_v24 = vpop.permute.xlu1 %2482 }
0x25d0   :  { %v2488_v25 = vmul.f32 %v3677_v22, %v2483_v24 }
0x25d1   :  { %v2485_v29 = vpop.permute.xlu0 %2484 }
0x25d2   :  { %2492 = vrot.lane.b32.xlu1 %v2488_v25, %s3770_s13  ;;  %v2489_v30 = vmul.f32 %v3679_v27, %v2485_v29 }
0x25d3   :  { %v2473_v31 = vpop.permute.xlu1 %2472 }
0x25d4   :  { %2494 = vrot.lane.b32.xlu0 %v2489_v30, %s3770_s13  ;;  %v2478_v32 = vmul.f32 %v3677_v22, %v2473_v31 }
0x25d5   :  { %v2475_v33 = vpop.permute.xlu0 %2474 }
0x25d6   :  { %v2479_v40 = vmul.f32 %v3679_v27, %v2475_v33 }
0x2644   :  { %v2493_v58 = vpop.permute.xlu1 %2492 }
0x2645   :  { %v2498_v55 = vadd.f32 %v2493_v58, %v2478_v32 }
0x2646   :  { %v2495_v26 = vpop.permute.xlu0 %2494 }
0x2647   :  { %3680 = vtanh.f32 %v2498_v55  ;;  %v2499_v14 = vadd.f32 %v2495_v26, %v2479_v40 }
0x2649   :  { %3682 = vtanh.f32 %v2499_v14  ;;  %v2514_v2 = vrot.slane %v2499_v14, 7 }
0x264b   :  { %v2515_v54 = vsel %vm292_vm4, %v2514_v2, %v2498_v55 }
0x2651   :  { %v3681_v16 = vpop.eup %3680 }
0x2652   :  { %2504 = vrot.lane.b32.xlu1 %v3681_v16, %s3771_s14 }
0x2653   :  { %v3683_v4 = vpop.eup %3682 }
0x2654   :  { %2506 = vrot.lane.b32.xlu0 %v3683_v4, %s3771_s14 }
0x2656   :  { %2516 = vrot.lane.b32.xlu1 %v2515_v54, %s3772_s3  ;;  %v2699_v54 = vld [vmem:[#allocation2 + $0x7] sm:$0x1] }
0x26c4   :  { %v2505_v34 = vpop.permute.xlu1 %2504 }
0x26c5   :  { %v4330_v39 = vmul.f32 %v3677_v22, %v2505_v34 }
0x26c6   :  { %v2507_v35 = vpop.permute.xlu0 %2506 }
0x26c7   :  { %v4327_v37 = vmul.f32 %v3679_v27, %v2507_v35 }
0x26c8   :  { %v2517_v38 = vpop.permute.xlu1 %2516 }
0x26c9   :  { %2519 = vst.msk [vmem:[#allocation5] sm:$0x3] %vm142_vm1, %v2517_v38  ;;  %v2522_v41 = vrot.slane %v4327_v37, 7 }
0x26cb   :  { %v2523_v43 = vsel %vm292_vm4, %v2522_v41, %v4330_v39 }
0x26cc   :  { %2524 = vrot.lane.b32.xlu0 %v2523_v43, %s3770_s13  ;;  %v2700_v43 = vld [vmem:[#allocation2 + $0xf] sm:$0x1] }
0x26d0   :  { %v2632_v63 = vld [vmem:[#allocation5] sm:$0x3] }
0x26d1   :  { %v2634_v3 = vrot.slane %v2632_v63, 1 }
0x273e   :  { %v2525_v45 = vpop.permute.xlu0 %2524 }
0x273f   :  { %2527 = vst.msk [vmem:[#allocation4] sm:$0x3] %vm142_vm1, %v2525_v45 }
0x2746   :  { %v2538_v47 = vld [vmem:[#allocation4] sm:$0x3] }
0x2747   :  { %3310 = vmatmul.mubr.msk.f32.vlgmr.msra.gmra.mrb[16].mxu0 %vm152_vm3, %v2538_v47 }
0x281a   :  { %v2608_v49 = vpop.f32.mrb[16].mxu0 }
0x281b   :  { %v2613_v50 = vrot.slane %v2608_v49, 1  ;;  %v2616_v51 = vadd.f32 %v2608_v49, %v2536_v48  ;;  %v3311_v53 = vpop.f32.mrb[17].mxu0 }
0x281d   :  { %v2617_v60 = vadd.f32 %v2613_v50, %v2537_v57  ;;  %3684 = vtanh.f32 %v2616_v51  ;;  %v3025_v5 = vmul.f32 -1.442695, %v2616_v51 }
0x281f   :  { %3686 = vtanh.f32 %v2617_v60  ;;  %v3026_v6 = vmul.f32 -1.442695, %v2617_v60 }
0x2820   :  { %3688 = vpow2.f32 %v3025_v5 }
0x2821   :  { %3690 = vpow2.f32 %v3026_v6 }
0x2827   :  { %v3685_v61 = vpop.eup %3684 }
0x2828   :  { %2645 = vrot.lane.b32.xlu1 %v3685_v61, %s3771_s14 }
0x2829   :  { %v3687_v62 = vpop.eup %3686 }
0x282a   :  { %2647 = vrot.lane.b32.xlu0 %v3687_v62, %s3771_s14  ;;  %v3689_v9 = vpop.eup %3688 }
0x282b   :  { %v3691_v11 = vpop.eup %3690  ;;  %v2624_v12 = vadd.f32 1.0, %v3689_v9 }
0x282c   :  { %2635 = vrot.lane.b32.xlu1 %v2632_v63, %s3770_s13  ;;  %v2625_v15 = vadd.f32 1.0, %v3691_v11 }
0x282d   :  { %3692 = vrcp.f32 %v2624_v12 }
0x282e   :  { %2637 = vrot.lane.b32.xlu0 %v2634_v3, %s3770_s13  ;;  %3694 = vrcp.f32 %v2625_v15 }
0x2837   :  { %v3693_v17 = vpop.eup %3692 }
0x2838   :  { %v3695_v0 = vpop.eup %3694 }
0x289a   :  { %v2646_v52 = vpop.permute.xlu1 %2645 }
0x289b   :  { %v2651_v18 = vmul.f32 %v3693_v17, %v2646_v52 }
0x289c   :  { %v2648_v1 = vpop.permute.xlu0 %2647 }
0x289d   :  { %2655 = vrot.lane.b32.xlu1 %v2651_v18, %s3770_s13  ;;  %v2652_v36 = vmul.f32 %v3695_v0, %v2648_v1 }
0x289e   :  { %v2636_v19 = vpop.permute.xlu1 %2635 }
0x289f   :  { %2657 = vrot.lane.b32.xlu0 %v2652_v36, %s3770_s13  ;;  %v2641_v20 = vmul.f32 %v3693_v17, %v2636_v19 }
0x28a0   :  { %v2638_v8 = vpop.permute.xlu0 %2637 }
0x28a1   :  { %v2642_v24 = vmul.f32 %v3695_v0, %v2638_v8 }
0x290f   :  { %v2656_v21 = vpop.permute.xlu1 %2655 }
0x2910   :  { %v2661_v22 = vadd.f32 %v2656_v21, %v2641_v20 }
0x2911   :  { %v2658_v25 = vpop.permute.xlu0 %2657 }
0x2912   :  { %3696 = vtanh.f32 %v2661_v22  ;;  %v2662_v27 = vadd.f32 %v2658_v25, %v2642_v24 }
0x2914   :  { %3698 = vtanh.f32 %v2662_v27  ;;  %v2677_v30 = vrot.slane %v2662_v27, 7 }
0x2916   :  { %v2678_v32 = vsel %vm292_vm4, %v2677_v30, %v2661_v22 }
0x291c   :  { %v3697_v29 = vpop.eup %3696 }
0x291d   :  { %2667 = vrot.lane.b32.xlu1 %v3697_v29, %s3771_s14 }
0x291e   :  { %v3699_v31 = vpop.eup %3698 }
0x291f   :  { %2669 = vrot.lane.b32.xlu0 %v3699_v31, %s3771_s14 }
0x2921   :  { %2679 = vrot.lane.b32.xlu1 %v2678_v32, %s3772_s3 }
0x298f   :  { %v2668_v33 = vpop.permute.xlu1 %2667 }
0x2990   :  { %v2673_v26 = vmul.f32 %v3693_v17, %v2668_v33 }
0x2991   :  { %v2670_v58 = vpop.permute.xlu0 %2669 }
0x2992   :  { %v4348_v55 = vmul.f32 %v3695_v0, %v2670_v58 }
0x2993   :  { %v2680_v40 = vpop.permute.xlu1 %2679 }
0x2994   :  { %2682 = vst.msk [vmem:[#allocation5] sm:$0x3] %vm142_vm1, %v2680_v40  ;;  %v2685_v14 = vrot.slane %v4348_v55, 7 }
0x2996   :  { %v2686_v16 = vsel %vm292_vm4, %v2685_v14, %v2673_v26 }
0x2997   :  { %2687 = vrot.lane.b32.xlu0 %v2686_v16, %s3770_s13 }
0x299b   :  { %v2795_v49 = vld [vmem:[#allocation5] sm:$0x3] }
0x299c   :  { %v2797_v50 = vrot.slane %v2795_v49, 1 }
0x2a09   :  { %v2688_v2 = vpop.permute.xlu0 %2687 }
0x2a0a   :  { %2690 = vst.msk [vmem:[#allocation4] sm:$0x3] %vm142_vm1, %v2688_v2 }
0x2a11   :  { %v2701_v4 = vld [vmem:[#allocation4] sm:$0x3] }
0x2a12   :  { %3321 = vmatmul.mubr.msk.f32.vlgmr.msra.gmra.mrb[16].mxu1 %vm152_vm3, %v2701_v4 }
0x2ae5   :  { %v2771_v34 = vpop.f32.mrb[16].mxu1 }
0x2ae6   :  { %v2776_v35 = vrot.slane %v2771_v34, 1  ;;  %v2779_v38 = vadd.f32 %v2771_v34, %v2699_v54  ;;  %v3322_v41 = vpop.f32.mrb[17].mxu1 }
0x2ae8   :  { %v2780_v45 = vadd.f32 %v2776_v35, %v2700_v43  ;;  %3700 = vtanh.f32 %v2779_v38  ;;  %v3028_v51 = vmul.f32 -1.442695, %v2779_v38  ;;  %v3030_v38 = vld [vmem:[%s4455_s8] ss:$0 sm:$0xff] }
0x2aea   :  { %3702 = vtanh.f32 %v2780_v45  ;;  %v3029_v53 = vmul.f32 -1.442695, %v2780_v45 }
0x2aeb   :  { %3704 = vpow2.f32 %v3028_v51 }
0x2aec   :  { %3706 = vpow2.f32 %v3029_v53 }
0x2af2   :  { %v3701_v47 = vpop.eup %3700 }
0x2af3   :  { %2808 = vrot.lane.b32.xlu0 %v3701_v47, %s3771_s14 }
0x2af4   :  { %v3703_v48 = vpop.eup %3702 }
0x2af5   :  { %2810 = vrot.lane.b32.xlu1 %v3703_v48, %s3771_s14  ;;  %v3705_v57 = vpop.eup %3704 }
0x2af6   :  { %v3707_v60 = vpop.eup %3706  ;;  %v2787_v61 = vadd.f32 1.0, %v3705_v57 }
0x2af7   :  { %2798 = vrot.lane.b32.xlu0 %v2795_v49, %s3770_s13  ;;  %v2788_v62 = vadd.f32 1.0, %v3707_v60 }
0x2af8   :  { %3708 = vrcp.f32 %v2787_v61 }
0x2af9   :  { %2800 = vrot.lane.b32.xlu1 %v2797_v50, %s3770_s13  ;;  %3710 = vrcp.f32 %v2788_v62 }
0x2b02   :  { %v3709_v63 = vpop.eup %3708 }
0x2b03   :  { %v3711_v6 = vpop.eup %3710 }
0x2b65   :  { %v2809_v3 = vpop.permute.xlu0 %2808 }
0x2b66   :  { %v2814_v5 = vmul.f32 %v3709_v63, %v2809_v3 }
0x2b67   :  { %v2811_v9 = vpop.permute.xlu1 %2810 }
0x2b68   :  { %2818 = vrot.lane.b32.xlu0 %v2814_v5, %s3770_s13  ;;  %v2815_v11 = vmul.f32 %v3711_v6, %v2811_v9 }
0x2b69   :  { %v2799_v12 = vpop.permute.xlu0 %2798 }
0x2b6a   :  { %2820 = vrot.lane.b32.xlu1 %v2815_v11, %s3770_s13  ;;  %v2804_v15 = vmul.f32 %v3709_v63, %v2799_v12 }
0x2b6b   :  { %v2801_v17 = vpop.permute.xlu1 %2800 }
0x2b6c   :  { %v2805_v0 = vmul.f32 %v3711_v6, %v2801_v17 }
0x2bda   :  { %v2819_v52 = vpop.permute.xlu0 %2818 }
0x2bdb   :  { %v2824_v18 = vadd.f32 %v2819_v52, %v2804_v15 }
0x2bdc   :  { %v2821_v1 = vpop.permute.xlu1 %2820 }
0x2bdd   :  { %3712 = vtanh.f32 %v2824_v18  ;;  %v2825_v36 = vadd.f32 %v2821_v1, %v2805_v0 }
0x2bdf   :  { %3714 = vtanh.f32 %v2825_v36 }
0x2be7   :  { %v3713_v19 = vpop.eup %3712 }
0x2be8   :  { %2830 = vrot.lane.b32.xlu0 %v3713_v19, %s3771_s14 }
0x2be9   :  { %v3715_v20 = vpop.eup %3714 }
0x2bea   :  { %2832 = vrot.lane.b32.xlu1 %v3715_v20, %s3771_s14 }
0x2bec   :  { %1713 = vrot.lane.b32.xlu0 %v4196_v46, %s3770_s13  ;;  %v2840_v46 = vrot.slane %v2825_v36, 7 }
0x2bee   :  { %1876 = vrot.lane.b32.xlu1 %v4224_v28, %s3770_s13  ;;  %v2865_v28 = vld [vmem:[%s4454_s7 + $0x8] sm:$0xff] }
0x2bf0   :  { %2039 = vrot.lane.b32.xlu0 %v4251_v23, %s3770_s13  ;;  %v2866_v23 = vld [vmem:[%s4454_s7 + $0x10] sm:$0xff] }
0x2bf2   :  { %2202 = vrot.lane.b32.xlu1 %v4278_v10, %s3770_s13 }
0x2bf4   :  { %2365 = vrot.lane.b32.xlu0 %v4304_v59, %s3770_s13 }
0x2bf6   :  { %2528 = vrot.lane.b32.xlu1 %v4330_v39, %s3770_s13 }
0x2bf8   :  { %2691 = vrot.lane.b32.xlu0 %v2673_v26, %s3770_s13 }
0x2bfa   :  { %1878 = vrot.lane.b32.xlu1 %v4221_v42, %s3770_s13  ;;  %v2841_v42 = vsel %vm292_vm4, %v2840_v46, %v2824_v18 }
0x2bfc   :  { %1715 = vrot.lane.b32.xlu0 %v4194_v44, %s3770_s13  ;;  %v2864_v44 = vld [vmem:[%s4454_s7] sm:$0xff] }
0x2bfe   :  { %2204 = vrot.lane.b32.xlu1 %v4275_v7, %s3770_s13  ;;  %v2867_v7 = vld [vmem:[%s4454_s7 + $0x18] sm:$0xff] }
0x2bff   :  { %v3446_v10 = vpack.c.bf16 %v2867_v7, %v2866_v23 }
0x2c00   :  { %2041 = vrot.lane.b32.xlu0 %v4248_v13, %s3770_s13  ;;  %v3442_v13 = vpack.c.bf16 %v2865_v28, %v2864_v44 }
0x2c02   :  { %2530 = vrot.lane.b32.xlu1 %v4327_v37, %s3770_s13  ;;  %3443 = vmatprep.subr.bf16.mxu0 %v3442_v13 }
0x2c03   :  { %3445 = vmatpush3.bf16.msra.mxu0 %v3442_v13 }
0x2c04   :  { %2367 = vrot.lane.b32.xlu0 %v4301_v56, %s3770_s13  ;;  %3447 = vmatprep.subr.bf16.mxu0 %v3446_v10 }
0x2c07   :  { %3449 = vmatpush3.bf16.msra.mxu0 %v3446_v10 }
0x2c08   :  { %2693 = vrot.lane.b32.xlu0 %v4348_v55, %s3770_s13 }
0x2c0c   :  { %2842 = vrot.lane.b32.xlu0 %v2841_v42, %s3772_s3  ;;  %s3773_s3 = smov [#allocation9]  }
0x2c0d   :  { %s2964_s17 = sshll.u32 %s3773_s3, 4  ;;  %s2965_s17 = int_to_ptr.vmem [resolvable:$true] %s2964_s17 }
0x2c0e   :  { %s3738_s18 = scalar_lea.vmem %s2965_s17, 256  ;;  %p3743_p9 = scmp.lt.s32.totalorder %s2965_s17, %s2965_s17 }
0x2c0f   :  { %p3739_p8 = scmp.ne.s32.totalorder %s2965_s17, %s3738_s18  ;;  %p3744_p10 = scmp.lt.s32.totalorder %s3738_s18, %s3738_s18 }
0x2c11   :  { %p3745_p11 = por %p3744_p10, %p3743_p9 }
0x2c13   :  { %p3746_p12 = pnand %p3745_p11, %p3739_p8 }
0x2c5a   :  { %v2831_v56 = vpop.permute.xlu0 %2830 }
0x2c5b   :  { %v2836_v59 = vmul.f32 %v3709_v63, %v2831_v56 }
0x2c5c   :  { %v2833_v37 = vpop.permute.xlu1 %2832 }
0x2c5d   :  { %2854 = vrot.lane.b32.xlu1 %v2836_v59, %s3770_s13  ;;  %v2837_v39 = vmul.f32 %v3711_v6, %v2833_v37 }
0x2c5e   :  { %v1714_v8 = vpop.permute.xlu0 %1713 }
0x2c5f   :  { %1719 = vst.msk [vmem:[#allocation3] sm:$0x1] %vm312_vm5, %v1714_v8  ;;  %v2848_v21 = vrot.slane %v2837_v39, 7 }
0x2c60   :  { %v1877_v22 = vpop.permute.xlu1 %1876 }
0x2c61   :  { %2856 = vrot.lane.b32.xlu1 %v2837_v39, %s3770_s13  ;;  %1882 = vst.msk [vmem:[#allocation3 + $0x1] sm:$0x1] %vm312_vm5, %v1877_v22  ;;  %v2849_v25 = vsel %vm292_vm4, %v2848_v21, %v2836_v59 }
0x2c62   :  { %v2040_v24 = vpop.permute.xlu0 %2039 }
0x2c63   :  { %2045 = vst.msk [vmem:[#allocation3 + $0x2] sm:$0x1] %vm312_vm5, %v2040_v24 }
0x2c64   :  { %v2203_v27 = vpop.permute.xlu1 %2202 }
0x2c65   :  { %2850 = vrot.lane.b32.xlu1 %v2849_v25, %s3770_s13  ;;  %2208 = vst.msk [vmem:[#allocation3 + $0x3] sm:$0x1] %vm312_vm5, %v2203_v27 }
0x2c66   :  { %v2366_v29 = vpop.permute.xlu0 %2365 }
0x2c67   :  { %2371 = vst.msk [vmem:[#allocation3 + $0x4] sm:$0x1] %vm312_vm5, %v2366_v29 }
0x2c68   :  { %v2529_v30 = vpop.permute.xlu1 %2528 }
0x2c69   :  { %2534 = vst.msk [vmem:[#allocation3 + $0x5] sm:$0x1] %vm312_vm5, %v2529_v30 }
0x2c6a   :  { %v2692_v31 = vpop.permute.xlu0 %2691 }
0x2c6b   :  { %2697 = vst.msk [vmem:[#allocation3 + $0x6] sm:$0x1] %vm312_vm5, %v2692_v31 }
0x2c6c   :  { %v1879_v32 = vpop.permute.xlu1 %1878 }
0x2c6d   :  { %1883 = vst.msk [vmem:[#allocation3 + $0x9] sm:$0x1] %vm312_vm5, %v1879_v32 }
0x2c6e   :  { %v1716_v33 = vpop.permute.xlu0 %1715 }
0x2c6f   :  { %1720 = vst.msk [vmem:[#allocation3 + $0x8] sm:$0x1] %vm312_vm5, %v1716_v33 }
0x2c70   :  { %v2205_v58 = vpop.permute.xlu1 %2204 }
0x2c71   :  { %2209 = vst.msk [vmem:[#allocation3 + $0xb] sm:$0x1] %vm312_vm5, %v2205_v58 }
0x2c72   :  { %v2042_v55 = vpop.permute.xlu0 %2041 }
0x2c73   :  { %2046 = vst.msk [vmem:[#allocation3 + $0xa] sm:$0x1] %vm312_vm5, %v2042_v55 }
0x2c74   :  { %v2531_v40 = vpop.permute.xlu1 %2530 }
0x2c75   :  { %2535 = vst.msk [vmem:[#allocation3 + $0xd] sm:$0x1] %vm312_vm5, %v2531_v40 }
0x2c76   :  { %v2368_v26 = vpop.permute.xlu0 %2367 }
0x2c77   :  { %2372 = vst.msk [vmem:[#allocation3 + $0xc] sm:$0x1] %vm312_vm5, %v2368_v26 }
0x2c7a   :  { %v2694_v14 = vpop.permute.xlu0 %2693 }
0x2c7b   :  { %2698 = vst.msk [vmem:[#allocation3 + $0xe] sm:$0x1] %vm312_vm5, %v2694_v14 }
0x2c7e   :  { %v2843_v16 = vpop.permute.xlu0 %2842 }
0x2c7f   :  { %2845 = vst.msk [vmem:[#allocation5] sm:$0x3] %vm142_vm1, %v2843_v16 }
0x2ccf   :  { %v2855_v2 = vpop.permute.xlu1 %2854 }
0x2cd0   :  { %2860 = vst.msk [vmem:[#allocation3 + $0x7] sm:$0x1] %vm312_vm5, %v2855_v2 }
0x2cd3   :  { %v2857_v4 = vpop.permute.xlu1 %2856 }
0x2cd4   :  { %2861 = vst.msk [vmem:[#allocation3 + $0xf] sm:$0x1] %vm312_vm5, %v2857_v4 }
0x2cd7   :  { %v2851_v54 = vpop.permute.xlu1 %2850  ;;  %v2862_v34 = vld [vmem:[#allocation3] sm:$0xff] }
0x2cd8   :  { %2853 = vst.msk [vmem:[#allocation4] sm:$0x3] %vm142_vm1, %v2851_v54  ;;  %3331 = vmatprep.mubr.msk.f32.mxu0 %vm152_vm3, %v2862_v34 }
0x2cdb   :  { %v2863_v35 = vld [vmem:[#allocation3 + $0x8] sm:$0xff] }
0x2cdc   :  { %3332 = vmatmul.mubr.msk.f32.vlgmr.msra.gmra.mrb[18].mxu0 %vm152_vm3, %v2863_v35 }
0x2daf   :  { %v3333_v41 = vpop.f32.mrb[18].mxu0 }
0x2db0   :  { %v2953_v43 = vadd.f32 %v3333_v41, %v3030_v38  ;;  %v2947_v45 = vpop.f32.mrb[19].mxu0 }
0x2db1   :  { %v2948_v47 = vadd.f32 %v3030_v38, %v2947_v45 }
0x2db2   :  { %2958 = vst.msk [vmem:[#allocation9 + $0x8] sm:$0xff] %vm2956_vm6, %v2953_v43 }
0x2db3   :  { %2957 = vst.msk [vmem:[#allocation9] sm:$0xff] %vm2956_vm6, %v2948_v47 }
0x2db4   :  { %3749 = shalt.err (!%p3746_p12)
}
0x2db5   :  { %s3750_s8 = scalar_lea.hbm %s4456_s9, 256 }
0x2db6   :  { %p3751_p13 = scmp.ne.s32.totalorder %s4456_s9, %s3750_s8  ;;  %p3754_p0 = scmp.lt.u32.totalorder %s3750_s8, %s4456_s9 }
0x2db8   :  { %p3756_p1 = pnand %p3754_p0, %p3751_p13 }
0x2dba   :  { %3759 = shalt.err (!%p3756_p1)
}
0x2dbb   :  { %2970 = dma.vmem_to_hbm [thread:$0]  %s2965_s17, 256, %s4456_s9, [#allocation8], %s3765_s19, %s3765_s19, %s3766_s20  }
0x2dbc   :  { %3762 = dma.done.wait [#allocation8], 256  }
0x2dbd   :  { %3763 = vsyncadd [#allocation8], 4294967040 }
0x2dbe   :  { %2974 = vsyncpa [#allocation7], 1 }
0x2dbf   :  { %2975 = vsyncpa [#allocation8], 1 }

</bundles_post_ra>
